<compile_context>
chip_gen: v7x
topology: tpu7x:2x2x1
jax: 0.10.0
libtpu: 0.0.40
codegen_flags: <defaults>
</compile_context>

<pallas_src>
import functools
import math

import jax
import jax.numpy as jnp
from jax.experimental import pallas as pl
from jax.experimental.pallas import tpu as pltpu


def _round_up(x, m):
    return -(-x // m) * m


def _layer_norm(x, gamma, beta, eps=1e-5):
    """Two-pass LayerNorm in f32 (robust to large post-residual magnitudes)."""
    mu = jnp.mean(x, axis=-1, keepdims=True)
    xc = x - mu
    var = jnp.mean(xc * xc, axis=-1, keepdims=True)
    return xc * jax.lax.rsqrt(var + eps) * gamma + beta


def _bmm_qk(qh, kh):
    """[Bb,Lq,hd] x [Bb,Lk,hd] -> [Bb,Lq,Lk] (f32 accumulation)."""
    if qh.shape[0] == 1:  # drop unit batch dim -> plain 2-D MXU matmul
        e = jax.lax.dot_general(qh[0], kh[0], (((1,), (1,)), ((), ())),
                                preferred_element_type=jnp.float32)
        return e[None]
    return jnp.einsum('bqd,bkd->bqk', qh, kh,
                      preferred_element_type=jnp.float32)


def _bmm_pv(p, vh):
    """[Bb,Lq,Lk] x [Bb,Lk,hd] -> [Bb,Lq,hd] (f32 accumulation)."""
    if p.shape[0] == 1:
        return jnp.dot(p[0], vh[0], preferred_element_type=jnp.float32)[None]
    return jnp.einsum('bqk,bkd->bqd', p, vh,
                      preferred_element_type=jnp.float32)


def decoder_layer_kernel(
    # blocked inputs
    x_ref, enc_ref, mask_ref, smask_ref,
    # self-attention weights (fused QKV)
    sWqkv, sbqkv, sWo, sbo,
    # encoder-attention weights (fused KV)
    eWq, ebq, eWkv, ebkv, eWo, ebo,
    # feed-forward weights
    fW1, fb1, fW2, fb2,
    # layernorm params
    g_sa, b_sa, g_ea, b_ea, g_ff, b_ff,
    # outputs
    out_ref, sattn_ref, eattn_ref,
    # scratch: bf16 context slab [Mq, D]
    ctx_ref,
    *, n_heads):
    Bb, Lq, D = x_ref.shape
    Ls = enc_ref.shape[1]
    H = n_heads
    hd = D // H
    Mq = Bb * Lq
    inv_scale = 1.0 / math.sqrt(hd)

    x = x_ref[...].astype(jnp.float32).reshape(Mq, D)     # f32 [Mq, D]
    x_bf = x.astype(jnp.bfloat16)
    enc_bf = enc_ref[...].astype(jnp.bfloat16).reshape(Bb * Ls, D)

    # int8 masks -> keep-predicates, computed once and reused across heads.
    keep_self = jnp.broadcast_to(
        mask_ref[...].astype(jnp.float32) != 0.0, (Bb, Lq, Lq))
    keep_src = jnp.broadcast_to(
        smask_ref[...].astype(jnp.float32) != 0.0, (Bb, Lq, Ls))

    def attention(Q, K, V, n_kv, keep, Wo, bo, attn_ref):
        # Q: f32 [Mq, D]; K/V: f32 [Bb*n_kv, D].
        # Fold 1/sqrt(hd) into Q once.
        Qb = (Q * inv_scale).astype(jnp.bfloat16)
        Kb = K.astype(jnp.bfloat16)
        Vb = V.astype(jnp.bfloat16)
        for h in range(H):                                 # static, unrolled
            sl = slice(h * hd, (h + 1) * hd)
            Qh = Qb[:, sl].reshape(Bb, Lq, hd)
            Kh = Kb[:, sl].reshape(Bb, n_kv, hd)
            Vh = Vb[:, sl].reshape(Bb, n_kv, hd)
            energy = _bmm_qk(Qh, Kh)                       # [Bb, Lq, n_kv] f32
            energy = jnp.where(keep, energy, jnp.float32(-1e10))
            m = jnp.max(energy, axis=-1, keepdims=True)
            p = jnp.exp(energy - m)
            attn = p / jnp.sum(p, axis=-1, keepdims=True)  # exact softmax
            # Lane-dense probability output: head h occupies lanes
            # [h*n_kv, (h+1)*n_kv) of a [Bb, Lq, H*n_kv] block.
            attn_ref[:, :, h * n_kv:(h + 1) * n_kv] = attn
            ctx = _bmm_pv(attn.astype(jnp.bfloat16), Vh)   # [Bb, Lq, hd] f32
            # Write the head's context into the bf16 slab at its lane offset.
            ctx_ref[:, sl] = ctx.reshape(Mq, hd).astype(jnp.bfloat16)
        # Single full-depth (K = D) output projection.
        return (jnp.dot(ctx_ref[...], Wo[...],
                        preferred_element_type=jnp.float32) + bo[...])

    # ---- self-attention + residual + LayerNorm (dropout == identity, eval) --
    qkv = jnp.dot(x_bf, sWqkv[...],
                  preferred_element_type=jnp.float32) + sbqkv[...]
    ax = attention(qkv[:, :D], qkv[:, D:2 * D], qkv[:, 2 * D:], Lq, keep_self,
                   sWo, sbo, sattn_ref)
    x1 = _layer_norm(x + ax, g_sa[...], b_sa[...])
    x1_bf = x1.astype(jnp.bfloat16)

    # ---- encoder (cross) attention + residual + LayerNorm --------------------
    q = jnp.dot(x1_bf, eWq[...],
                preferred_element_type=jnp.float32) + ebq[...]
    kv = jnp.dot(enc_bf, eWkv[...],
                 preferred_element_type=jnp.float32) + ebkv[...]
    ax = attention(q, kv[:, :D], kv[:, D:], Ls, keep_src, eWo, ebo, eattn_ref)
    x2 = _layer_norm(x1 + ax, g_ea[...], b_ea[...])
    x2_bf = x2.astype(jnp.bfloat16)

    # ---- position-wise feed-forward + residual + LayerNorm -------------------
    hdn = jnp.maximum(
        jnp.dot(x2_bf, fW1[...], preferred_element_type=jnp.float32)
        + fb1[...], 0.0)
    ff = jnp.dot(hdn.astype(jnp.bfloat16), fW2[...],
                 preferred_element_type=jnp.float32) + fb2[...]
    x3 = _layer_norm(x2 + ff, g_ff[...], b_ff[...])

    out_ref[...] = x3.reshape(Bb, Lq, D).astype(out_ref.dtype)


_PREPPED_ORDER = ["sWqkv", "sbqkv", "sWo", "sbo",
                  "eWq", "ebq", "eWkv", "ebkv", "eWo", "ebo",
                  "fW1", "fb1", "fW2", "fb2",
                  "g_sa", "b_sa", "g_ea", "b_ea", "g_ff", "b_ff"]


def prepare_decoder_params(params):
    """One-time weight prep (hoisted out of the per-layer call): matmul
    operands -> bf16; Q|K|V (self) and K|V (cross) concatenated so each
    attention block needs one projection matmul per source."""
    f32 = lambda a: jnp.asarray(a, jnp.float32)
    bf16 = lambda a: jnp.asarray(a, jnp.bfloat16)
    p = {
        "sWqkv": bf16(jnp.concatenate(
            [params["sWq"], params["sWk"], params["sWv"]], axis=1)),
        "sbqkv": f32(jnp.concatenate(
            [params["sbq"], params["sbk"], params["sbv"]], axis=-1)),
        "sWo": bf16(params["sWo"]), "sbo": f32(params["sbo"]),
        "eWq": bf16(params["eWq"]), "ebq": f32(params["ebq"]),
        "eWkv": bf16(jnp.concatenate([params["eWk"], params["eWv"]], axis=1)),
        "ebkv": f32(jnp.concatenate([params["ebk"], params["ebv"]], axis=-1)),
        "eWo": bf16(params["eWo"]), "ebo": f32(params["ebo"]),
        "fW1": bf16(params["fW1"]), "fb1": f32(params["fb1"]),
        "fW2": bf16(params["fW2"]), "fb2": f32(params["fb2"]),
    }
    for n in ("sa", "ea", "ff"):
        p[f"g_{n}"] = f32(params[f"g_{n}"])
        p[f"b_{n}"] = f32(params[f"b_{n}"])
    return p


def _chip_vmem_bytes():
    """Best-effort VMEM capacity query (falls back to 128 MiB = v5e/v6e)."""
    try:
        info = pltpu.get_tpu_info()
        return int(getattr(info, "vmem_capacity_bytes", 128 * 1024 * 1024))
    except Exception:
        return 128 * 1024 * 1024


def _block_vmem_estimate(blk_b, Ltp, Lsp, D, P, H, weight_bytes):
    """Rough VMEM bytes for one grid step (pipeline blocks + weights + temps)."""
    Mq = blk_b * Ltp
    Me = blk_b * Lsp
    io = (blk_b * Ltp * D * 4 + blk_b * Lsp * D * 4        # x, enc blocks
          + blk_b * Ltp * Ltp + blk_b * Lsp                # int8 masks (bound)
          + blk_b * Ltp * D * 4                            # out block
          + blk_b * Ltp * H * Ltp * 4                      # self-attn probs
          + blk_b * Ltp * H * Lsp * 4)                     # cross-attn probs
    io *= 2                                                # double-buffering
    w = 2 * weight_bytes
    tmp = 3 * (Mq * 3 * D * 4 + Me * 3 * D * 4 + Mq * P * 4
               + blk_b * Ltp * H * max(Ltp, Lsp) * 4 + Mq * D * 4)
    scratch = Mq * D * 2                                   # bf16 ctx slab
    return int(io + w + tmp + scratch)


def _pick_block_b(B, Ltp, Lsp, D, P, H, weight_bytes, vmem_bytes, dual_tc):
    """Single-TC chips (v5e/v6e): fold as much batch as fits into one grid
    step (taller M for the MXU).  Dual-TC v7x: keep >=2 parallel grid steps."""
    budget = int(0.75 * vmem_bytes)
    divisors = [d for d in range(1, B + 1) if B % d == 0]
    fitting = [d for d in divisors
               if _block_vmem_estimate(d, Ltp, Lsp, D, P, H, weight_bytes)
               <= budget]
    if not fitting:
        return 1

    def best(cands):
        good = [d for d in cands if d * Ltp >= 256]   # enough M, no over-block
        return min(good) if good else max(cands)

    if dual_tc and B >= 2:
        two_step = [d for d in fitting if B // d >= 2]
        if two_step:
            return best(two_step)
    return best(fitting)


def decoder_layer(x, mask, src_enc, src_mask, prepped, n_heads):
    """Pallas equivalent of DecoderLayer.forward(x, mask, src_enc, src_mask).
    `prepped` comes from prepare_decoder_params (called once per model)."""
    B, Lt, D = x.shape
    Ls = src_enc.shape[1]
    H = n_heads
    P = prepped["fW1"].shape[-1]

    # Pad sequence dims to sublane multiples so batch folding stays layout
    # free; padded keys are masked out, padded rows/cols sliced off outputs.
    Ltp = _round_up(Lt, 8)
    Lsp = _round_up(Ls, 8)

    def pad_axis(a, axis, new):
        if a.shape[axis] == new:
            return a
        cfg = [(0, 0)] * a.ndim
        cfg[axis] = (0, new - a.shape[axis])
        return jnp.pad(a, cfg)

    xp = pad_axis(x, 1, Ltp)
    encp = pad_axis(src_enc, 1, Lsp)

    # Compact int8 masks: [B,1,Lq,Lk]/[B,1,1,Lk] -> [B,m,Lk].
    mask3 = mask.reshape(B, mask.shape[-2], mask.shape[-1])
    smask3 = src_mask.reshape(B, src_mask.shape[-2], src_mask.shape[-1])
    mask3 = pad_axis(mask3, 2, Ltp)
    if mask3.shape[1] == Lt:
        mask3 = pad_axis(mask3, 1, Ltp)
    smask3 = pad_axis(smask3, 2, Lsp)
    if smask3.shape[1] == Lt:
        smask3 = pad_axis(smask3, 1, Ltp)
    mask3 = (mask3 != 0).astype(jnp.int8)
    smask3 = (smask3 != 0).astype(jnp.int8)

    weights = [prepped[k] for k in _PREPPED_ORDER]
    weight_bytes = sum(int(w.size) * w.dtype.itemsize for w in weights)

    vmem_bytes = _chip_vmem_bytes()
    dual_tc = vmem_bytes <= 64 * 1024 * 1024   # v7x: 2 TCs, 64 MiB VMEM per TC
    blk_b = _pick_block_b(B, Ltp, Lsp, D, P, H, weight_bytes, vmem_bytes,
                          dual_tc)

    def batch_spec(shape):
        nd = len(shape)
        return pl.BlockSpec((blk_b,) + tuple(shape[1:]),
                            lambda b, nd=nd: (b,) + (0,) * (nd - 1))

    def full_spec(shape):
        nd = len(shape)
        return pl.BlockSpec(tuple(shape), lambda b, nd=nd: (0,) * nd)

    in_specs = ([batch_spec(xp.shape), batch_spec(encp.shape),
                 batch_spec(mask3.shape), batch_spec(smask3.shape)]
                + [full_spec(w.shape) for w in weights])

    # Attention probabilities lane-dense: heads concatenated along the last
    # (lane) dim -> last dim H*Lk instead of Lk; un-permuted in the wrapper.
    out_shape = (
        jax.ShapeDtypeStruct((B, Ltp, D), x.dtype),
        jax.ShapeDtypeStruct((B, Ltp, H * Ltp), jnp.float32),
        jax.ShapeDtypeStruct((B, Ltp, H * Lsp), jnp.float32),
    )
    out_specs = tuple(batch_spec(s.shape) for s in out_shape)

    est = _block_vmem_estimate(blk_b, Ltp, Lsp, D, P, H, weight_bytes)
    vmem_limit = int(min(0.9 * vmem_bytes, max(32 * 1024 * 1024, 2 * est)))

    # Advisory cost estimate so XLA can schedule surrounding ops.
    flops = (6 * 2 * B * Ltp * D * D          # Q/K/V/O (self) + Q/O (cross)
             + 2 * 2 * B * Lsp * D * D        # K/V (cross)
             + 4 * B * Ltp * Ltp * D          # self-attn QK^T + PV
             + 4 * B * Ltp * Lsp * D          # cross-attn QK^T + PV
             + 4 * B * Ltp * D * P)           # FFN
    transcendentals = B * H * Ltp * (Ltp + Lsp) + 3 * B * Ltp
    inputs_all = [xp, encp, mask3, smask3] + weights
    bytes_accessed = (sum(int(a.size) * a.dtype.itemsize for a in inputs_all)
                      + sum(math.prod(s.shape) * jnp.dtype(s.dtype).itemsize
                            for s in out_shape))
    cost = pl.CostEstimate(flops=int(flops),
                           transcendentals=int(transcendentals),
                           bytes_accessed=int(bytes_accessed))

    kernel = functools.partial(decoder_layer_kernel, n_heads=H)
    out, sattn_flat, eattn_flat = pl.pallas_call(
        kernel,
        grid=(B // blk_b,),
        in_specs=in_specs,
        out_specs=out_specs,
        out_shape=out_shape,
        scratch_shapes=[pltpu.VMEM((blk_b * Ltp, D), jnp.bfloat16)],
        compiler_params=pltpu.CompilerParams(
            dimension_semantics=("parallel",),
            vmem_limit_bytes=vmem_limit),
        cost_estimate=cost,
    )(xp, encp, mask3, smask3, *weights)

    # Un-pad / un-permute back to the PyTorch layout.
    out = out[:, :Lt]
    sattn = sattn_flat.reshape(B, Ltp, H, Ltp).transpose(0, 2, 1, 3)
    sattn = sattn[:, :, :Lt, :Lt]
    eattn = eattn_flat.reshape(B, Ltp, H, Lsp).transpose(0, 2, 1, 3)
    eattn = eattn[:, :, :Lt, :Ls]
    return out, sattn, eattn


# ---------------- pure-JAX reference (for correctness check) ----------------
def _ref_layer_norm(x, gamma, beta, eps=1e-5):
    mu = jnp.mean(x, axis=-1, keepdims=True)
    var = jnp.mean((x - mu) ** 2, axis=-1, keepdims=True)
    return (x - mu) / jnp.sqrt(var + eps) * gamma + beta


def _ref_mha(q, k, v, mask, Wq, bq, Wk, bk, Wv, bv, Wo, bo, n_heads):
    B, Lq, D = q.shape
    hd = D // n_heads

    def split(t):
        return t.reshape(B, -1, n_heads, hd).transpose(0, 2, 1, 3)

    Q, K, V = split(q @ Wq + bq), split(k @ Wk + bk), split(v @ Wv + bv)
    energy = jnp.einsum('bhqd,bhkd->bhqk', Q, K) / jnp.sqrt(jnp.float32(hd))
    energy = jnp.where(mask == 0, -1e10, energy)
    attn = jax.nn.softmax(energy, axis=-1)
    ctx = jnp.einsum('bhqk,bhkd->bhqd', attn, V)
    ctx = ctx.transpose(0, 2, 1, 3).reshape(B, Lq, D)
    return ctx @ Wo + bo, attn


def _ref_decoder_layer(x, mask, src_enc, src_mask, p, n_heads):
    ax, sa = _ref_mha(x, x, x, mask, p["sWq"], p["sbq"], p["sWk"], p["sbk"],
                      p["sWv"], p["sbv"], p["sWo"], p["sbo"], n_heads)
    x = _ref_layer_norm(x + ax, p["g_sa"], p["b_sa"])
    ax, ea = _ref_mha(x, src_enc, src_enc, src_mask, p["eWq"], p["ebq"],
                      p["eWk"], p["ebk"], p["eWv"], p["ebv"],
                      p["eWo"], p["ebo"], n_heads)
    x = _ref_layer_norm(x + ax, p["g_ea"], p["b_ea"])
    ff = jnp.maximum(x @ p["fW1"] + p["fb1"], 0.0) @ p["fW2"] + p["fb2"]
    x = _ref_layer_norm(x + ff, p["g_ff"], p["b_ff"])
    return x, sa, ea


if __name__ == "__main__":
    B, Lt, Ls, D, H, P = 2, 8, 10, 32, 4, 64
    kit = iter(jax.random.split(jax.random.PRNGKey(0), 64))

    def rnd(shape, s=0.05):
        return jax.random.normal(next(kit), shape, jnp.float32) * s

    x = rnd((B, Lt, D), 1.0)
    src_enc = rnd((B, Ls, D), 1.0)

    # PyTorch Linear weights stored pre-transposed as [in, out] so the kernel
    # computes x @ W + b.
    params = {}
    for pre in ("s", "e"):
        for name in ("q", "k", "v", "o"):
            params[f"{pre}W{name}"] = rnd((D, D))
            params[f"{pre}b{name}"] = rnd((1, D))
    params["fW1"], params["fb1"] = rnd((D, P)), rnd((1, P))
    params["fW2"], params["fb2"] = rnd((P, D)), rnd((1, D))
    for n in ("sa", "ea", "ff"):
        params[f"g_{n}"] = jnp.ones((1, D), jnp.float32)
        params[f"b_{n}"] = jnp.zeros((1, D), jnp.float32)

    # Causal self-attention mask [B,1,Lt,Lt]; src mask [B,1,1,Ls] with two
    # padded positions masked for the second batch element.
    mask = jnp.broadcast_to(
        jnp.tril(jnp.ones((Lt, Lt), jnp.float32))[None, None], (B, 1, Lt, Lt))
    src_mask = jnp.ones((B, 1, 1, Ls), jnp.float32).at[1, 0, 0, Ls - 2:].set(0.0)

    # Weight prep happens once per model (hoisted out of the layer call).
    prepped = prepare_decoder_params(params)

    out, self_attn, enc_attn = decoder_layer(x, mask, src_enc, src_mask,
                                             prepped, H)
    jax.block_until_ready((out, self_attn, enc_attn))

    ref_out, ref_sa, ref_ea = _ref_decoder_layer(x, mask, src_enc, src_mask,
                                                 params, H)
    assert out.shape == (B, Lt, D)
    assert self_attn.shape == (B, H, Lt, Lt)
    assert enc_attn.shape == (B, H, Lt, Ls)
    # bf16 matmul operands -> modest tolerances.
    assert jnp.allclose(out, ref_out, rtol=2e-2, atol=4e-2), "output mismatch"
    assert jnp.allclose(self_attn, ref_sa, rtol=2e-2, atol=1e-2), "self_attn mismatch"
    assert jnp.allclose(enc_attn, ref_ea, rtol=2e-2, atol=1e-2), "enc_attn mismatch"
    print("KERNEL_OK")
</pallas_src>

<mosaic_0001>
module attributes {stable_mosaic.version = 11 : i64} {
  func.func @decoder_layer_kernel(%arg0: i32, %arg1: memref<2x8x32xf32, #tpu.memory_space<vmem>>, %arg2: memref<2x16x32xf32, #tpu.memory_space<vmem>>, %arg3: memref<2x8x8xi8, #tpu.memory_space<vmem>>, %arg4: memref<2x1x16xi8, #tpu.memory_space<vmem>>, %arg5: memref<32x96xbf16, #tpu.memory_space<vmem>>, %arg6: memref<1x96xf32, #tpu.memory_space<vmem>>, %arg7: memref<32x32xbf16, #tpu.memory_space<vmem>>, %arg8: memref<1x32xf32, #tpu.memory_space<vmem>>, %arg9: memref<32x32xbf16, #tpu.memory_space<vmem>>, %arg10: memref<1x32xf32, #tpu.memory_space<vmem>>, %arg11: memref<32x64xbf16, #tpu.memory_space<vmem>>, %arg12: memref<1x64xf32, #tpu.memory_space<vmem>>, %arg13: memref<32x32xbf16, #tpu.memory_space<vmem>>, %arg14: memref<1x32xf32, #tpu.memory_space<vmem>>, %arg15: memref<32x64xbf16, #tpu.memory_space<vmem>>, %arg16: memref<1x64xf32, #tpu.memory_space<vmem>>, %arg17: memref<64x32xbf16, #tpu.memory_space<vmem>>, %arg18: memref<1x32xf32, #tpu.memory_space<vmem>>, %arg19: memref<1x32xf32, #tpu.memory_space<vmem>>, %arg20: memref<1x32xf32, #tpu.memory_space<vmem>>, %arg21: memref<1x32xf32, #tpu.memory_space<vmem>>, %arg22: memref<1x32xf32, #tpu.memory_space<vmem>>, %arg23: memref<1x32xf32, #tpu.memory_space<vmem>>, %arg24: memref<1x32xf32, #tpu.memory_space<vmem>>, %arg25: memref<2x8x32xf32, #tpu.memory_space<vmem>>, %arg26: memref<2x8x32xf32, #tpu.memory_space<vmem>>, %arg27: memref<2x8x64xf32, #tpu.memory_space<vmem>>, %arg28: memref<16x32xbf16, #tpu.memory_space<vmem>>) attributes {dimension_semantics = [#tpu.dimension_semantics<parallel>], iteration_bounds = array<i64: 1>, scalar_prefetch = 0 : i64, scratch_operands = 1 : i64, tpu.core_type = #tpu.core_type<tc>, window_params = [{transform_indices = @transform_0, window_bounds = array<i64: 2, 8, 32>}, {transform_indices = @transform_1, window_bounds = array<i64: 2, 16, 32>}, {transform_indices = @transform_2, window_bounds = array<i64: 2, 8, 8>}, {transform_indices = @transform_3, window_bounds = array<i64: 2, 1, 16>}, {pipeline_mode = #tpu.pipeline_mode<synchronous>, transform_indices = @transform_4, window_bounds = array<i64: 32, 96>}, {pipeline_mode = #tpu.pipeline_mode<synchronous>, transform_indices = @transform_5, window_bounds = array<i64: 1, 96>}, {pipeline_mode = #tpu.pipeline_mode<synchronous>, transform_indices = @transform_6, window_bounds = array<i64: 32, 32>}, {pipeline_mode = #tpu.pipeline_mode<synchronous>, transform_indices = @transform_7, window_bounds = array<i64: 1, 32>}, {pipeline_mode = #tpu.pipeline_mode<synchronous>, transform_indices = @transform_8, window_bounds = array<i64: 32, 32>}, {pipeline_mode = #tpu.pipeline_mode<synchronous>, transform_indices = @transform_9, window_bounds = array<i64: 1, 32>}, {pipeline_mode = #tpu.pipeline_mode<synchronous>, transform_indices = @transform_10, window_bounds = array<i64: 32, 64>}, {pipeline_mode = #tpu.pipeline_mode<synchronous>, transform_indices = @transform_11, window_bounds = array<i64: 1, 64>}, {pipeline_mode = #tpu.pipeline_mode<synchronous>, transform_indices = @transform_12, window_bounds = array<i64: 32, 32>}, {pipeline_mode = #tpu.pipeline_mode<synchronous>, transform_indices = @transform_13, window_bounds = array<i64: 1, 32>}, {pipeline_mode = #tpu.pipeline_mode<synchronous>, transform_indices = @transform_14, window_bounds = array<i64: 32, 64>}, {pipeline_mode = #tpu.pipeline_mode<synchronous>, transform_indices = @transform_15, window_bounds = array<i64: 1, 64>}, {pipeline_mode = #tpu.pipeline_mode<synchronous>, transform_indices = @transform_16, window_bounds = array<i64: 64, 32>}, {pipeline_mode = #tpu.pipeline_mode<synchronous>, transform_indices = @transform_17, window_bounds = array<i64: 1, 32>}, {pipeline_mode = #tpu.pipeline_mode<synchronous>, transform_indices = @transform_18, window_bounds = array<i64: 1, 32>}, {pipeline_mode = #tpu.pipeline_mode<synchronous>, transform_indices = @transform_19, window_bounds = array<i64: 1, 32>}, {pipeline_mode = #tpu.pipeline_mode<synchronous>, transform_indices = @transform_20, window_bounds = array<i64: 1, 32>}, {pipeline_mode = #tpu.pipeline_mode<synchronous>, transform_indices = @transform_21, window_bounds = array<i64: 1, 32>}, {pipeline_mode = #tpu.pipeline_mode<synchronous>, transform_indices = @transform_22, window_bounds = array<i64: 1, 32>}, {pipeline_mode = #tpu.pipeline_mode<synchronous>, transform_indices = @transform_23, window_bounds = array<i64: 1, 32>}, {transform_indices = @transform_24, window_bounds = array<i64: 2, 8, 32>}, {transform_indices = @transform_25, window_bounds = array<i64: 2, 8, 32>}, {transform_indices = @transform_26, window_bounds = array<i64: 2, 8, 64>}]} {
    %c0 = arith.constant 0 : index
    %c0_0 = arith.constant 0 : index
    %c0_1 = arith.constant 0 : index
    %0 = vector.load %arg1[%c0, %c0_0, %c0_1] : memref<2x8x32xf32, #tpu.memory_space<vmem>>, vector<2x8x32xf32>
    %1 = vector.shape_cast %0 : vector<2x8x32xf32> to vector<16x32xf32>
    %2 = arith.truncf %1 : vector<16x32xf32> to vector<16x32xbf16>
    %c0_2 = arith.constant 0 : index
    %c0_3 = arith.constant 0 : index
    %c0_4 = arith.constant 0 : index
    %3 = vector.load %arg2[%c0_2, %c0_3, %c0_4] : memref<2x16x32xf32, #tpu.memory_space<vmem>>, vector<2x16x32xf32>
    %4 = arith.truncf %3 : vector<2x16x32xf32> to vector<2x16x32xbf16>
    %5 = vector.shape_cast %4 : vector<2x16x32xbf16> to vector<32x32xbf16>
    %c0_5 = arith.constant 0 : index
    %c0_6 = arith.constant 0 : index
    %c0_7 = arith.constant 0 : index
    %6 = vector.load %arg3[%c0_5, %c0_6, %c0_7] : memref<2x8x8xi8, #tpu.memory_space<vmem>>, vector<2x8x8xi8>
    %7 = arith.sitofp %6 : vector<2x8x8xi8> to vector<2x8x8xf32>
    %cst = arith.constant 0.000000e+00 : f32
    %8 = vector.broadcast %cst : f32 to vector<2x8x8xf32>
    %9 = arith.cmpf one, %7, %8 : vector<2x8x8xf32>
    %c0_8 = arith.constant 0 : index
    %c0_9 = arith.constant 0 : index
    %c0_10 = arith.constant 0 : index
    %10 = vector.load %arg4[%c0_8, %c0_9, %c0_10] : memref<2x1x16xi8, #tpu.memory_space<vmem>>, vector<2x1x16xi8>
    %11 = arith.sitofp %10 : vector<2x1x16xi8> to vector<2x1x16xf32>
    %cst_11 = arith.constant 0.000000e+00 : f32
    %12 = vector.broadcast %cst_11 : f32 to vector<2x1x16xf32>
    %13 = arith.cmpf one, %11, %12 : vector<2x1x16xf32>
    %14 = vector.shape_cast %13 : vector<2x1x16xi1> to vector<2x1x16xi1>
    %15 = vector.broadcast %14 : vector<2x1x16xi1> to vector<2x8x16xi1>
    %c0_12 = arith.constant 0 : index
    %c0_13 = arith.constant 0 : index
    %16 = vector.load %arg5[%c0_12, %c0_13] : memref<32x96xbf16, #tpu.memory_space<vmem>>, vector<32x96xbf16>
    %cst_14 = arith.constant dense<0.000000e+00> : vector<16x96xf32>
    %17 = tpu.matmul %2, %16, %cst_14 {dimension_numbers = #tpu.dot_dimension_numbers<[1], [0], [0], [1], [0, 0, 1, 1], [], []>} : vector<16x32xbf16>, vector<32x96xbf16>, vector<16x96xf32> -> vector<16x96xf32>
    %c0_15 = arith.constant 0 : index
    %c0_16 = arith.constant 0 : index
    %18 = vector.load %arg6[%c0_15, %c0_16] : memref<1x96xf32, #tpu.memory_space<vmem>>, vector<1x96xf32>
    %19 = vector.broadcast %18 : vector<1x96xf32> to vector<16x96xf32>
    %20 = arith.addf %17, %19 : vector<16x96xf32>
    %21 = vector.extract_strided_slice %20 {offsets = [0, 0], sizes = [16, 32], strides = [1, 1]} : vector<16x96xf32> to vector<16x32xf32>
    %22 = vector.extract_strided_slice %20 {offsets = [0, 32], sizes = [16, 32], strides = [1, 1]} : vector<16x96xf32> to vector<16x32xf32>
    %23 = vector.extract_strided_slice %20 {offsets = [0, 64], sizes = [16, 32], strides = [1, 1]} : vector<16x96xf32> to vector<16x32xf32>
    %cst_17 = arith.constant 0.353553385 : f32
    %24 = vector.broadcast %cst_17 : f32 to vector<16x32xf32>
    %25 = arith.mulf %21, %24 : vector<16x32xf32>
    %26 = arith.truncf %25 : vector<16x32xf32> to vector<16x32xbf16>
    %27 = arith.truncf %22 : vector<16x32xf32> to vector<16x32xbf16>
    %28 = arith.truncf %23 : vector<16x32xf32> to vector<16x32xbf16>
    %29 = vector.extract_strided_slice %26 {offsets = [0, 0], sizes = [16, 8], strides = [1, 1]} : vector<16x32xbf16> to vector<16x8xbf16>
    %30 = vector.shape_cast %29 : vector<16x8xbf16> to vector<2x8x8xbf16>
    %31 = vector.extract_strided_slice %27 {offsets = [0, 0], sizes = [16, 8], strides = [1, 1]} : vector<16x32xbf16> to vector<16x8xbf16>
    %32 = vector.shape_cast %31 : vector<16x8xbf16> to vector<2x8x8xbf16>
    %33 = vector.extract_strided_slice %28 {offsets = [0, 0], sizes = [16, 8], strides = [1, 1]} : vector<16x32xbf16> to vector<16x8xbf16>
    %34 = vector.shape_cast %33 : vector<16x8xbf16> to vector<2x8x8xbf16>
    "tpu.trace_start"() <{level = 10 : i32, message = "bqd,bkd->bqk"}> : () -> ()
    %cst_18 = arith.constant dense<0.000000e+00> : vector<2x8x8xf32>
    %35 = tpu.matmul %30, %32, %cst_18 {dimension_numbers = #tpu.dot_dimension_numbers<[2], [2], [1], [1], [0, 0, 0, 1, 1, 1], [0], [0]>} : vector<2x8x8xbf16>, vector<2x8x8xbf16>, vector<2x8x8xf32> -> vector<2x8x8xf32>
    %cst_19 = arith.constant -1.000000e+10 : f32
    "tpu.trace_stop"() : () -> ()
    %36 = vector.broadcast %cst_19 : f32 to vector<2x8x8xf32>
    %37 = arith.select %9, %35, %36 : vector<2x8x8xi1>, vector<2x8x8xf32>
    %cst_20 = arith.constant dense<0xFF800000> : vector<2x8xf32>
    %38 = vector.multi_reduction <maximumf>, %37, %cst_20 [2] : vector<2x8x8xf32> to vector<2x8xf32>
    %39 = vector.shape_cast %38 : vector<2x8xf32> to vector<2x8x1xf32>
    %40 = vector.broadcast %39 : vector<2x8x1xf32> to vector<2x8x8xf32>
    %41 = arith.subf %37, %40 : vector<2x8x8xf32>
    %42 = math.exp %41 : vector<2x8x8xf32>
    %cst_21 = arith.constant dense<0.000000e+00> : vector<2x8xf32>
    %43 = vector.multi_reduction <add>, %42, %cst_21 [2] : vector<2x8x8xf32> to vector<2x8xf32>
    %44 = vector.shape_cast %43 : vector<2x8xf32> to vector<2x8x1xf32>
    %45 = vector.broadcast %44 : vector<2x8x1xf32> to vector<2x8x8xf32>
    %46 = arith.divf %42, %45 : vector<2x8x8xf32>
    %c0_22 = arith.constant 0 : index
    %c0_23 = arith.constant 0 : index
    %c0_24 = arith.constant 0 : index
    %47 = vector.load %arg26[%c0_22, %c0_23, %c0_24] : memref<2x8x32xf32, #tpu.memory_space<vmem>>, vector<2x8x8xf32>
    tpu.vector_store %arg26[%c0_22, %c0_23, %c0_24], %46 {strides = array<i32>} : memref<2x8x32xf32, #tpu.memory_space<vmem>>, vector<2x8x8xf32>,
    %48 = arith.truncf %46 : vector<2x8x8xf32> to vector<2x8x8xbf16>
    "tpu.trace_start"() <{level = 10 : i32, message = "bqk,bkd->bqd"}> : () -> ()
    %cst_25 = arith.constant dense<0.000000e+00> : vector<2x8x8xf32>
    %49 = tpu.matmul %48, %34, %cst_25 {dimension_numbers = #tpu.dot_dimension_numbers<[2], [1], [1], [2], [0, 0, 0, 1, 1, 2], [0], [0]>} : vector<2x8x8xbf16>, vector<2x8x8xbf16>, vector<2x8x8xf32> -> vector<2x8x8xf32>
    "tpu.trace_stop"() : () -> ()
    %50 = vector.shape_cast %49 : vector<2x8x8xf32> to vector<16x8xf32>
    %51 = arith.truncf %50 : vector<16x8xf32> to vector<16x8xbf16>
    %c0_26 = arith.constant 0 : index
    %c0_27 = arith.constant 0 : index
    %52 = vector.load %arg28[%c0_26, %c0_27] : memref<16x32xbf16, #tpu.memory_space<vmem>>, vector<16x8xbf16>
    tpu.vector_store %arg28[%c0_26, %c0_27], %51 {strides = array<i32>} : memref<16x32xbf16, #tpu.memory_space<vmem>>, vector<16x8xbf16>,
    %53 = vector.extract_strided_slice %26 {offsets = [0, 8], sizes = [16, 8], strides = [1, 1]} : vector<16x32xbf16> to vector<16x8xbf16>
    %54 = vector.shape_cast %53 : vector<16x8xbf16> to vector<2x8x8xbf16>
    %55 = vector.extract_strided_slice %27 {offsets = [0, 8], sizes = [16, 8], strides = [1, 1]} : vector<16x32xbf16> to vector<16x8xbf16>
    %56 = vector.shape_cast %55 : vector<16x8xbf16> to vector<2x8x8xbf16>
    %57 = vector.extract_strided_slice %28 {offsets = [0, 8], sizes = [16, 8], strides = [1, 1]} : vector<16x32xbf16> to vector<16x8xbf16>
    %58 = vector.shape_cast %57 : vector<16x8xbf16> to vector<2x8x8xbf16>
    "tpu.trace_start"() <{level = 10 : i32, message = "bqd,bkd->bqk"}> : () -> ()
    %cst_28 = arith.constant dense<0.000000e+00> : vector<2x8x8xf32>
    %59 = tpu.matmul %54, %56, %cst_28 {dimension_numbers = #tpu.dot_dimension_numbers<[2], [2], [1], [1], [0, 0, 0, 1, 1, 1], [0], [0]>} : vector<2x8x8xbf16>, vector<2x8x8xbf16>, vector<2x8x8xf32> -> vector<2x8x8xf32>
    %cst_29 = arith.constant -1.000000e+10 : f32
    "tpu.trace_stop"() : () -> ()
    %60 = vector.broadcast %cst_29 : f32 to vector<2x8x8xf32>
    %61 = arith.select %9, %59, %60 : vector<2x8x8xi1>, vector<2x8x8xf32>
    %cst_30 = arith.constant dense<0xFF800000> : vector<2x8xf32>
    %62 = vector.multi_reduction <maximumf>, %61, %cst_30 [2] : vector<2x8x8xf32> to vector<2x8xf32>
    %63 = vector.shape_cast %62 : vector<2x8xf32> to vector<2x8x1xf32>
    %64 = vector.broadcast %63 : vector<2x8x1xf32> to vector<2x8x8xf32>
    %65 = arith.subf %61, %64 : vector<2x8x8xf32>
    %66 = math.exp %65 : vector<2x8x8xf32>
    %cst_31 = arith.constant dense<0.000000e+00> : vector<2x8xf32>
    %67 = vector.multi_reduction <add>, %66, %cst_31 [2] : vector<2x8x8xf32> to vector<2x8xf32>
    %68 = vector.shape_cast %67 : vector<2x8xf32> to vector<2x8x1xf32>
    %69 = vector.broadcast %68 : vector<2x8x1xf32> to vector<2x8x8xf32>
    %70 = arith.divf %66, %69 : vector<2x8x8xf32>
    %c0_32 = arith.constant 0 : index
    %c0_33 = arith.constant 0 : index
    %c8 = arith.constant 8 : index
    %71 = vector.load %arg26[%c0_32, %c0_33, %c8] : memref<2x8x32xf32, #tpu.memory_space<vmem>>, vector<2x8x8xf32>
    tpu.vector_store %arg26[%c0_32, %c0_33, %c8], %70 {strides = array<i32>} : memref<2x8x32xf32, #tpu.memory_space<vmem>>, vector<2x8x8xf32>,
    %72 = arith.truncf %70 : vector<2x8x8xf32> to vector<2x8x8xbf16>
    "tpu.trace_start"() <{level = 10 : i32, message = "bqk,bkd->bqd"}> : () -> ()
    %cst_34 = arith.constant dense<0.000000e+00> : vector<2x8x8xf32>
    %73 = tpu.matmul %72, %58, %cst_34 {dimension_numbers = #tpu.dot_dimension_numbers<[2], [1], [1], [2], [0, 0, 0, 1, 1, 2], [0], [0]>} : vector<2x8x8xbf16>, vector<2x8x8xbf16>, vector<2x8x8xf32> -> vector<2x8x8xf32>
    "tpu.trace_stop"() : () -> ()
    %74 = vector.shape_cast %73 : vector<2x8x8xf32> to vector<16x8xf32>
    %75 = arith.truncf %74 : vector<16x8xf32> to vector<16x8xbf16>
    %c0_35 = arith.constant 0 : index
    %c8_36 = arith.constant 8 : index
    %76 = vector.load %arg28[%c0_35, %c8_36] : memref<16x32xbf16, #tpu.memory_space<vmem>>, vector<16x8xbf16>
    tpu.vector_store %arg28[%c0_35, %c8_36], %75 {strides = array<i32>} : memref<16x32xbf16, #tpu.memory_space<vmem>>, vector<16x8xbf16>,
    %77 = vector.extract_strided_slice %26 {offsets = [0, 16], sizes = [16, 8], strides = [1, 1]} : vector<16x32xbf16> to vector<16x8xbf16>
    %78 = vector.shape_cast %77 : vector<16x8xbf16> to vector<2x8x8xbf16>
    %79 = vector.extract_strided_slice %27 {offsets = [0, 16], sizes = [16, 8], strides = [1, 1]} : vector<16x32xbf16> to vector<16x8xbf16>
    %80 = vector.shape_cast %79 : vector<16x8xbf16> to vector<2x8x8xbf16>
    %81 = vector.extract_strided_slice %28 {offsets = [0, 16], sizes = [16, 8], strides = [1, 1]} : vector<16x32xbf16> to vector<16x8xbf16>
    %82 = vector.shape_cast %81 : vector<16x8xbf16> to vector<2x8x8xbf16>
    "tpu.trace_start"() <{level = 10 : i32, message = "bqd,bkd->bqk"}> : () -> ()
    %cst_37 = arith.constant dense<0.000000e+00> : vector<2x8x8xf32>
    %83 = tpu.matmul %78, %80, %cst_37 {dimension_numbers = #tpu.dot_dimension_numbers<[2], [2], [1], [1], [0, 0, 0, 1, 1, 1], [0], [0]>} : vector<2x8x8xbf16>, vector<2x8x8xbf16>, vector<2x8x8xf32> -> vector<2x8x8xf32>
    %cst_38 = arith.constant -1.000000e+10 : f32
    "tpu.trace_stop"() : () -> ()
    %84 = vector.broadcast %cst_38 : f32 to vector<2x8x8xf32>
    %85 = arith.select %9, %83, %84 : vector<2x8x8xi1>, vector<2x8x8xf32>
    %cst_39 = arith.constant dense<0xFF800000> : vector<2x8xf32>
    %86 = vector.multi_reduction <maximumf>, %85, %cst_39 [2] : vector<2x8x8xf32> to vector<2x8xf32>
    %87 = vector.shape_cast %86 : vector<2x8xf32> to vector<2x8x1xf32>
    %88 = vector.broadcast %87 : vector<2x8x1xf32> to vector<2x8x8xf32>
    %89 = arith.subf %85, %88 : vector<2x8x8xf32>
    %90 = math.exp %89 : vector<2x8x8xf32>
    %cst_40 = arith.constant dense<0.000000e+00> : vector<2x8xf32>
    %91 = vector.multi_reduction <add>, %90, %cst_40 [2] : vector<2x8x8xf32> to vector<2x8xf32>
    %92 = vector.shape_cast %91 : vector<2x8xf32> to vector<2x8x1xf32>
    %93 = vector.broadcast %92 : vector<2x8x1xf32> to vector<2x8x8xf32>
    %94 = arith.divf %90, %93 : vector<2x8x8xf32>
    %c0_41 = arith.constant 0 : index
    %c0_42 = arith.constant 0 : index
    %c16 = arith.constant 16 : index
    %95 = vector.load %arg26[%c0_41, %c0_42, %c16] : memref<2x8x32xf32, #tpu.memory_space<vmem>>, vector<2x8x8xf32>
    tpu.vector_store %arg26[%c0_41, %c0_42, %c16], %94 {strides = array<i32>} : memref<2x8x32xf32, #tpu.memory_space<vmem>>, vector<2x8x8xf32>,
    %96 = arith.truncf %94 : vector<2x8x8xf32> to vector<2x8x8xbf16>
    "tpu.trace_start"() <{level = 10 : i32, message = "bqk,bkd->bqd"}> : () -> ()
    %cst_43 = arith.constant dense<0.000000e+00> : vector<2x8x8xf32>
    %97 = tpu.matmul %96, %82, %cst_43 {dimension_numbers = #tpu.dot_dimension_numbers<[2], [1], [1], [2], [0, 0, 0, 1, 1, 2], [0], [0]>} : vector<2x8x8xbf16>, vector<2x8x8xbf16>, vector<2x8x8xf32> -> vector<2x8x8xf32>
    "tpu.trace_stop"() : () -> ()
    %98 = vector.shape_cast %97 : vector<2x8x8xf32> to vector<16x8xf32>
    %99 = arith.truncf %98 : vector<16x8xf32> to vector<16x8xbf16>
    %c0_44 = arith.constant 0 : index
    %c16_45 = arith.constant 16 : index
    %100 = vector.load %arg28[%c0_44, %c16_45] : memref<16x32xbf16, #tpu.memory_space<vmem>>, vector<16x8xbf16>
    tpu.vector_store %arg28[%c0_44, %c16_45], %99 {strides = array<i32>} : memref<16x32xbf16, #tpu.memory_space<vmem>>, vector<16x8xbf16>,
    %101 = vector.extract_strided_slice %26 {offsets = [0, 24], sizes = [16, 8], strides = [1, 1]} : vector<16x32xbf16> to vector<16x8xbf16>
    %102 = vector.shape_cast %101 : vector<16x8xbf16> to vector<2x8x8xbf16>
    %103 = vector.extract_strided_slice %27 {offsets = [0, 24], sizes = [16, 8], strides = [1, 1]} : vector<16x32xbf16> to vector<16x8xbf16>
    %104 = vector.shape_cast %103 : vector<16x8xbf16> to vector<2x8x8xbf16>
    %105 = vector.extract_strided_slice %28 {offsets = [0, 24], sizes = [16, 8], strides = [1, 1]} : vector<16x32xbf16> to vector<16x8xbf16>
    %106 = vector.shape_cast %105 : vector<16x8xbf16> to vector<2x8x8xbf16>
    "tpu.trace_start"() <{level = 10 : i32, message = "bqd,bkd->bqk"}> : () -> ()
    %cst_46 = arith.constant dense<0.000000e+00> : vector<2x8x8xf32>
    %107 = tpu.matmul %102, %104, %cst_46 {dimension_numbers = #tpu.dot_dimension_numbers<[2], [2], [1], [1], [0, 0, 0, 1, 1, 1], [0], [0]>} : vector<2x8x8xbf16>, vector<2x8x8xbf16>, vector<2x8x8xf32> -> vector<2x8x8xf32>
    %cst_47 = arith.constant -1.000000e+10 : f32
    "tpu.trace_stop"() : () -> ()
    %108 = vector.broadcast %cst_47 : f32 to vector<2x8x8xf32>
    %109 = arith.select %9, %107, %108 : vector<2x8x8xi1>, vector<2x8x8xf32>
    %cst_48 = arith.constant dense<0xFF800000> : vector<2x8xf32>
    %110 = vector.multi_reduction <maximumf>, %109, %cst_48 [2] : vector<2x8x8xf32> to vector<2x8xf32>
    %111 = vector.shape_cast %110 : vector<2x8xf32> to vector<2x8x1xf32>
    %112 = vector.broadcast %111 : vector<2x8x1xf32> to vector<2x8x8xf32>
    %113 = arith.subf %109, %112 : vector<2x8x8xf32>
    %114 = math.exp %113 : vector<2x8x8xf32>
    %cst_49 = arith.constant dense<0.000000e+00> : vector<2x8xf32>
    %115 = vector.multi_reduction <add>, %114, %cst_49 [2] : vector<2x8x8xf32> to vector<2x8xf32>
    %116 = vector.shape_cast %115 : vector<2x8xf32> to vector<2x8x1xf32>
    %117 = vector.broadcast %116 : vector<2x8x1xf32> to vector<2x8x8xf32>
    %118 = arith.divf %114, %117 : vector<2x8x8xf32>
    %c0_50 = arith.constant 0 : index
    %c0_51 = arith.constant 0 : index
    %c24 = arith.constant 24 : index
    %119 = vector.load %arg26[%c0_50, %c0_51, %c24] : memref<2x8x32xf32, #tpu.memory_space<vmem>>, vector<2x8x8xf32>
    tpu.vector_store %arg26[%c0_50, %c0_51, %c24], %118 {strides = array<i32>} : memref<2x8x32xf32, #tpu.memory_space<vmem>>, vector<2x8x8xf32>,
    %120 = arith.truncf %118 : vector<2x8x8xf32> to vector<2x8x8xbf16>
    "tpu.trace_start"() <{level = 10 : i32, message = "bqk,bkd->bqd"}> : () -> ()
    %cst_52 = arith.constant dense<0.000000e+00> : vector<2x8x8xf32>
    %121 = tpu.matmul %120, %106, %cst_52 {dimension_numbers = #tpu.dot_dimension_numbers<[2], [1], [1], [2], [0, 0, 0, 1, 1, 2], [0], [0]>} : vector<2x8x8xbf16>, vector<2x8x8xbf16>, vector<2x8x8xf32> -> vector<2x8x8xf32>
    "tpu.trace_stop"() : () -> ()
    %122 = vector.shape_cast %121 : vector<2x8x8xf32> to vector<16x8xf32>
    %123 = arith.truncf %122 : vector<16x8xf32> to vector<16x8xbf16>
    %c0_53 = arith.constant 0 : index
    %c24_54 = arith.constant 24 : index
    %124 = vector.load %arg28[%c0_53, %c24_54] : memref<16x32xbf16, #tpu.memory_space<vmem>>, vector<16x8xbf16>
    tpu.vector_store %arg28[%c0_53, %c24_54], %123 {strides = array<i32>} : memref<16x32xbf16, #tpu.memory_space<vmem>>, vector<16x8xbf16>,
    %c0_55 = arith.constant 0 : index
    %c0_56 = arith.constant 0 : index
    %125 = vector.load %arg28[%c0_55, %c0_56] : memref<16x32xbf16, #tpu.memory_space<vmem>>, vector<16x32xbf16>
    %c0_57 = arith.constant 0 : index
    %c0_58 = arith.constant 0 : index
    %126 = vector.load %arg7[%c0_57, %c0_58] : memref<32x32xbf16, #tpu.memory_space<vmem>>, vector<32x32xbf16>
    %cst_59 = arith.constant dense<0.000000e+00> : vector<16x32xf32>
    %127 = tpu.matmul %125, %126, %cst_59 {dimension_numbers = #tpu.dot_dimension_numbers<[1], [0], [0], [1], [0, 0, 1, 1], [], []>} : vector<16x32xbf16>, vector<32x32xbf16>, vector<16x32xf32> -> vector<16x32xf32>
    %c0_60 = arith.constant 0 : index
    %c0_61 = arith.constant 0 : index
    %128 = vector.load %arg8[%c0_60, %c0_61] : memref<1x32xf32, #tpu.memory_space<vmem>>, vector<1x32xf32>
    %129 = vector.broadcast %128 : vector<1x32xf32> to vector<16x32xf32>
    %130 = arith.addf %127, %129 : vector<16x32xf32>
    %131 = arith.addf %1, %130 : vector<16x32xf32>
    %c0_62 = arith.constant 0 : index
    %c0_63 = arith.constant 0 : index
    %132 = vector.load %arg19[%c0_62, %c0_63] : memref<1x32xf32, #tpu.memory_space<vmem>>, vector<1x32xf32>
    %c0_64 = arith.constant 0 : index
    %c0_65 = arith.constant 0 : index
    %133 = vector.load %arg20[%c0_64, %c0_65] : memref<1x32xf32, #tpu.memory_space<vmem>>, vector<1x32xf32>
    %cst_66 = arith.constant dense<0.000000e+00> : vector<16xf32>
    %134 = vector.multi_reduction <add>, %131, %cst_66 [1] : vector<16x32xf32> to vector<16xf32>
    %135 = vector.shape_cast %134 : vector<16xf32> to vector<16x1xf32>
    %cst_67 = arith.constant 3.200000e+01 : f32
    %136 = vector.broadcast %cst_67 : f32 to vector<16x1xf32>
    %137 = arith.divf %135, %136 : vector<16x1xf32>
    %138 = vector.broadcast %137 : vector<16x1xf32> to vector<16x32xf32>
    %139 = arith.subf %131, %138 : vector<16x32xf32>
    %140 = arith.mulf %139, %139 : vector<16x32xf32>
    %cst_68 = arith.constant dense<0.000000e+00> : vector<16xf32>
    %141 = vector.multi_reduction <add>, %140, %cst_68 [1] : vector<16x32xf32> to vector<16xf32>
    %142 = vector.shape_cast %141 : vector<16xf32> to vector<16x1xf32>
    %cst_69 = arith.constant 3.200000e+01 : f32
    %143 = vector.broadcast %cst_69 : f32 to vector<16x1xf32>
    %144 = arith.divf %142, %143 : vector<16x1xf32>
    %cst_70 = arith.constant 9.99999974E-6 : f32
    %145 = vector.broadcast %cst_70 : f32 to vector<16x1xf32>
    %146 = arith.addf %144, %145 : vector<16x1xf32>
    %147 = math.rsqrt %146 : vector<16x1xf32>
    %148 = vector.broadcast %147 : vector<16x1xf32> to vector<16x32xf32>
    %149 = arith.mulf %139, %148 : vector<16x32xf32>
    %150 = vector.broadcast %132 : vector<1x32xf32> to vector<16x32xf32>
    %151 = arith.mulf %149, %150 : vector<16x32xf32>
    %152 = vector.broadcast %133 : vector<1x32xf32> to vector<16x32xf32>
    %153 = arith.addf %151, %152 : vector<16x32xf32>
    %154 = arith.truncf %153 : vector<16x32xf32> to vector<16x32xbf16>
    %c0_71 = arith.constant 0 : index
    %c0_72 = arith.constant 0 : index
    %155 = vector.load %arg9[%c0_71, %c0_72] : memref<32x32xbf16, #tpu.memory_space<vmem>>, vector<32x32xbf16>
    %cst_73 = arith.constant dense<0.000000e+00> : vector<16x32xf32>
    %156 = tpu.matmul %154, %155, %cst_73 {dimension_numbers = #tpu.dot_dimension_numbers<[1], [0], [0], [1], [0, 0, 1, 1], [], []>} : vector<16x32xbf16>, vector<32x32xbf16>, vector<16x32xf32> -> vector<16x32xf32>
    %c0_74 = arith.constant 0 : index
    %c0_75 = arith.constant 0 : index
    %157 = vector.load %arg10[%c0_74, %c0_75] : memref<1x32xf32, #tpu.memory_space<vmem>>, vector<1x32xf32>
    %158 = vector.broadcast %157 : vector<1x32xf32> to vector<16x32xf32>
    %159 = arith.addf %156, %158 : vector<16x32xf32>
    %c0_76 = arith.constant 0 : index
    %c0_77 = arith.constant 0 : index
    %160 = vector.load %arg11[%c0_76, %c0_77] : memref<32x64xbf16, #tpu.memory_space<vmem>>, vector<32x64xbf16>
    %cst_78 = arith.constant dense<0.000000e+00> : vector<32x64xf32>
    %161 = tpu.matmul %5, %160, %cst_78 {dimension_numbers = #tpu.dot_dimension_numbers<[1], [0], [0], [1], [0, 0, 1, 1], [], []>} : vector<32x32xbf16>, vector<32x64xbf16>, vector<32x64xf32> -> vector<32x64xf32>
    %c0_79 = arith.constant 0 : index
    %c0_80 = arith.constant 0 : index
    %162 = vector.load %arg12[%c0_79, %c0_80] : memref<1x64xf32, #tpu.memory_space<vmem>>, vector<1x64xf32>
    %163 = vector.broadcast %162 : vector<1x64xf32> to vector<32x64xf32>
    %164 = arith.addf %161, %163 : vector<32x64xf32>
    %165 = vector.extract_strided_slice %164 {offsets = [0, 0], sizes = [32, 32], strides = [1, 1]} : vector<32x64xf32> to vector<32x32xf32>
    %166 = vector.extract_strided_slice %164 {offsets = [0, 32], sizes = [32, 32], strides = [1, 1]} : vector<32x64xf32> to vector<32x32xf32>
    %cst_81 = arith.constant 0.353553385 : f32
    %167 = vector.broadcast %cst_81 : f32 to vector<16x32xf32>
    %168 = arith.mulf %159, %167 : vector<16x32xf32>
    %169 = arith.truncf %168 : vector<16x32xf32> to vector<16x32xbf16>
    %170 = arith.truncf %165 : vector<32x32xf32> to vector<32x32xbf16>
    %171 = arith.truncf %166 : vector<32x32xf32> to vector<32x32xbf16>
    %172 = vector.extract_strided_slice %169 {offsets = [0, 0], sizes = [16, 8], strides = [1, 1]} : vector<16x32xbf16> to vector<16x8xbf16>
    %173 = vector.shape_cast %172 : vector<16x8xbf16> to vector<2x8x8xbf16>
    %174 = vector.extract_strided_slice %170 {offsets = [0, 0], sizes = [32, 8], strides = [1, 1]} : vector<32x32xbf16> to vector<32x8xbf16>
    %175 = vector.shape_cast %174 : vector<32x8xbf16> to vector<2x16x8xbf16>
    %176 = vector.extract_strided_slice %171 {offsets = [0, 0], sizes = [32, 8], strides = [1, 1]} : vector<32x32xbf16> to vector<32x8xbf16>
    %177 = vector.shape_cast %176 : vector<32x8xbf16> to vector<2x16x8xbf16>
    "tpu.trace_start"() <{level = 10 : i32, message = "bqd,bkd->bqk"}> : () -> ()
    %cst_82 = arith.constant dense<0.000000e+00> : vector<2x8x16xf32>
    %178 = tpu.matmul %173, %175, %cst_82 {dimension_numbers = #tpu.dot_dimension_numbers<[2], [2], [1], [1], [0, 0, 0, 1, 1, 1], [0], [0]>} : vector<2x8x8xbf16>, vector<2x16x8xbf16>, vector<2x8x16xf32> -> vector<2x8x16xf32>
    %cst_83 = arith.constant -1.000000e+10 : f32
    "tpu.trace_stop"() : () -> ()
    %179 = vector.broadcast %cst_83 : f32 to vector<2x8x16xf32>
    %180 = arith.select %15, %178, %179 : vector<2x8x16xi1>, vector<2x8x16xf32>
    %cst_84 = arith.constant dense<0xFF800000> : vector<2x8xf32>
    %181 = vector.multi_reduction <maximumf>, %180, %cst_84 [2] : vector<2x8x16xf32> to vector<2x8xf32>
    %182 = vector.shape_cast %181 : vector<2x8xf32> to vector<2x8x1xf32>
    %183 = vector.broadcast %182 : vector<2x8x1xf32> to vector<2x8x16xf32>
    %184 = arith.subf %180, %183 : vector<2x8x16xf32>
    %185 = math.exp %184 : vector<2x8x16xf32>
    %cst_85 = arith.constant dense<0.000000e+00> : vector<2x8xf32>
    %186 = vector.multi_reduction <add>, %185, %cst_85 [2] : vector<2x8x16xf32> to vector<2x8xf32>
    %187 = vector.shape_cast %186 : vector<2x8xf32> to vector<2x8x1xf32>
    %188 = vector.broadcast %187 : vector<2x8x1xf32> to vector<2x8x16xf32>
    %189 = arith.divf %185, %188 : vector<2x8x16xf32>
    %c0_86 = arith.constant 0 : index
    %c0_87 = arith.constant 0 : index
    %c0_88 = arith.constant 0 : index
    %190 = vector.load %arg27[%c0_86, %c0_87, %c0_88] : memref<2x8x64xf32, #tpu.memory_space<vmem>>, vector<2x8x16xf32>
    tpu.vector_store %arg27[%c0_86, %c0_87, %c0_88], %189 {strides = array<i32>} : memref<2x8x64xf32, #tpu.memory_space<vmem>>, vector<2x8x16xf32>,
    %191 = arith.truncf %189 : vector<2x8x16xf32> to vector<2x8x16xbf16>
    "tpu.trace_start"() <{level = 10 : i32, message = "bqk,bkd->bqd"}> : () -> ()
    %cst_89 = arith.constant dense<0.000000e+00> : vector<2x8x8xf32>
    %192 = tpu.matmul %191, %177, %cst_89 {dimension_numbers = #tpu.dot_dimension_numbers<[2], [1], [1], [2], [0, 0, 0, 1, 1, 2], [0], [0]>} : vector<2x8x16xbf16>, vector<2x16x8xbf16>, vector<2x8x8xf32> -> vector<2x8x8xf32>
    "tpu.trace_stop"() : () -> ()
    %193 = vector.shape_cast %192 : vector<2x8x8xf32> to vector<16x8xf32>
    %194 = arith.truncf %193 : vector<16x8xf32> to vector<16x8xbf16>
    %c0_90 = arith.constant 0 : index
    %c0_91 = arith.constant 0 : index
    %195 = vector.load %arg28[%c0_90, %c0_91] : memref<16x32xbf16, #tpu.memory_space<vmem>>, vector<16x8xbf16>
    tpu.vector_store %arg28[%c0_90, %c0_91], %194 {strides = array<i32>} : memref<16x32xbf16, #tpu.memory_space<vmem>>, vector<16x8xbf16>,
    %196 = vector.extract_strided_slice %169 {offsets = [0, 8], sizes = [16, 8], strides = [1, 1]} : vector<16x32xbf16> to vector<16x8xbf16>
    %197 = vector.shape_cast %196 : vector<16x8xbf16> to vector<2x8x8xbf16>
    %198 = vector.extract_strided_slice %170 {offsets = [0, 8], sizes = [32, 8], strides = [1, 1]} : vector<32x32xbf16> to vector<32x8xbf16>
    %199 = vector.shape_cast %198 : vector<32x8xbf16> to vector<2x16x8xbf16>
    %200 = vector.extract_strided_slice %171 {offsets = [0, 8], sizes = [32, 8], strides = [1, 1]} : vector<32x32xbf16> to vector<32x8xbf16>
    %201 = vector.shape_cast %200 : vector<32x8xbf16> to vector<2x16x8xbf16>
    "tpu.trace_start"() <{level = 10 : i32, message = "bqd,bkd->bqk"}> : () -> ()
    %cst_92 = arith.constant dense<0.000000e+00> : vector<2x8x16xf32>
    %202 = tpu.matmul %197, %199, %cst_92 {dimension_numbers = #tpu.dot_dimension_numbers<[2], [2], [1], [1], [0, 0, 0, 1, 1, 1], [0], [0]>} : vector<2x8x8xbf16>, vector<2x16x8xbf16>, vector<2x8x16xf32> -> vector<2x8x16xf32>
    %cst_93 = arith.constant -1.000000e+10 : f32
    "tpu.trace_stop"() : () -> ()
    %203 = vector.broadcast %cst_93 : f32 to vector<2x8x16xf32>
    %204 = arith.select %15, %202, %203 : vector<2x8x16xi1>, vector<2x8x16xf32>
    %cst_94 = arith.constant dense<0xFF800000> : vector<2x8xf32>
    %205 = vector.multi_reduction <maximumf>, %204, %cst_94 [2] : vector<2x8x16xf32> to vector<2x8xf32>
    %206 = vector.shape_cast %205 : vector<2x8xf32> to vector<2x8x1xf32>
    %207 = vector.broadcast %206 : vector<2x8x1xf32> to vector<2x8x16xf32>
    %208 = arith.subf %204, %207 : vector<2x8x16xf32>
    %209 = math.exp %208 : vector<2x8x16xf32>
    %cst_95 = arith.constant dense<0.000000e+00> : vector<2x8xf32>
    %210 = vector.multi_reduction <add>, %209, %cst_95 [2] : vector<2x8x16xf32> to vector<2x8xf32>
    %211 = vector.shape_cast %210 : vector<2x8xf32> to vector<2x8x1xf32>
    %212 = vector.broadcast %211 : vector<2x8x1xf32> to vector<2x8x16xf32>
    %213 = arith.divf %209, %212 : vector<2x8x16xf32>
    %c0_96 = arith.constant 0 : index
    %c0_97 = arith.constant 0 : index
    %c16_98 = arith.constant 16 : index
    %214 = vector.load %arg27[%c0_96, %c0_97, %c16_98] : memref<2x8x64xf32, #tpu.memory_space<vmem>>, vector<2x8x16xf32>
    tpu.vector_store %arg27[%c0_96, %c0_97, %c16_98], %213 {strides = array<i32>} : memref<2x8x64xf32, #tpu.memory_space<vmem>>, vector<2x8x16xf32>,
    %215 = arith.truncf %213 : vector<2x8x16xf32> to vector<2x8x16xbf16>
    "tpu.trace_start"() <{level = 10 : i32, message = "bqk,bkd->bqd"}> : () -> ()
    %cst_99 = arith.constant dense<0.000000e+00> : vector<2x8x8xf32>
    %216 = tpu.matmul %215, %201, %cst_99 {dimension_numbers = #tpu.dot_dimension_numbers<[2], [1], [1], [2], [0, 0, 0, 1, 1, 2], [0], [0]>} : vector<2x8x16xbf16>, vector<2x16x8xbf16>, vector<2x8x8xf32> -> vector<2x8x8xf32>
    "tpu.trace_stop"() : () -> ()
    %217 = vector.shape_cast %216 : vector<2x8x8xf32> to vector<16x8xf32>
    %218 = arith.truncf %217 : vector<16x8xf32> to vector<16x8xbf16>
    %c0_100 = arith.constant 0 : index
    %c8_101 = arith.constant 8 : index
    %219 = vector.load %arg28[%c0_100, %c8_101] : memref<16x32xbf16, #tpu.memory_space<vmem>>, vector<16x8xbf16>
    tpu.vector_store %arg28[%c0_100, %c8_101], %218 {strides = array<i32>} : memref<16x32xbf16, #tpu.memory_space<vmem>>, vector<16x8xbf16>,
    %220 = vector.extract_strided_slice %169 {offsets = [0, 16], sizes = [16, 8], strides = [1, 1]} : vector<16x32xbf16> to vector<16x8xbf16>
    %221 = vector.shape_cast %220 : vector<16x8xbf16> to vector<2x8x8xbf16>
    %222 = vector.extract_strided_slice %170 {offsets = [0, 16], sizes = [32, 8], strides = [1, 1]} : vector<32x32xbf16> to vector<32x8xbf16>
    %223 = vector.shape_cast %222 : vector<32x8xbf16> to vector<2x16x8xbf16>
    %224 = vector.extract_strided_slice %171 {offsets = [0, 16], sizes = [32, 8], strides = [1, 1]} : vector<32x32xbf16> to vector<32x8xbf16>
    %225 = vector.shape_cast %224 : vector<32x8xbf16> to vector<2x16x8xbf16>
    "tpu.trace_start"() <{level = 10 : i32, message = "bqd,bkd->bqk"}> : () -> ()
    %cst_102 = arith.constant dense<0.000000e+00> : vector<2x8x16xf32>
    %226 = tpu.matmul %221, %223, %cst_102 {dimension_numbers = #tpu.dot_dimension_numbers<[2], [2], [1], [1], [0, 0, 0, 1, 1, 1], [0], [0]>} : vector<2x8x8xbf16>, vector<2x16x8xbf16>, vector<2x8x16xf32> -> vector<2x8x16xf32>
    %cst_103 = arith.constant -1.000000e+10 : f32
    "tpu.trace_stop"() : () -> ()
    %227 = vector.broadcast %cst_103 : f32 to vector<2x8x16xf32>
    %228 = arith.select %15, %226, %227 : vector<2x8x16xi1>, vector<2x8x16xf32>
    %cst_104 = arith.constant dense<0xFF800000> : vector<2x8xf32>
    %229 = vector.multi_reduction <maximumf>, %228, %cst_104 [2] : vector<2x8x16xf32> to vector<2x8xf32>
    %230 = vector.shape_cast %229 : vector<2x8xf32> to vector<2x8x1xf32>
    %231 = vector.broadcast %230 : vector<2x8x1xf32> to vector<2x8x16xf32>
    %232 = arith.subf %228, %231 : vector<2x8x16xf32>
    %233 = math.exp %232 : vector<2x8x16xf32>
    %cst_105 = arith.constant dense<0.000000e+00> : vector<2x8xf32>
    %234 = vector.multi_reduction <add>, %233, %cst_105 [2] : vector<2x8x16xf32> to vector<2x8xf32>
    %235 = vector.shape_cast %234 : vector<2x8xf32> to vector<2x8x1xf32>
    %236 = vector.broadcast %235 : vector<2x8x1xf32> to vector<2x8x16xf32>
    %237 = arith.divf %233, %236 : vector<2x8x16xf32>
    %c0_106 = arith.constant 0 : index
    %c0_107 = arith.constant 0 : index
    %c32 = arith.constant 32 : index
    %238 = vector.load %arg27[%c0_106, %c0_107, %c32] : memref<2x8x64xf32, #tpu.memory_space<vmem>>, vector<2x8x16xf32>
    tpu.vector_store %arg27[%c0_106, %c0_107, %c32], %237 {strides = array<i32>} : memref<2x8x64xf32, #tpu.memory_space<vmem>>, vector<2x8x16xf32>,
    %239 = arith.truncf %237 : vector<2x8x16xf32> to vector<2x8x16xbf16>
    "tpu.trace_start"() <{level = 10 : i32, message = "bqk,bkd->bqd"}> : () -> ()
    %cst_108 = arith.constant dense<0.000000e+00> : vector<2x8x8xf32>
    %240 = tpu.matmul %239, %225, %cst_108 {dimension_numbers = #tpu.dot_dimension_numbers<[2], [1], [1], [2], [0, 0, 0, 1, 1, 2], [0], [0]>} : vector<2x8x16xbf16>, vector<2x16x8xbf16>, vector<2x8x8xf32> -> vector<2x8x8xf32>
    "tpu.trace_stop"() : () -> ()
    %241 = vector.shape_cast %240 : vector<2x8x8xf32> to vector<16x8xf32>
    %242 = arith.truncf %241 : vector<16x8xf32> to vector<16x8xbf16>
    %c0_109 = arith.constant 0 : index
    %c16_110 = arith.constant 16 : index
    %243 = vector.load %arg28[%c0_109, %c16_110] : memref<16x32xbf16, #tpu.memory_space<vmem>>, vector<16x8xbf16>
    tpu.vector_store %arg28[%c0_109, %c16_110], %242 {strides = array<i32>} : memref<16x32xbf16, #tpu.memory_space<vmem>>, vector<16x8xbf16>,
    %244 = vector.extract_strided_slice %169 {offsets = [0, 24], sizes = [16, 8], strides = [1, 1]} : vector<16x32xbf16> to vector<16x8xbf16>
    %245 = vector.shape_cast %244 : vector<16x8xbf16> to vector<2x8x8xbf16>
    %246 = vector.extract_strided_slice %170 {offsets = [0, 24], sizes = [32, 8], strides = [1, 1]} : vector<32x32xbf16> to vector<32x8xbf16>
    %247 = vector.shape_cast %246 : vector<32x8xbf16> to vector<2x16x8xbf16>
    %248 = vector.extract_strided_slice %171 {offsets = [0, 24], sizes = [32, 8], strides = [1, 1]} : vector<32x32xbf16> to vector<32x8xbf16>
    %249 = vector.shape_cast %248 : vector<32x8xbf16> to vector<2x16x8xbf16>
    "tpu.trace_start"() <{level = 10 : i32, message = "bqd,bkd->bqk"}> : () -> ()
    %cst_111 = arith.constant dense<0.000000e+00> : vector<2x8x16xf32>
    %250 = tpu.matmul %245, %247, %cst_111 {dimension_numbers = #tpu.dot_dimension_numbers<[2], [2], [1], [1], [0, 0, 0, 1, 1, 1], [0], [0]>} : vector<2x8x8xbf16>, vector<2x16x8xbf16>, vector<2x8x16xf32> -> vector<2x8x16xf32>
    %cst_112 = arith.constant -1.000000e+10 : f32
    "tpu.trace_stop"() : () -> ()
    %251 = vector.broadcast %cst_112 : f32 to vector<2x8x16xf32>
    %252 = arith.select %15, %250, %251 : vector<2x8x16xi1>, vector<2x8x16xf32>
    %cst_113 = arith.constant dense<0xFF800000> : vector<2x8xf32>
    %253 = vector.multi_reduction <maximumf>, %252, %cst_113 [2] : vector<2x8x16xf32> to vector<2x8xf32>
    %254 = vector.shape_cast %253 : vector<2x8xf32> to vector<2x8x1xf32>
    %255 = vector.broadcast %254 : vector<2x8x1xf32> to vector<2x8x16xf32>
    %256 = arith.subf %252, %255 : vector<2x8x16xf32>
    %257 = math.exp %256 : vector<2x8x16xf32>
    %cst_114 = arith.constant dense<0.000000e+00> : vector<2x8xf32>
    %258 = vector.multi_reduction <add>, %257, %cst_114 [2] : vector<2x8x16xf32> to vector<2x8xf32>
    %259 = vector.shape_cast %258 : vector<2x8xf32> to vector<2x8x1xf32>
    %260 = vector.broadcast %259 : vector<2x8x1xf32> to vector<2x8x16xf32>
    %261 = arith.divf %257, %260 : vector<2x8x16xf32>
    %c0_115 = arith.constant 0 : index
    %c0_116 = arith.constant 0 : index
    %c48 = arith.constant 48 : index
    %262 = vector.load %arg27[%c0_115, %c0_116, %c48] : memref<2x8x64xf32, #tpu.memory_space<vmem>>, vector<2x8x16xf32>
    tpu.vector_store %arg27[%c0_115, %c0_116, %c48], %261 {strides = array<i32>} : memref<2x8x64xf32, #tpu.memory_space<vmem>>, vector<2x8x16xf32>,
    %263 = arith.truncf %261 : vector<2x8x16xf32> to vector<2x8x16xbf16>
    "tpu.trace_start"() <{level = 10 : i32, message = "bqk,bkd->bqd"}> : () -> ()
    %cst_117 = arith.constant dense<0.000000e+00> : vector<2x8x8xf32>
    %264 = tpu.matmul %263, %249, %cst_117 {dimension_numbers = #tpu.dot_dimension_numbers<[2], [1], [1], [2], [0, 0, 0, 1, 1, 2], [0], [0]>} : vector<2x8x16xbf16>, vector<2x16x8xbf16>, vector<2x8x8xf32> -> vector<2x8x8xf32>
    "tpu.trace_stop"() : () -> ()
    %265 = vector.shape_cast %264 : vector<2x8x8xf32> to vector<16x8xf32>
    %266 = arith.truncf %265 : vector<16x8xf32> to vector<16x8xbf16>
    %c0_118 = arith.constant 0 : index
    %c24_119 = arith.constant 24 : index
    %267 = vector.load %arg28[%c0_118, %c24_119] : memref<16x32xbf16, #tpu.memory_space<vmem>>, vector<16x8xbf16>
    tpu.vector_store %arg28[%c0_118, %c24_119], %266 {strides = array<i32>} : memref<16x32xbf16, #tpu.memory_space<vmem>>, vector<16x8xbf16>,
    %c0_120 = arith.constant 0 : index
    %c0_121 = arith.constant 0 : index
    %268 = vector.load %arg28[%c0_120, %c0_121] : memref<16x32xbf16, #tpu.memory_space<vmem>>, vector<16x32xbf16>
    %c0_122 = arith.constant 0 : index
    %c0_123 = arith.constant 0 : index
    %269 = vector.load %arg13[%c0_122, %c0_123] : memref<32x32xbf16, #tpu.memory_space<vmem>>, vector<32x32xbf16>
    %cst_124 = arith.constant dense<0.000000e+00> : vector<16x32xf32>
    %270 = tpu.matmul %268, %269, %cst_124 {dimension_numbers = #tpu.dot_dimension_numbers<[1], [0], [0], [1], [0, 0, 1, 1], [], []>} : vector<16x32xbf16>, vector<32x32xbf16>, vector<16x32xf32> -> vector<16x32xf32>
    %c0_125 = arith.constant 0 : index
    %c0_126 = arith.constant 0 : index
    %271 = vector.load %arg14[%c0_125, %c0_126] : memref<1x32xf32, #tpu.memory_space<vmem>>, vector<1x32xf32>
    %272 = vector.broadcast %271 : vector<1x32xf32> to vector<16x32xf32>
    %273 = arith.addf %270, %272 : vector<16x32xf32>
    %274 = arith.addf %153, %273 : vector<16x32xf32>
    %c0_127 = arith.constant 0 : index
    %c0_128 = arith.constant 0 : index
    %275 = vector.load %arg21[%c0_127, %c0_128] : memref<1x32xf32, #tpu.memory_space<vmem>>, vector<1x32xf32>
    %c0_129 = arith.constant 0 : index
    %c0_130 = arith.constant 0 : index
    %276 = vector.load %arg22[%c0_129, %c0_130] : memref<1x32xf32, #tpu.memory_space<vmem>>, vector<1x32xf32>
    %cst_131 = arith.constant dense<0.000000e+00> : vector<16xf32>
    %277 = vector.multi_reduction <add>, %274, %cst_131 [1] : vector<16x32xf32> to vector<16xf32>
    %278 = vector.shape_cast %277 : vector<16xf32> to vector<16x1xf32>
    %cst_132 = arith.constant 3.200000e+01 : f32
    %279 = vector.broadcast %cst_132 : f32 to vector<16x1xf32>
    %280 = arith.divf %278, %279 : vector<16x1xf32>
    %281 = vector.broadcast %280 : vector<16x1xf32> to vector<16x32xf32>
    %282 = arith.subf %274, %281 : vector<16x32xf32>
    %283 = arith.mulf %282, %282 : vector<16x32xf32>
    %cst_133 = arith.constant dense<0.000000e+00> : vector<16xf32>
    %284 = vector.multi_reduction <add>, %283, %cst_133 [1] : vector<16x32xf32> to vector<16xf32>
    %285 = vector.shape_cast %284 : vector<16xf32> to vector<16x1xf32>
    %cst_134 = arith.constant 3.200000e+01 : f32
    %286 = vector.broadcast %cst_134 : f32 to vector<16x1xf32>
    %287 = arith.divf %285, %286 : vector<16x1xf32>
    %cst_135 = arith.constant 9.99999974E-6 : f32
    %288 = vector.broadcast %cst_135 : f32 to vector<16x1xf32>
    %289 = arith.addf %287, %288 : vector<16x1xf32>
    %290 = math.rsqrt %289 : vector<16x1xf32>
    %291 = vector.broadcast %290 : vector<16x1xf32> to vector<16x32xf32>
    %292 = arith.mulf %282, %291 : vector<16x32xf32>
    %293 = vector.broadcast %275 : vector<1x32xf32> to vector<16x32xf32>
    %294 = arith.mulf %292, %293 : vector<16x32xf32>
    %295 = vector.broadcast %276 : vector<1x32xf32> to vector<16x32xf32>
    %296 = arith.addf %294, %295 : vector<16x32xf32>
    %297 = arith.truncf %296 : vector<16x32xf32> to vector<16x32xbf16>
    %c0_136 = arith.constant 0 : index
    %c0_137 = arith.constant 0 : index
    %298 = vector.load %arg15[%c0_136, %c0_137] : memref<32x64xbf16, #tpu.memory_space<vmem>>, vector<32x64xbf16>
    %cst_138 = arith.constant dense<0.000000e+00> : vector<16x64xf32>
    %299 = tpu.matmul %297, %298, %cst_138 {dimension_numbers = #tpu.dot_dimension_numbers<[1], [0], [0], [1], [0, 0, 1, 1], [], []>} : vector<16x32xbf16>, vector<32x64xbf16>, vector<16x64xf32> -> vector<16x64xf32>
    %c0_139 = arith.constant 0 : index
    %c0_140 = arith.constant 0 : index
    %300 = vector.load %arg16[%c0_139, %c0_140] : memref<1x64xf32, #tpu.memory_space<vmem>>, vector<1x64xf32>
    %301 = vector.broadcast %300 : vector<1x64xf32> to vector<16x64xf32>
    %302 = arith.addf %299, %301 : vector<16x64xf32>
    %cst_141 = arith.constant 0.000000e+00 : f32
    %303 = vector.broadcast %cst_141 : f32 to vector<16x64xf32>
    %304 = arith.maximumf %302, %303 : vector<16x64xf32>
    %305 = arith.truncf %304 : vector<16x64xf32> to vector<16x64xbf16>
    %c0_142 = arith.constant 0 : index
    %c0_143 = arith.constant 0 : index
    %306 = vector.load %arg17[%c0_142, %c0_143] : memref<64x32xbf16, #tpu.memory_space<vmem>>, vector<64x32xbf16>
    %cst_144 = arith.constant dense<0.000000e+00> : vector<16x32xf32>
    %307 = tpu.matmul %305, %306, %cst_144 {dimension_numbers = #tpu.dot_dimension_numbers<[1], [0], [0], [1], [0, 0, 1, 1], [], []>} : vector<16x64xbf16>, vector<64x32xbf16>, vector<16x32xf32> -> vector<16x32xf32>
    %c0_145 = arith.constant 0 : index
    %c0_146 = arith.constant 0 : index
    %308 = vector.load %arg18[%c0_145, %c0_146] : memref<1x32xf32, #tpu.memory_space<vmem>>, vector<1x32xf32>
    %309 = vector.broadcast %308 : vector<1x32xf32> to vector<16x32xf32>
    %310 = arith.addf %307, %309 : vector<16x32xf32>
    %311 = arith.addf %296, %310 : vector<16x32xf32>
    %c0_147 = arith.constant 0 : index
    %c0_148 = arith.constant 0 : index
    %312 = vector.load %arg23[%c0_147, %c0_148] : memref<1x32xf32, #tpu.memory_space<vmem>>, vector<1x32xf32>
    %c0_149 = arith.constant 0 : index
    %c0_150 = arith.constant 0 : index
    %313 = vector.load %arg24[%c0_149, %c0_150] : memref<1x32xf32, #tpu.memory_space<vmem>>, vector<1x32xf32>
    %cst_151 = arith.constant dense<0.000000e+00> : vector<16xf32>
    %314 = vector.multi_reduction <add>, %311, %cst_151 [1] : vector<16x32xf32> to vector<16xf32>
    %315 = vector.shape_cast %314 : vector<16xf32> to vector<16x1xf32>
    %cst_152 = arith.constant 3.200000e+01 : f32
    %316 = vector.broadcast %cst_152 : f32 to vector<16x1xf32>
    %317 = arith.divf %315, %316 : vector<16x1xf32>
    %318 = vector.broadcast %317 : vector<16x1xf32> to vector<16x32xf32>
    %319 = arith.subf %311, %318 : vector<16x32xf32>
    %320 = arith.mulf %319, %319 : vector<16x32xf32>
    %cst_153 = arith.constant dense<0.000000e+00> : vector<16xf32>
    %321 = vector.multi_reduction <add>, %320, %cst_153 [1] : vector<16x32xf32> to vector<16xf32>
    %322 = vector.shape_cast %321 : vector<16xf32> to vector<16x1xf32>
    %cst_154 = arith.constant 3.200000e+01 : f32
    %323 = vector.broadcast %cst_154 : f32 to vector<16x1xf32>
    %324 = arith.divf %322, %323 : vector<16x1xf32>
    %cst_155 = arith.constant 9.99999974E-6 : f32
    %325 = vector.broadcast %cst_155 : f32 to vector<16x1xf32>
    %326 = arith.addf %324, %325 : vector<16x1xf32>
    %327 = math.rsqrt %326 : vector<16x1xf32>
    %328 = vector.broadcast %327 : vector<16x1xf32> to vector<16x32xf32>
    %329 = arith.mulf %319, %328 : vector<16x32xf32>
    %330 = vector.broadcast %312 : vector<1x32xf32> to vector<16x32xf32>
    %331 = arith.mulf %329, %330 : vector<16x32xf32>
    %332 = vector.broadcast %313 : vector<1x32xf32> to vector<16x32xf32>
    %333 = arith.addf %331, %332 : vector<16x32xf32>
    %334 = vector.shape_cast %333 : vector<16x32xf32> to vector<2x8x32xf32>
    %c0_156 = arith.constant 0 : index
    %c0_157 = arith.constant 0 : index
    %c0_158 = arith.constant 0 : index
    %335 = vector.load %arg25[%c0_156, %c0_157, %c0_158] : memref<2x8x32xf32, #tpu.memory_space<vmem>>, vector<2x8x32xf32>
    tpu.vector_store %arg25[%c0_156, %c0_157, %c0_158], %334 {strides = array<i32>} : memref<2x8x32xf32, #tpu.memory_space<vmem>>, vector<2x8x32xf32>,
    return
  }
  func.func @transform_0(%arg0: i32) -> (i32, i32, i32) {
    %c0_i32 = arith.constant 0 : i32
    %c0_i32_0 = arith.constant 0 : i32
    %c0_i32_1 = arith.constant 0 : i32
    return %arg0, %c0_i32, %c0_i32_0 : i32, i32, i32
  }
  func.func @transform_1(%arg0: i32) -> (i32, i32, i32) {
    %c0_i32 = arith.constant 0 : i32
    %c0_i32_0 = arith.constant 0 : i32
    %c0_i32_1 = arith.constant 0 : i32
    return %arg0, %c0_i32, %c0_i32_0 : i32, i32, i32
  }
  func.func @transform_2(%arg0: i32) -> (i32, i32, i32) {
    %c0_i32 = arith.constant 0 : i32
    %c0_i32_0 = arith.constant 0 : i32
    %c0_i32_1 = arith.constant 0 : i32
    return %arg0, %c0_i32, %c0_i32_0 : i32, i32, i32
  }
  func.func @transform_3(%arg0: i32) -> (i32, i32, i32) {
    %c0_i32 = arith.constant 0 : i32
    %c0_i32_0 = arith.constant 0 : i32
    %c0_i32_1 = arith.constant 0 : i32
    return %arg0, %c0_i32, %c0_i32_0 : i32, i32, i32
  }
  func.func @transform_4(%arg0: i32) -> (i32, i32) {
    %c0_i32 = arith.constant 0 : i32
    %c0_i32_0 = arith.constant 0 : i32
    %c0_i32_1 = arith.constant 0 : i32
    return %c0_i32, %c0_i32_0 : i32, i32
  }
  func.func @transform_5(%arg0: i32) -> (i32, i32) {
    %c0_i32 = arith.constant 0 : i32
    %c0_i32_0 = arith.constant 0 : i32
    %c0_i32_1 = arith.constant 0 : i32
    return %c0_i32, %c0_i32_0 : i32, i32
  }
  func.func @transform_6(%arg0: i32) -> (i32, i32) {
    %c0_i32 = arith.constant 0 : i32
    %c0_i32_0 = arith.constant 0 : i32
    %c0_i32_1 = arith.constant 0 : i32
    return %c0_i32, %c0_i32_0 : i32, i32
  }
  func.func @transform_7(%arg0: i32) -> (i32, i32) {
    %c0_i32 = arith.constant 0 : i32
    %c0_i32_0 = arith.constant 0 : i32
    %c0_i32_1 = arith.constant 0 : i32
    return %c0_i32, %c0_i32_0 : i32, i32
  }
  func.func @transform_8(%arg0: i32) -> (i32, i32) {
    %c0_i32 = arith.constant 0 : i32
    %c0_i32_0 = arith.constant 0 : i32
    %c0_i32_1 = arith.constant 0 : i32
    return %c0_i32, %c0_i32_0 : i32, i32
  }
  func.func @transform_9(%arg0: i32) -> (i32, i32) {
    %c0_i32 = arith.constant 0 : i32
    %c0_i32_0 = arith.constant 0 : i32
    %c0_i32_1 = arith.constant 0 : i32
    return %c0_i32, %c0_i32_0 : i32, i32
  }
  func.func @transform_10(%arg0: i32) -> (i32, i32) {
    %c0_i32 = arith.constant 0 : i32
    %c0_i32_0 = arith.constant 0 : i32
    %c0_i32_1 = arith.constant 0 : i32
    return %c0_i32, %c0_i32_0 : i32, i32
  }
  func.func @transform_11(%arg0: i32) -> (i32, i32) {
    %c0_i32 = arith.constant 0 : i32
    %c0_i32_0 = arith.constant 0 : i32
    %c0_i32_1 = arith.constant 0 : i32
    return %c0_i32, %c0_i32_0 : i32, i32
  }
  func.func @transform_12(%arg0: i32) -> (i32, i32) {
    %c0_i32 = arith.constant 0 : i32
    %c0_i32_0 = arith.constant 0 : i32
    %c0_i32_1 = arith.constant 0 : i32
    return %c0_i32, %c0_i32_0 : i32, i32
  }
  func.func @transform_13(%arg0: i32) -> (i32, i32) {
    %c0_i32 = arith.constant 0 : i32
    %c0_i32_0 = arith.constant 0 : i32
    %c0_i32_1 = arith.constant 0 : i32
    return %c0_i32, %c0_i32_0 : i32, i32
  }
  func.func @transform_14(%arg0: i32) -> (i32, i32) {
    %c0_i32 = arith.constant 0 : i32
    %c0_i32_0 = arith.constant 0 : i32
    %c0_i32_1 = arith.constant 0 : i32
    return %c0_i32, %c0_i32_0 : i32, i32
  }
  func.func @transform_15(%arg0: i32) -> (i32, i32) {
    %c0_i32 = arith.constant 0 : i32
    %c0_i32_0 = arith.constant 0 : i32
    %c0_i32_1 = arith.constant 0 : i32
    return %c0_i32, %c0_i32_0 : i32, i32
  }
  func.func @transform_16(%arg0: i32) -> (i32, i32) {
    %c0_i32 = arith.constant 0 : i32
    %c0_i32_0 = arith.constant 0 : i32
    %c0_i32_1 = arith.constant 0 : i32
    return %c0_i32, %c0_i32_0 : i32, i32
  }
  func.func @transform_17(%arg0: i32) -> (i32, i32) {
    %c0_i32 = arith.constant 0 : i32
    %c0_i32_0 = arith.constant 0 : i32
    %c0_i32_1 = arith.constant 0 : i32
    return %c0_i32, %c0_i32_0 : i32, i32
  }
  func.func @transform_18(%arg0: i32) -> (i32, i32) {
    %c0_i32 = arith.constant 0 : i32
    %c0_i32_0 = arith.constant 0 : i32
    %c0_i32_1 = arith.constant 0 : i32
    return %c0_i32, %c0_i32_0 : i32, i32
  }
  func.func @transform_19(%arg0: i32) -> (i32, i32) {
    %c0_i32 = arith.constant 0 : i32
    %c0_i32_0 = arith.constant 0 : i32
    %c0_i32_1 = arith.constant 0 : i32
    return %c0_i32, %c0_i32_0 : i32, i32
  }
  func.func @transform_20(%arg0: i32) -> (i32, i32) {
    %c0_i32 = arith.constant 0 : i32
    %c0_i32_0 = arith.constant 0 : i32
    %c0_i32_1 = arith.constant 0 : i32
    return %c0_i32, %c0_i32_0 : i32, i32
  }
  func.func @transform_21(%arg0: i32) -> (i32, i32) {
    %c0_i32 = arith.constant 0 : i32
    %c0_i32_0 = arith.constant 0 : i32
    %c0_i32_1 = arith.constant 0 : i32
    return %c0_i32, %c0_i32_0 : i32, i32
  }
  func.func @transform_22(%arg0: i32) -> (i32, i32) {
    %c0_i32 = arith.constant 0 : i32
    %c0_i32_0 = arith.constant 0 : i32
    %c0_i32_1 = arith.constant 0 : i32
    return %c0_i32, %c0_i32_0 : i32, i32
  }
  func.func @transform_23(%arg0: i32) -> (i32, i32) {
    %c0_i32 = arith.constant 0 : i32
    %c0_i32_0 = arith.constant 0 : i32
    %c0_i32_1 = arith.constant 0 : i32
    return %c0_i32, %c0_i32_0 : i32, i32
  }
  func.func @transform_24(%arg0: i32) -> (i32, i32, i32) {
    %c0_i32 = arith.constant 0 : i32
    %c0_i32_0 = arith.constant 0 : i32
    %c0_i32_1 = arith.constant 0 : i32
    return %arg0, %c0_i32, %c0_i32_0 : i32, i32, i32
  }
  func.func @transform_25(%arg0: i32) -> (i32, i32, i32) {
    %c0_i32 = arith.constant 0 : i32
    %c0_i32_0 = arith.constant 0 : i32
    %c0_i32_1 = arith.constant 0 : i32
    return %arg0, %c0_i32, %c0_i32_0 : i32, i32, i32
  }
  func.func @transform_26(%arg0: i32) -> (i32, i32, i32) {
    %c0_i32 = arith.constant 0 : i32
    %c0_i32_0 = arith.constant 0 : i32
    %c0_i32_1 = arith.constant 0 : i32
    return %arg0, %c0_i32, %c0_i32_0 : i32, i32, i32
  }
}

</mosaic_0001>

<bundles_post_ra>
// kernel: tpu_custom_call.1
= control target key start
LH: loop header
LB: loop body
LE: loop exit
PB: predicated region body
PF: predicated region fallthrough
CT: control target
= control target key end

     0   :  { %s4537_s0 = inlined_call_operand.vmem [shape: f32[2,8,32], index: 0, kind: input, shape index: {}]   ;;  %s4538_s1 = inlined_call_operand.vmem [shape: f32[2,16,32], index: 1, kind: input, shape index: {}]   ;;  %s4539_s2 = inlined_call_operand.hbm [shape: s8[2,8,8], index: 2, kind: input, shape index: {}]   ;;  %s4540_s3 = inlined_call_operand.vmem [shape: s8[2,1,16], index: 3, kind: input, shape index: {}]   ;;  %s4541_s4 = inlined_call_operand.hbm [shape: bf16[32,96], index: 4, kind: input, shape index: {}]   ;;  %s4542_s5 = inlined_call_operand.vmem [shape: f32[1,96], index: 5, kind: input, shape index: {}]   ;;  %s4543_s6 = inlined_call_operand.hbm [shape: bf16[32,32], index: 6, kind: input, shape index: {}]   ;;  %s4544_s7 = inlined_call_operand.hbm [shape: f32[1,32], index: 7, kind: input, shape index: {}]   ;;  %s4545_s8 = inlined_call_operand.vmem [shape: bf16[32,32], index: 8, kind: input, shape index: {}]   ;;  %s4546_s9 = inlined_call_operand.hbm [shape: f32[1,32], index: 9, kind: input, shape index: {}]   ;;  %s4547_s10 = inlined_call_operand.hbm [shape: bf16[32,64], index: 10, kind: input, shape index: {}]   ;;  %s4548_s11 = inlined_call_operand.hbm [shape: f32[1,64], index: 11, kind: input, shape index: {}]   ;;  %s4549_s12 = inlined_call_operand.vmem [shape: bf16[32,32], index: 12, kind: input, shape index: {}]   ;;  %s4550_s13 = inlined_call_operand.vmem [shape: f32[1,32], index: 13, kind: input, shape index: {}]   ;;  %s4551_s14 = inlined_call_operand.hbm [shape: bf16[32,64], index: 14, kind: input, shape index: {}]   ;;  %s4552_s15 = inlined_call_operand.vmem [shape: f32[1,64], index: 15, kind: input, shape index: {}]   ;;  %s4553_s16 = inlined_call_operand.vmem [shape: bf16[64,32], index: 16, kind: input, shape index: {}]   ;;  %s4554_s17 = inlined_call_operand.vmem [shape: f32[1,32], index: 17, kind: input, shape index: {}]   ;;  %s4555_s18 = inlined_call_operand.vmem [shape: f32[1,32], index: 18, kind: input, shape index: {}]   ;;  %s4556_s19 = inlined_call_operand.vmem [shape: f32[1,32], index: 19, kind: input, shape index: {}]   ;;  %s4557_s20 = inlined_call_operand.vmem [shape: f32[1,32], index: 20, kind: input, shape index: {}]   ;;  %s4558_s21 = inlined_call_operand.vmem [shape: f32[1,32], index: 21, kind: input, shape index: {}]   ;;  %s4559_s22 = inlined_call_operand.vmem [shape: f32[1,32], index: 22, kind: input, shape index: {}]   ;;  %s4560_s23 = inlined_call_operand.vmem [shape: f32[1,32], index: 23, kind: input, shape index: {}]   ;;  %s4561_s24 = inlined_call_operand.hbm [shape: f32[2,8,32], index: 24, kind: output, shape index: {0}]   ;;  %s4562_s25 = inlined_call_operand.hbm [shape: f32[2,8,32], index: 25, kind: output, shape index: {1}]   ;;  %s4563_s26 = inlined_call_operand.hbm [shape: f32[2,8,64], index: 26, kind: output, shape index: {2}]  }
   0x1   :  { %4581 = sst [smem:[#allocation28_spill]] %s4537_s0 }
   0x2   :  { %4582 = sst [smem:[#allocation29_spill]] %s4538_s1 }
   0x3   :  { %4583 = sst [smem:[#allocation30_spill]] %s4539_s2 }
   0x4   :  { %4584 = sst [smem:[#allocation31_spill]] %s4540_s3 }
   0x5   :  { %4585 = sst [smem:[#allocation32_spill]] %s4541_s4 }
   0x6   :  { %4586 = sst [smem:[#allocation33_spill]] %s4542_s5 }
   0x7   :  { %4587 = sst [smem:[#allocation34_spill]] %s4543_s6 }
   0x8   :  { %4588 = sst [smem:[#allocation35_spill]] %s4544_s7 }
   0x9   :  { %4589 = sst [smem:[#allocation36_spill]] %s4545_s8 }
   0xa   :  { %4590 = sst [smem:[#allocation37_spill]] %s4546_s9 }
   0xb   :  { %4591 = sst [smem:[#allocation38_spill]] %s4547_s10 }
   0xc   :  { %4592 = sst [smem:[#allocation39_spill]] %s4559_s22 }
   0xd   :  { %4593 = sst [smem:[#allocation40_spill]] %s4560_s23 }
   0xe   :  { %4594 = sst [smem:[#allocation41_spill]] %s4561_s24 }
   0xf   :  { %32 = vsyncpa [#allocation4], 0 }
  0x10   :  { %33 = vsyncpa [#allocation7], 0 }
  0x11   :  { %34 = vsyncpa [#allocation10], 0 }
  0x12   :  { %35 = vsyncpa [#allocation13], 0 }
  0x13   :  { %36 = vsyncpa [#allocation16], 0 }
  0x14   :  { %37 = vsyncpa [#allocation5], 0 }
  0x15   :  { %38 = vsyncpa [#allocation19], 0  ;;  %s3613_s27 = smov [#allocation6]   ;;  %s4595_s8 = sld [smem:[#allocation32_spill]] }
  0x16   :  { %s62_s3 = sshll.u32 %s3613_s27, 4  ;;  %s63_s3 = int_to_ptr.vmem [resolvable:$true] %s62_s3 }
  0x1b   :  { %s3357_s4 = scalar_lea.hbm %s4595_s8, 256 }
  0x1c   :  { %p3358_p0 = scmp.ne.s32.totalorder %s4595_s8, %s3357_s4  ;;  %p3361_p1 = scmp.lt.u32.totalorder %s3357_s4, %s4595_s8 }
  0x1e   :  { %p3363_p2 = pnand %p3361_p1, %p3358_p0 }
  0x20   :  { %3366 = shalt.err (!%p3363_p2)
}
  0x21   :  { %s3367_s2 = scalar_lea.vmem %s63_s3, 256  ;;  %p3372_p4 = scmp.lt.s32.totalorder %s63_s3, %s63_s3 }
  0x22   :  { %p3368_p3 = scmp.ne.s32.totalorder %s63_s3, %s3367_s2  ;;  %p3373_p5 = scmp.lt.s32.totalorder %s3367_s2, %s3367_s2 }
  0x24   :  { %p3374_p6 = por %p3373_p5, %p3372_p4 }
  0x26   :  { %p3375_p7 = pnand %p3374_p6, %p3368_p3 }
  0x28   :  { %3378 = shalt.err (!%p3375_p7)
}
  0x29   :  { %s4575_s5 = smov 64   ;;  %s4577_s10 = smov 4  }
  0x2a   :  { %68 = dma.hbm_to_vmem [thread:$0]  %s4595_s8, 256, %s63_s3, [#allocation7], %s4575_s5, %s4575_s5, %s4577_s10  }
  0x2b   :  { %s3616_s27 = smov [#allocation9]   ;;  %s3617_s28 = smov [#allocation12]  }
  0x2c   :  { %s89_s7 = sshll.u32 %s3616_s27, 4  ;;  %s110_s4 = sshll.u32 %s3617_s28, 4  ;;  %s90_s7 = int_to_ptr.vmem [resolvable:$true] %s89_s7  ;;  %s111_s4 = int_to_ptr.vmem [resolvable:$true] %s110_s4 }
  0x2d   :  { %s4596_s9 = sld [smem:[#allocation35_spill]] }
  0x33   :  { %s3379_s30 = scalar_lea.hbm %s4596_s9, 16 }
  0x34   :  { %p3380_p8 = scmp.ne.s32.totalorder %s4596_s9, %s3379_s30  ;;  %p3383_p9 = scmp.lt.u32.totalorder %s3379_s30, %s4596_s9 }
  0x36   :  { %p3385_p10 = pnand %p3383_p9, %p3380_p8 }
  0x38   :  { %3388 = shalt.err (!%p3385_p10)
}
  0x39   :  { %s3389_s3 = scalar_lea.vmem %s90_s7, 16  ;;  %s3393_s8 = scalar_lea.vmem %s90_s7, 32 }
  0x3a   :  { %p3390_p11 = scmp.ne.s32.totalorder %s90_s7, %s3389_s3  ;;  %p3394_p12 = scmp.lt.s32.totalorder %s90_s7, %s90_s7 }
  0x3b   :  { %p3395_p13 = scmp.lt.s32.totalorder %s3393_s8, %s3389_s3 }
  0x3d   :  { %p3396_p0 = por %p3395_p13, %p3394_p12 }
  0x3f   :  { %p3397_p1 = pnand %p3396_p0, %p3390_p11 }
  0x41   :  { %3400 = shalt.err (!%p3397_p1)
}
  0x42   :  { %92 = dma.hbm_to_vmem [thread:$0]  %s4596_s9, 16, %s90_s7, [#allocation10]  }
  0x43   :  { %s4597_s28 = sld [smem:[#allocation38_spill]] }
  0x49   :  { %s3401_s22 = scalar_lea.hbm %s4597_s28, 256 }
  0x4a   :  { %p3402_p2 = scmp.ne.s32.totalorder %s4597_s28, %s3401_s22  ;;  %p3405_p3 = scmp.lt.u32.totalorder %s3401_s22, %s4597_s28 }
  0x4c   :  { %p3407_p4 = pnand %p3405_p3, %p3402_p2 }
  0x4e   :  { %3410 = shalt.err (!%p3407_p4)
}
  0x4f   :  { %s3411_s2 = scalar_lea.vmem %s111_s4, 256  ;;  %p3416_p6 = scmp.lt.s32.totalorder %s111_s4, %s111_s4 }
  0x50   :  { %p3412_p5 = scmp.ne.s32.totalorder %s111_s4, %s3411_s2  ;;  %p3417_p7 = scmp.lt.s32.totalorder %s3411_s2, %s3411_s2 }
  0x52   :  { %p3418_p8 = por %p3417_p7, %p3416_p6 }
  0x54   :  { %p3419_p9 = pnand %p3418_p8, %p3412_p5 }
  0x56   :  { %3422 = shalt.err (!%p3419_p9)
}
  0x57   :  { %116 = dma.hbm_to_vmem [thread:$0]  %s4597_s28, 256, %s111_s4, [#allocation13], %s4575_s5, %s4575_s5, %s4577_s10  }
  0x58   :  { %s3618_s3 = smov [#allocation3]   ;;  %s4598_s24 = sld [smem:[#allocation30_spill]] }
  0x59   :  { %s48_s8 = sshll.u32 %s3618_s3, 4  ;;  %s49_s8 = int_to_ptr.vmem [resolvable:$true] %s48_s8 }
  0x5e   :  { %s3423_s27 = scalar_lea.hbm %s4598_s24, 64 }
  0x5f   :  { %p3424_p10 = scmp.ne.s32.totalorder %s4598_s24, %s3423_s27  ;;  %p3427_p11 = scmp.lt.u32.totalorder %s3423_s27, %s4598_s24 }
  0x61   :  { %p3429_p12 = pnand %p3427_p11, %p3424_p10 }
  0x63   :  { %3432 = shalt.err (!%p3429_p12)
}
  0x64   :  { %s3433_s30 = scalar_lea.vmem %s49_s8, 64  ;;  %p3438_p0 = scmp.lt.s32.totalorder %s49_s8, %s49_s8 }
  0x65   :  { %p3434_p13 = scmp.ne.s32.totalorder %s49_s8, %s3433_s30  ;;  %p3439_p1 = scmp.lt.s32.totalorder %s3433_s30, %s3433_s30 }
  0x67   :  { %p3440_p2 = por %p3439_p1, %p3438_p0 }
  0x69   :  { %p3441_p3 = pnand %p3440_p2, %p3434_p13 }
  0x6b   :  { %3444 = shalt.err (!%p3441_p3)
}
  0x6c   :  { %s3619_s4 = smov 32   ;;  %s3620_s28 = smov 2  }
  0x6d   :  { %54 = dma.hbm_to_vmem [thread:$0]  %s4598_s24, 64, %s49_s8, [#allocation4], %s3619_s4, %s3619_s4, %s3620_s28  }
  0x6e   :  { %s3621_s9 = smov [#allocation8]   ;;  %s3622_s6 = smov [#allocation11]  }
  0x6f   :  { %s76_s3 = sshll.u32 %s3621_s9, 4  ;;  %s101_s1 = sshll.u32 %s3622_s6, 4  ;;  %s77_s3 = int_to_ptr.vmem [resolvable:$true] %s76_s3  ;;  %s102_s1 = int_to_ptr.vmem [resolvable:$true] %s101_s1 }
  0x70   :  { %s4599_s23 = sld [smem:[#allocation34_spill]] }
  0x76   :  { %s3445_s29 = scalar_lea.hbm %s4599_s23, 256 }
  0x77   :  { %p3446_p4 = scmp.ne.s32.totalorder %s4599_s23, %s3445_s29  ;;  %p3449_p5 = scmp.lt.u32.totalorder %s3445_s29, %s4599_s23 }
  0x79   :  { %p3451_p6 = pnand %p3449_p5, %p3446_p4 }
  0x7b   :  { %3454 = shalt.err (!%p3451_p6)
}
  0x7c   :  { %s3455_s8 = scalar_lea.vmem %s77_s3, 256  ;;  %p3460_p8 = scmp.lt.s32.totalorder %s77_s3, %s77_s3 }
  0x7d   :  { %p3456_p7 = scmp.ne.s32.totalorder %s77_s3, %s3455_s8  ;;  %p3461_p9 = scmp.lt.s32.totalorder %s3455_s8, %s3455_s8 }
  0x7f   :  { %p3462_p10 = por %p3461_p9, %p3460_p8 }
  0x81   :  { %p3463_p11 = pnand %p3462_p10, %p3456_p7 }
  0x83   :  { %3466 = shalt.err (!%p3463_p11)
}
  0x84   :  { %s4600_s24 = smov 4   ;;  %s4601_s28 = smov 64  }
  0x85   :  { %82 = dma.hbm_to_vmem [thread:$0]  %s4599_s23, 256, %s77_s3, [#allocation7], %s4601_s28, %s4601_s28, %s4600_s24  }
  0x86   :  { %s4602_s5 = sld [smem:[#allocation37_spill]] }
  0x8c   :  { %s3467_s10 = scalar_lea.hbm %s4602_s5, 16 }
  0x8d   :  { %p3468_p12 = scmp.ne.s32.totalorder %s4602_s5, %s3467_s10  ;;  %p3471_p13 = scmp.lt.u32.totalorder %s3467_s10, %s4602_s5 }
  0x8f   :  { %p3473_p0 = pnand %p3471_p13, %p3468_p12 }
  0x91   :  { %3476 = shalt.err (!%p3473_p0)
}
  0x92   :  { %s3477_s30 = scalar_lea.vmem %s102_s1, 16  ;;  %s3481_s8 = scalar_lea.vmem %s102_s1, 32 }
  0x93   :  { %p3478_p1 = scmp.ne.s32.totalorder %s102_s1, %s3477_s30  ;;  %p3482_p2 = scmp.lt.s32.totalorder %s102_s1, %s102_s1 }
  0x94   :  { %p3483_p3 = scmp.lt.s32.totalorder %s3481_s8, %s3477_s30 }
  0x96   :  { %p3484_p4 = por %p3483_p3, %p3482_p2 }
  0x98   :  { %p3485_p5 = pnand %p3484_p4, %p3478_p1 }
  0x9a   :  { %3488 = shalt.err (!%p3485_p5)
}
  0x9b   :  { %104 = dma.hbm_to_vmem [thread:$0]  %s4602_s5, 16, %s102_s1, [#allocation10]  }
  0x9c   :  { %s3623_s2 = smov [#allocation14]   ;;  %s3624_s9 = smov [#allocation15]  }
  0x9d   :  { %s123_s7 = sshll.u32 %s3623_s2, 4  ;;  %s136_s6 = sshll.u32 %s3624_s9, 4  ;;  %s124_s7 = int_to_ptr.vmem [resolvable:$true] %s123_s7  ;;  %s3863_s6 = int_to_ptr.vmem [resolvable:$true] %s136_s6 }
  0x9e   :  { %s3489_s22 = scalar_lea.hbm %s4548_s11, 16 }
  0x9f   :  { %p3490_p6 = scmp.ne.s32.totalorder %s4548_s11, %s3489_s22  ;;  %p3493_p7 = scmp.lt.u32.totalorder %s3489_s22, %s4548_s11 }
  0xa1   :  { %p3495_p8 = pnand %p3493_p7, %p3490_p6 }
  0xa3   :  { %3498 = shalt.err (!%p3495_p8)
}
  0xa4   :  { %s3499_s1 = scalar_lea.vmem %s124_s7, 16  ;;  %s3503_s5 = scalar_lea.vmem %s124_s7, 32 }
  0xa5   :  { %p3500_p9 = scmp.ne.s32.totalorder %s124_s7, %s3499_s1  ;;  %p3504_p10 = scmp.lt.s32.totalorder %s124_s7, %s124_s7 }
  0xa6   :  { %p3505_p11 = scmp.lt.s32.totalorder %s3503_s5, %s3499_s1 }
  0xa8   :  { %p3506_p12 = por %p3505_p11, %p3504_p10 }
  0xaa   :  { %p3507_p13 = pnand %p3506_p12, %p3500_p9 }
  0xac   :  { %3510 = shalt.err (!%p3507_p13)
}
  0xad   :  { %126 = dma.hbm_to_vmem [thread:$0]  %s4548_s11, 16, %s124_s7, [#allocation13]  }
  0xae   :  { %s3511_s10 = scalar_lea.hbm %s4551_s14, 256 }
  0xaf   :  { %p3512_p0 = scmp.ne.s32.totalorder %s4551_s14, %s3511_s10  ;;  %p3515_p1 = scmp.lt.u32.totalorder %s3511_s10, %s4551_s14 }
  0xb1   :  { %p3517_p2 = pnand %p3515_p1, %p3512_p0 }
  0xb3   :  { %3520 = shalt.err (!%p3517_p2)
}
  0xb4   :  { %s3521_s30 = scalar_lea.vmem %s3863_s6, 256  ;;  %p3526_p4 = scmp.lt.s32.totalorder %s3863_s6, %s3863_s6 }
  0xb5   :  { %p3522_p3 = scmp.ne.s32.totalorder %s3863_s6, %s3521_s30  ;;  %p3527_p5 = scmp.lt.s32.totalorder %s3521_s30, %s3521_s30 }
  0xb7   :  { %p3528_p6 = por %p3527_p5, %p3526_p4 }
  0xb9   :  { %p3529_p7 = pnand %p3528_p6, %p3522_p3 }
  0xbb   :  { %3532 = shalt.err (!%p3529_p7)
}
  0xbc   :  { %142 = dma.hbm_to_vmem [thread:$0]  %s4551_s14, 256, %s3863_s6, [#allocation16], %s4601_s28, %s4601_s28, %s4600_s24  }
  0xbd   :  { %3599 = dma.done.wait [#allocation4], 64  }
  0xbe   :  { %3600 = vsyncadd [#allocation4], 4294967232 }
  0xbf   :  { %3601 = dma.done.wait [#allocation7], 512  }
  0xc0   :  { %3602 = vsyncadd [#allocation7], 4294966784 }
  0xc1   :  { %3603 = dma.done.wait [#allocation10], 32  }
  0xc2   :  { %3604 = vsyncadd [#allocation10], 4294967264 }
  0xc3   :  { %3605 = dma.done.wait [#allocation13], 272  }
  0xc4   :  { %3606 = vsyncadd [#allocation13], 4294967024 }
  0xc5   :  { %3607 = dma.done.wait [#allocation16], 256  }
  0xc6   :  { %3608 = vsyncadd [#allocation16], 4294967040  ;;  %v3625_v0 = vmov 0.0   ;;  %vm3626_vm0 = vmmov 0   ;;  %v3265_v1 = vld [vmem:[#allocation6] sm:$0xff]   ;;  %v3266_v2 = vld [vmem:[#allocation6 + $0x8] sm:$0xff]  }
  0xc7   :  { %2981 = vmatprep.subr.bf16.mxu1 %v3625_v0  ;;  %2985 = vmatprep.mubr.msk.bf16.mxu1 %vm3626_vm0, %v3625_v0  ;;  %s4603_s6 = sld [smem:[#allocation28_spill]]  ;;  %vm246_vm1 = vcmask 261120   ;;  %s4604_s23 = sld [smem:[#allocation33_spill]]  ;;  %vm306_vm2 = vcmask 64512   ;;  %v2890_v23 = vld [vmem:[#allocation3] sm:$0xf]  }
  0xc8   :  { %2995 = vmatprep.subr.bf16.mxu0 %v3625_v0  ;;  %2997 = vmatprep.mubr.msk.bf16.mxu0 %vm3626_vm0, %v3625_v0  ;;  %s3627_s2 = smov 96   ;;  %v2891_v24 = vunpack.c.0.s8 %v2890_v23  ;;  %v2892_v26 = vunpack.c.1.s8 %v2890_v23  ;;  %s3628_s9 = smov 88   ;;  %vm435_vm5 = vcmask 1043456   ;;  %vm661_vm6 = vcmask 130112  }
  0xc9   :  { %2982 = vmatpush3.bf16.msra.mxu1 %v3265_v1  ;;  %s3630_s10 = smov 56   ;;  %s3631_s27 = smov 80   ;;  %vm900_vm7 = vcmask 195712   ;;  %vm1139_vm8 = vcmask 261312   ;;  %vm1611_vm12 = vcmask 130048   ;;  %vm2663_vm14 = vcmask 523264  }
  0xca   :  { %2983 = vmatprep.subr.bf16.mxu1 %v3625_v0  ;;  %v3947_v25 = vcvt.s32.f32 %v2891_v24  ;;  %v3950_v27 = vcvt.s32.f32 %v2892_v26  ;;  %s3632_s22 = smov 112   ;;  %s4579_s29 = smov 48   ;;  %vm1866_vm15 = vcmask 261248  }
  0xcb   :  { %s3634_s0 = smov 72   ;;  %s3635_s30 = smov 104  }
  0xcc   :  { %vm201_vm3 = vcmp.ne.f32.partialorder %v3947_v25, 0.0  ;;  %vm202_vm4 = vcmp.ne.f32.partialorder %v3950_v27, 0.0  ;;  %s3636_s11 = smov 40   ;;  %s3637_s7 = smov 8  }
  0xcd   :  { %v3906_v3 = vld [vmem:[%s4603_s6] sm:$0xff]  ;;  %v3911_v4 = vld [vmem:[%s4603_s6 + $0x8] sm:$0xff]  ;;  %2984 = vmatpush3.bf16.msra.mxu1 %v3266_v2  ;;  %s3638_s14 = smov 16   ;;  %s3639_s24 = smov 24  }
  0xce   :  { %v188_v5 = vpack.c.bf16 %v3911_v4, %v3906_v3  ;;  %2989 = vmatprep.subr.bf16.mxu1 %v3625_v0  ;;  %v2808_v6 = vld [vmem:[%s4604_s23] ss:$0 sm:$0xff]  ;;  %s4605_s1 = sld [smem:[#allocation29_spill]]  ;;  %s4606_s5 = sld [smem:[#allocation36_spill]] }
  0xcf   :  { %s4607_s6 = sld [smem:[#allocation31_spill]] }
  0xd0   :  { %2986 = vmatmul.mubr.msk.bf16.vlgmr.msra.gmra.mrb[0].mxu1 %vm246_vm1, %v188_v5 }
  0xd1   :  { %2991 = vmatprep.mubr.msk.bf16.mxu1 %vm3626_vm0, %v3625_v0 }
 0x1a3   :  { %v284_v7 = vpop.f32.mrb[0].mxu1 }
 0x1a4   :  { %v285_v8 = vadd.f32 %v2808_v6, %v284_v7  ;;  %v2987_v9 = vpop.f32.mrb[1].mxu1 }
 0x1a5   :  { %v287_v10 = vpop.f32.mrb[2].mxu1 }
 0x1a6   :  { %v3923_v11 = vpack.c.bf16 %v285_v8, %v285_v8  ;;  %v288_v12 = vadd.f32 %v2808_v6, %v287_v10  ;;  %v2988_v13 = vpop.f32.mrb[3].mxu1  ;;  %v291_v17 = vmul.f32 0.35355338, %v285_v8 }
 0x1a8   :  { %304 = vrot.lane.b32.xlu0 %v3923_v11, %s3627_s2  ;;  %v3927_v14 = vpack.c.bf16 %v288_v12, %v288_v12  ;;  %v3934_v20 = vpack.c.bf16 %v291_v17, %v291_v17  ;;  %v292_v21 = vmul.f32 0.35355338, %v288_v12 }
 0x1aa   :  { %v3941_v22 = vpack.c.bf16 %v292_v21, %v292_v21 }
 0x1ac   :  { %354 = vrot.lane.b32.xlu0 %v3927_v14, %s3627_s2 }
 0x21a   :  { %v305_v15 = vpop.permute.xlu0 %304 }
 0x21b   :  { %v311_v16 = vsel %vm306_vm2, %v305_v15, 0 }
 0x21c   :  { %2990 = vmatpush3.bf16.xpose.msra.mxu1 %v311_v16 }
 0x21d   :  { %3001 = vmatprep.subr.bf16.mxu1 %v3625_v0 }
 0x21e   :  { %v355_v18 = vpop.permute.xlu0 %354 }
 0x21f   :  { %v360_v19 = vsel %vm306_vm2, %v355_v18, 0 }
 0x220   :  { %2996 = vmatpush3.bf16.xpose.msra.mxu0 %v360_v19 }
 0x221   :  { %3007 = vmatprep.subr.bf16.mxu0 %v3625_v0 }
 0x223   :  { %2992 = vmatmul.mubr.msk.bf16.vlgmr.msra.gmra.mrb[4].mxu1 %vm306_vm2, %v3934_v20 }
 0x224   :  { %3003 = vmatprep.mubr.msk.bf16.mxu1 %vm3626_vm0, %v3625_v0 }
 0x227   :  { %2998 = vmatmul.mubr.msk.bf16.vlgmr.msra.gmra.mrb[0].mxu0 %vm306_vm2, %v3941_v22 }
 0x228   :  { %3009 = vmatprep.mubr.msk.bf16.mxu0 %vm3626_vm0, %v3625_v0 }
 0x2f6   :  { %v347_v28 = vpop.f32.mrb[4].mxu1 }
 0x2f7   :  { %v402_v29 = vsel %vm201_vm3, %v347_v28, -1e+10  ;;  %v2993_v30 = vpop.f32.mrb[5].mxu1 }
 0x2f8   :  { %v350_v31 = vpop.f32.mrb[6].mxu1  ;;  %v404_v32 = vsel %vm306_vm2, %v402_v29, -inf }
 0x2f9   :  { %405 = vmax.xlane.f32.xlu1 %v404_v32  ;;  %v2994_v33 = vpop.f32.mrb[7].mxu1 }
 0x2fa   :  { %v396_v34 = vpop.f32.mrb[0].mxu0 }
 0x2fb   :  { %v403_v35 = vsel %vm202_vm4, %v396_v34, -1e+10  ;;  %v2999_v36 = vpop.f32.mrb[1].mxu0 }
 0x2fc   :  { %v399_v37 = vpop.f32.mrb[2].mxu0  ;;  %v407_v38 = vsel %vm306_vm2, %v403_v35, -inf }
 0x2fd   :  { %v3000_v39 = vpop.f32.mrb[3].mxu0  ;;  %408 = vmax.xlane.f32.xlu1 %v407_v38 }
 0x30e   :  { %430 = vrot.lane.b32.xlu1 %v3923_v11, %s4601_s28 }
 0x312   :  { %479 = vrot.lane.b32.xlu1 %v3927_v14, %s4601_s28  ;;  %s3629_s28 = smov 120  }
 0x316   :  { %531 = vrot.lane.b32.xlu1 %v3923_v11, %s3628_s9 }
 0x386   :  { %v406_v40 = vpop.xlane.xlu1 %405 }
 0x387   :  { %v410_v41 = vsub.f32 %v402_v29, %v406_v40 }
 0x389   :  { %v412_v42 = vmul.f32 1.442695, %v410_v41 }
 0x38a   :  { %v409_v43 = vpop.xlane.xlu1 %408 }
 0x38b   :  { %3281 = vpow2.f32 %v412_v42  ;;  %v411_v44 = vsub.f32 %v403_v35, %v409_v43 }
 0x38d   :  { %v414_v45 = vmul.f32 1.442695, %v411_v44 }
 0x38e   :  { %v431_v46 = vpop.permute.xlu1 %430 }
 0x38f   :  { %3283 = vpow2.f32 %v414_v45  ;;  %v437_v47 = vsel %vm435_vm5, %v431_v46, 0 }
 0x390   :  { %3002 = vmatpush3.bf16.msra.mxu1 %v437_v47 }
 0x391   :  { %3013 = vmatprep.subr.bf16.mxu1 %v3625_v0 }
 0x392   :  { %v480_v48 = vpop.permute.xlu1 %479 }
 0x393   :  { %v485_v49 = vsel %vm435_vm5, %v480_v48, 0 }
 0x394   :  { %3008 = vmatpush3.bf16.msra.mxu0 %v485_v49 }
 0x395   :  { %v3282_v50 = vpop.eup %3281  ;;  %3019 = vmatprep.subr.bf16.mxu0 %v3625_v0 }
 0x396   :  { %v416_v51 = vsel %vm306_vm2, %v3282_v50, 0.0  ;;  %v532_v54 = vpop.permute.xlu1 %531 }
 0x397   :  { %417 = vadd.xlane.f32.xlu0 %v416_v51  ;;  %v537_v61 = vsel %vm306_vm2, %v532_v54, 0 }
 0x399   :  { %v3284_v52 = vpop.eup %3283 }
 0x39a   :  { %v419_v53 = vsel %vm306_vm2, %v3284_v52, 0.0 }
 0x39b   :  { %420 = vadd.xlane.f32.xlu1 %v419_v53 }
 0x3ac   :  { %581 = vrot.lane.b32.xlu1 %v3927_v14, %s3628_s9 }
 0x3ad   :  { %529 = vrot.lane.b32.xlu0 %v3934_v20, %s3629_s28 }
 0x3b0   :  { %579 = vrot.lane.b32.xlu1 %v3941_v22, %s3629_s28 }
 0x424   :  { %v418_v55 = vpop.xlane.xlu0 %417 }
 0x425   :  { %3285 = vrcp.f32 %v418_v55 }
 0x428   :  { %v421_v56 = vpop.xlane.xlu1 %420  ;;  %v530_v5 = vpop.permute.xlu0 %529 }
 0x429   :  { %3287 = vrcp.f32 %v421_v56 }
 0x42c   :  { %v582_v63 = vpop.permute.xlu1 %581 }
 0x42d   :  { %v587_v2 = vsel %vm306_vm2, %v582_v63, 0 }
 0x42f   :  { %v3286_v57 = vpop.eup %3285 }
 0x430   :  { %v423_v58 = vmul.f32 %v3286_v57, %v3282_v50  ;;  %v580_v6 = vpop.permute.xlu1 %579 }
 0x432   :  { %426 = vst.msk [vmem:[#allocation18] sm:$0xff] %vm306_vm2, %v423_v58  ;;  %v428_v59 = vpack.c.bf16 %v423_v58, %v423_v58 }
 0x433   :  { %v3288_v60 = vpop.eup %3287 }
 0x434   :  { %v425_v62 = vmul.f32 %v3288_v60, %v3284_v52  ;;  %3004 = vmatmul.mubr.msk.bf16.vlgmr.msra.gmra.mrb[8].mxu1 %vm306_vm2, %v428_v59 }
 0x435   :  { %3014 = vmatpush3.bf16.xpose.msra.mxu1 %v537_v61  ;;  %3015 = vmatprep.mubr.msk.bf16.mxu1 %vm3626_vm0, %v3625_v0 }
 0x436   :  { %427 = vst.msk [vmem:[#allocation18 + $0x8] sm:$0xff] %vm306_vm2, %v425_v62  ;;  %v429_v1 = vpack.c.bf16 %v425_v62, %v425_v62  ;;  %3025 = vmatprep.subr.bf16.mxu1 %v3625_v0 }
 0x438   :  { %3010 = vmatmul.mubr.msk.bf16.vlgmr.msra.gmra.mrb[4].mxu0 %vm306_vm2, %v429_v1 }
 0x439   :  { %3020 = vmatpush3.bf16.xpose.msra.mxu0 %v587_v2  ;;  %3021 = vmatprep.mubr.msk.bf16.mxu0 %vm3626_vm0, %v3625_v0 }
 0x43a   :  { %3031 = vmatprep.subr.bf16.mxu0 %v3625_v0 }
 0x43c   :  { %3016 = vmatmul.mubr.msk.bf16.vlgmr.msra.gmra.mrb[12].mxu1 %vm306_vm2, %v530_v5 }
 0x43d   :  { %3027 = vmatprep.mubr.msk.bf16.mxu1 %vm3626_vm0, %v3625_v0 }
 0x440   :  { %3022 = vmatmul.mubr.msk.bf16.vlgmr.msra.gmra.mrb[8].mxu0 %vm306_vm2, %v580_v6 }
 0x441   :  { %3033 = vmatprep.mubr.msk.bf16.mxu0 %vm3626_vm0, %v3625_v0 }
 0x507   :  { %v473_v7 = vpop.f32.mrb[8].mxu1 }
 0x508   :  { %v3005_v8 = vpop.f32.mrb[9].mxu1 }
 0x509   :  { %v476_v9 = vpop.f32.mrb[10].mxu1 }
 0x50a   :  { %v3006_v10 = vpop.f32.mrb[11].mxu1 }
 0x50b   :  { %v521_v12 = vpop.f32.mrb[4].mxu0 }
 0x50c   :  { %v527_v13 = vpack.c.bf16 %v521_v12, %v473_v7  ;;  %v3011_v15 = vpop.f32.mrb[5].mxu0 }
 0x50d   :  { %v524_v16 = vpop.f32.mrb[6].mxu0 }
 0x50e   :  { %528 = vst.msk [vmem:[#allocation2] sm:$0xff] %vm306_vm2, %v527_v13  ;;  %v3012_v17 = vpop.f32.mrb[7].mxu0 }
 0x50f   :  { %v573_v18 = vpop.f32.mrb[12].mxu1 }
 0x510   :  { %v629_v19 = vsel %vm201_vm3, %v573_v18, -1e+10  ;;  %v3017_v21 = vpop.f32.mrb[13].mxu1 }
 0x511   :  { %v576_v23 = vpop.f32.mrb[14].mxu1  ;;  %v631_v24 = vsel %vm306_vm2, %v629_v19, -inf }
 0x512   :  { %632 = vmax.xlane.f32.xlu1 %v631_v24  ;;  %v3018_v26 = vpop.f32.mrb[15].mxu1 }
 0x513   :  { %v623_v28 = vpop.f32.mrb[8].mxu0 }
 0x514   :  { %v630_v29 = vsel %vm202_vm4, %v623_v28, -1e+10  ;;  %v3023_v30 = vpop.f32.mrb[9].mxu0 }
 0x515   :  { %v626_v31 = vpop.f32.mrb[10].mxu0  ;;  %v634_v32 = vsel %vm306_vm2, %v630_v29, -inf }
 0x516   :  { %635 = vmax.xlane.f32.xlu0 %v634_v32  ;;  %v3024_v33 = vpop.f32.mrb[11].mxu0 }
 0x523   :  { %666 = vrot.lane.b32.xlu1 %v3923_v11, %s3630_s10 }
 0x527   :  { %770 = vrot.lane.b32.xlu1 %v3923_v11, %s3631_s27 }
 0x52c   :  { %714 = vrot.lane.b32.xlu0 %v3927_v14, %s3630_s10 }
 0x530   :  { %768 = vrot.lane.b32.xlu0 %v3934_v20, %s3632_s22 }
 0x59f   :  { %v633_v34 = vpop.xlane.xlu1 %632 }
 0x5a0   :  { %v637_v35 = vsub.f32 %v629_v19, %v633_v34 }
 0x5a2   :  { %v639_v36 = vmul.f32 1.442695, %v637_v35 }
 0x5a3   :  { %v636_v37 = vpop.xlane.xlu0 %635  ;;  %v667_v38 = vpop.permute.xlu1 %666 }
 0x5a4   :  { %3289 = vpow2.f32 %v639_v36  ;;  %v638_v39 = vsub.f32 %v630_v29, %v636_v37  ;;  %v672_v40 = vsel %vm435_vm5, %v667_v38, 0 }
 0x5a5   :  { %3026 = vmatpush3.bf16.msra.mxu1 %v672_v40 }
 0x5a6   :  { %v641_v41 = vmul.f32 1.442695, %v638_v39  ;;  %3037 = vmatprep.subr.bf16.mxu1 %v3625_v0 }
 0x5a7   :  { %v715_v42 = vpop.permute.xlu0 %714  ;;  %v771_v48 = vpop.permute.xlu1 %770 }
 0x5a8   :  { %3291 = vpow2.f32 %v641_v41  ;;  %v720_v43 = vsel %vm435_vm5, %v715_v42, 0  ;;  %v776_v55 = vsel %vm306_vm2, %v771_v48, 0 }
 0x5a9   :  { %3032 = vmatpush3.bf16.msra.mxu0 %v720_v43 }
 0x5aa   :  { %3043 = vmatprep.subr.bf16.mxu0 %v3625_v0 }
 0x5ab   :  { %v769_v60 = vpop.permute.xlu0 %768 }
 0x5ae   :  { %v3290_v44 = vpop.eup %3289 }
 0x5af   :  { %v643_v45 = vsel %vm306_vm2, %v3290_v44, 0.0 }
 0x5b0   :  { %644 = vadd.xlane.f32.xlu1 %v643_v45 }
 0x5b2   :  { %v3292_v46 = vpop.eup %3291 }
 0x5b3   :  { %v646_v47 = vsel %vm306_vm2, %v3292_v46, 0.0 }
 0x5b4   :  { %647 = vadd.xlane.f32.xlu1 %v646_v47 }
 0x5c5   :  { %820 = vrot.lane.b32.xlu1 %v3927_v14, %s3631_s27 }
 0x5c9   :  { %818 = vrot.lane.b32.xlu1 %v3941_v22, %s3632_s22 }
 0x63d   :  { %v645_v49 = vpop.xlane.xlu1 %644 }
 0x63e   :  { %3293 = vrcp.f32 %v645_v49 }
 0x641   :  { %v648_v50 = vpop.xlane.xlu1 %647 }
 0x642   :  { %3295 = vrcp.f32 %v648_v50 }
 0x645   :  { %v821_v57 = vpop.permute.xlu1 %820 }
 0x646   :  { %v826_v59 = vsel %vm306_vm2, %v821_v57, 0 }
 0x648   :  { %v3294_v51 = vpop.eup %3293 }
 0x649   :  { %v4018_v52 = vmul.f32 %v3294_v51, %v3290_v44  ;;  %v819_v61 = vpop.permute.xlu1 %818 }
 0x64b   :  { %v664_v53 = vpack.c.bf16 %v4018_v52, %v4018_v52 }
 0x64c   :  { %v3296_v54 = vpop.eup %3295 }
 0x64d   :  { %v4023_v56 = vmul.f32 %v3296_v54, %v3292_v46  ;;  %3028 = vmatmul.mubr.msk.bf16.vlgmr.msra.gmra.mrb[16].mxu1 %vm306_vm2, %v664_v53 }
 0x64e   :  { %3038 = vmatpush3.bf16.xpose.msra.mxu1 %v776_v55  ;;  %3039 = vmatprep.mubr.msk.bf16.mxu1 %vm3626_vm0, %v3625_v0 }
 0x64f   :  { %v665_v58 = vpack.c.bf16 %v4023_v56, %v4023_v56  ;;  %3049 = vmatprep.subr.bf16.mxu1 %v3625_v0 }
 0x651   :  { %3034 = vmatmul.mubr.msk.bf16.vlgmr.msra.gmra.mrb[12].mxu0 %vm306_vm2, %v665_v58 }
 0x652   :  { %3044 = vmatpush3.bf16.xpose.msra.mxu0 %v826_v59  ;;  %3045 = vmatprep.mubr.msk.bf16.mxu0 %vm3626_vm0, %v3625_v0 }
 0x653   :  { %3055 = vmatprep.subr.bf16.mxu0 %v3625_v0 }
 0x655   :  { %3040 = vmatmul.mubr.msk.bf16.vlgmr.msra.gmra.mrb[20].mxu1 %vm306_vm2, %v769_v60 }
 0x656   :  { %3051 = vmatprep.mubr.msk.bf16.mxu1 %vm3626_vm0, %v3625_v0 }
 0x659   :  { %3046 = vmatmul.mubr.msk.bf16.vlgmr.msra.gmra.mrb[16].mxu0 %vm306_vm2, %v819_v61 }
 0x65a   :  { %3057 = vmatprep.mubr.msk.bf16.mxu0 %vm3626_vm0, %v3625_v0 }
 0x720   :  { %v4042_v62 = vpop.f32.mrb[16].mxu1 }
 0x721   :  { %v3029_v63 = vpop.f32.mrb[17].mxu1 }
 0x722   :  { %v711_v1 = vpop.f32.mrb[18].mxu1 }
 0x723   :  { %v3030_v2 = vpop.f32.mrb[19].mxu1 }
 0x724   :  { %v4044_v5 = vpop.f32.mrb[12].mxu0 }
 0x725   :  { %v762_v6 = vpack.c.bf16 %v4044_v5, %v4042_v62  ;;  %v3035_v7 = vpop.f32.mrb[13].mxu0 }
 0x726   :  { %v759_v8 = vpop.f32.mrb[14].mxu0 }
 0x727   :  { %v3036_v9 = vpop.f32.mrb[15].mxu0 }
 0x728   :  { %v812_v10 = vpop.f32.mrb[20].mxu1 }
 0x729   :  { %v868_v12 = vsel %vm201_vm3, %v812_v10, -1e+10  ;;  %v3041_v13 = vpop.f32.mrb[21].mxu1 }
 0x72a   :  { %v815_v15 = vpop.f32.mrb[22].mxu1  ;;  %v870_v16 = vsel %vm306_vm2, %v868_v12, -inf }
 0x72b   :  { %871 = vmax.xlane.f32.xlu0 %v870_v16  ;;  %v3042_v17 = vpop.f32.mrb[23].mxu1 }
 0x72c   :  { %v862_v18 = vpop.f32.mrb[16].mxu0 }
 0x72d   :  { %v869_v19 = vsel %vm202_vm4, %v862_v18, -1e+10  ;;  %v3047_v21 = vpop.f32.mrb[17].mxu0 }
 0x72e   :  { %v865_v23 = vpop.f32.mrb[18].mxu0  ;;  %v873_v24 = vsel %vm306_vm2, %v869_v19, -inf }
 0x72f   :  { %874 = vmax.xlane.f32.xlu1 %v873_v24  ;;  %v3048_v26 = vpop.f32.mrb[19].mxu0 }
 0x740   :  { %905 = vrot.lane.b32.xlu1 %v3923_v11, %s4579_s29 }
 0x744   :  { %1009 = vrot.lane.b32.xlu1 %v3923_v11, %s3634_s0 }
 0x748   :  { %1059 = vrot.lane.b32.xlu1 %v3927_v14, %s3634_s0 }
 0x74c   :  { %1057 = vrot.lane.b32.xlu1 %v3941_v22, %s3635_s30 }
 0x7b8   :  { %v872_v28 = vpop.xlane.xlu0 %871 }
 0x7b9   :  { %v876_v29 = vsub.f32 %v868_v12, %v872_v28 }
 0x7bb   :  { %v878_v30 = vmul.f32 1.442695, %v876_v29 }
 0x7bc   :  { %v875_v31 = vpop.xlane.xlu1 %874 }
 0x7bd   :  { %3297 = vpow2.f32 %v878_v30  ;;  %v877_v32 = vsub.f32 %v869_v19, %v875_v31 }
 0x7bf   :  { %v880_v33 = vmul.f32 1.442695, %v877_v32 }
 0x7c0   :  { %v906_v34 = vpop.permute.xlu1 %905 }
 0x7c1   :  { %3299 = vpow2.f32 %v880_v33  ;;  %v911_v35 = vsel %vm435_vm5, %v906_v34, 0 }
 0x7c2   :  { %3050 = vmatpush3.bf16.msra.mxu1 %v911_v35 }
 0x7c3   :  { %3061 = vmatprep.subr.bf16.mxu1 %v3625_v0 }
 0x7c4   :  { %v1010_v44 = vpop.permute.xlu1 %1009 }
 0x7c7   :  { %v3298_v36 = vpop.eup %3297 }
 0x7c8   :  { %v882_v37 = vsel %vm306_vm2, %v3298_v36, 0.0  ;;  %v1060_v49 = vpop.permute.xlu1 %1059 }
 0x7c9   :  { %883 = vadd.xlane.f32.xlu0 %v882_v37  ;;  %v1065_v51 = vsel %vm306_vm2, %v1060_v49, 0 }
 0x7cb   :  { %v3300_v38 = vpop.eup %3299 }
 0x7cc   :  { %v885_v22 = vsel %vm306_vm2, %v3300_v38, 0.0  ;;  %v1058_v54 = vpop.permute.xlu1 %1057 }
 0x7cd   :  { %886 = vadd.xlane.f32.xlu0 %v885_v22 }
 0x7e3   :  { %953 = vrot.lane.b32.xlu0 %v3927_v14, %s4579_s29 }
 0x7e7   :  { %1007 = vrot.lane.b32.xlu0 %v3934_v20, %s3635_s30  ;;  %v1015_v20 = vsel %vm306_vm2, %v1010_v44, 0 }
 0x856   :  { %v884_v39 = vpop.xlane.xlu0 %883 }
 0x857   :  { %3301 = vrcp.f32 %v884_v39 }
 0x85a   :  { %v887_v40 = vpop.xlane.xlu0 %886 }
 0x85b   :  { %3303 = vrcp.f32 %v887_v40 }
 0x85e   :  { %v954_v41 = vpop.permute.xlu0 %953 }
 0x85f   :  { %v959_v42 = vsel %vm435_vm5, %v954_v41, 0  ;;  %v3267_v41 = vld [vmem:[#allocation8] sm:$0xff]  }
 0x860   :  { %3056 = vmatpush3.bf16.msra.mxu0 %v959_v42  ;;  %v3268_v42 = vld [vmem:[#allocation8 + $0x8] sm:$0xff]  }
 0x861   :  { %v3302_v43 = vpop.eup %3301  ;;  %3067 = vmatprep.subr.bf16.mxu0 %v3625_v0 }
 0x862   :  { %v4072_v45 = vmul.f32 %v3302_v43, %v3298_v36  ;;  %v1008_v53 = vpop.permute.xlu0 %1007 }
 0x864   :  { %v903_v46 = vpack.c.bf16 %v4072_v45, %v4072_v45 }
 0x865   :  { %v3304_v47 = vpop.eup %3303 }
 0x866   :  { %v4077_v48 = vmul.f32 %v3304_v47, %v3300_v38  ;;  %3052 = vmatmul.mubr.msk.bf16.vlgmr.msra.gmra.mrb[24].mxu1 %vm306_vm2, %v903_v46 }
 0x867   :  { %3062 = vmatpush3.bf16.xpose.msra.mxu1 %v1015_v20  ;;  %3063 = vmatprep.mubr.msk.bf16.mxu1 %vm3626_vm0, %v3625_v0 }
 0x868   :  { %v904_v50 = vpack.c.bf16 %v4077_v48, %v4077_v48  ;;  %3073 = vmatprep.subr.bf16.mxu1 %v3625_v0 }
 0x86a   :  { %3058 = vmatmul.mubr.msk.bf16.vlgmr.msra.gmra.mrb[20].mxu0 %vm306_vm2, %v904_v50 }
 0x86b   :  { %3068 = vmatpush3.bf16.xpose.msra.mxu0 %v1065_v51  ;;  %3069 = vmatprep.mubr.msk.bf16.mxu0 %vm3626_vm0, %v3625_v0 }
 0x86c   :  { %3079 = vmatprep.subr.bf16.mxu0 %v3625_v0 }
 0x86e   :  { %3064 = vmatmul.mubr.msk.bf16.vlgmr.msra.gmra.mrb[28].mxu1 %vm306_vm2, %v1008_v53 }
 0x86f   :  { %3075 = vmatprep.mubr.msk.bf16.mxu1 %vm3626_vm0, %v3625_v0 }
 0x872   :  { %3070 = vmatmul.mubr.msk.bf16.vlgmr.msra.gmra.mrb[24].mxu0 %vm306_vm2, %v1058_v54 }
 0x873   :  { %3081 = vmatprep.mubr.msk.bf16.mxu0 %vm3626_vm0, %v3625_v0 }
 0x939   :  { %v947_v55 = vpop.f32.mrb[24].mxu1 }
 0x93a   :  { %v3053_v57 = vpop.f32.mrb[25].mxu1 }
 0x93b   :  { %v950_v58 = vpop.f32.mrb[26].mxu1  ;;  %v2832_v57 = vld [vmem:[#allocation9] ss:$0 sm:$0xff] }
 0x93c   :  { %v3054_v59 = vpop.f32.mrb[27].mxu1 }
 0x93d   :  { %v995_v60 = vpop.f32.mrb[20].mxu0 }
 0x93e   :  { %v1001_v61 = vpack.c.bf16 %v995_v60, %v947_v55  ;;  %v3059_v63 = vpop.f32.mrb[21].mxu0 }
 0x93f   :  { %v998_v1 = vpop.f32.mrb[22].mxu0 }
 0x940   :  { %v3060_v2 = vpop.f32.mrb[23].mxu0 }
 0x941   :  { %v1051_v7 = vpop.f32.mrb[28].mxu1 }
 0x942   :  { %v1107_v8 = vsel %vm201_vm3, %v1051_v7, -1e+10  ;;  %v3065_v9 = vpop.f32.mrb[29].mxu1 }
 0x943   :  { %v1054_v10 = vpop.f32.mrb[30].mxu1  ;;  %v1109_v12 = vsel %vm306_vm2, %v1107_v8, -inf }
 0x944   :  { %1110 = vmax.xlane.f32.xlu0 %v1109_v12  ;;  %v3066_v13 = vpop.f32.mrb[31].mxu1 }
 0x945   :  { %v1101_v15 = vpop.f32.mrb[24].mxu0 }
 0x946   :  { %v1108_v16 = vsel %vm202_vm4, %v1101_v15, -1e+10  ;;  %v3071_v17 = vpop.f32.mrb[25].mxu0 }
 0x947   :  { %v1104_v18 = vpop.f32.mrb[26].mxu0  ;;  %v1112_v19 = vsel %vm306_vm2, %v1108_v16, -inf }
 0x948   :  { %1113 = vmax.xlane.f32.xlu1 %v1112_v19  ;;  %v3072_v21 = vpop.f32.mrb[27].mxu0 }
 0x959   :  { %1144 = vrot.lane.b32.xlu1 %v3923_v11, %s3636_s11 }
 0x95d   :  { %764 = vrot.lane.b32.xlu1 %v762_v6, %s3637_s7 }
 0x961   :  { %1003 = vrot.lane.b32.xlu1 %v1001_v61, %s3638_s14 }
 0x9d1   :  { %v1111_v25 = vpop.xlane.xlu0 %1110 }
 0x9d2   :  { %v1115_v27 = vsub.f32 %v1107_v8, %v1111_v25  ;;  %v3269_v25 = vld [vmem:[#allocation12] sm:$0xff]  }
 0x9d4   :  { %v1117_v23 = vmul.f32 1.442695, %v1115_v27  ;;  %v189_v27 = vld [vmem:[%s4605_s1] sm:$0xff] }
 0x9d5   :  { %v1114_v24 = vpop.xlane.xlu1 %1113 }
 0x9d6   :  { %3305 = vpow2.f32 %v1117_v23  ;;  %v1116_v26 = vsub.f32 %v1108_v16, %v1114_v24  ;;  %v190_v23 = vld [vmem:[%s4605_s1 + $0x8] sm:$0xff] }
 0x9d7   :  { %v193_v24 = vpack.c.bf16 %v190_v23, %v189_v27  ;;  %v3640_v23 = vmov 0  }
 0x9d8   :  { %v1119_v28 = vmul.f32 1.442695, %v1116_v26  ;;  %v191_v26 = vld [vmem:[%s4605_s1 + $0x10] sm:$0xff] }
 0x9d9   :  { %v1145_v29 = vpop.permute.xlu1 %1144 }
 0x9da   :  { %3307 = vpow2.f32 %v1119_v28  ;;  %v1150_v11 = vsel %vm435_vm5, %v1145_v29, 0  ;;  %v192_v28 = vld [vmem:[%s4605_s1 + $0x18] sm:$0xff] }
 0x9db   :  { %3074 = vmatpush3.bf16.msra.mxu1 %v1150_v11  ;;  %v194_v29 = vpack.c.bf16 %v192_v28, %v191_v26  ;;  %v3271_v11 = vld [vmem:[%s4606_s5] sm:$0xff]  }
 0x9dc   :  { %3085 = vmatprep.subr.bf16.mxu1 %v3625_v0 }
 0x9dd   :  { %v765_v62 = vpop.permute.xlu1 %764 }
 0x9de   :  { %767 = vst.msk [vmem:[#allocation2] sm:$0xff] %vm661_vm6, %v765_v62  ;;  %v3272_v62 = vld [vmem:[%s4606_s5 + $0x8] sm:$0xff]  }
 0x9e0   :  { %v3306_v5 = vpop.eup %3305 }
 0x9e1   :  { %v1004_v6 = vpop.permute.xlu1 %1003  ;;  %v1121_v30 = vsel %vm306_vm2, %v3306_v5, 0.0 }
 0x9e2   :  { %1006 = vst.msk [vmem:[#allocation2] sm:$0xff] %vm900_vm7, %v1004_v6  ;;  %1122 = vadd.xlane.f32.xlu0 %v1121_v30 }
 0x9e4   :  { %v3308_v31 = vpop.eup %3307 }
 0x9e5   :  { %v1124_v32 = vsel %vm306_vm2, %v3308_v31, 0.0 }
 0x9e6   :  { %1125 = vadd.xlane.f32.xlu0 %v1124_v32 }
 0x9fc   :  { %1192 = vrot.lane.b32.xlu0 %v3927_v14, %s3636_s11 }
 0xa6f   :  { %v1123_v33 = vpop.xlane.xlu0 %1122 }
 0xa70   :  { %3309 = vrcp.f32 %v1123_v33 }
 0xa73   :  { %v1126_v34 = vpop.xlane.xlu0 %1125 }
 0xa74   :  { %3311 = vrcp.f32 %v1126_v34 }
 0xa77   :  { %v1193_v35 = vpop.permute.xlu0 %1192 }
 0xa78   :  { %v1198_v36 = vsel %vm435_vm5, %v1193_v35, 0  ;;  %v2836_v35 = vld [vmem:[%s4555_s18] ss:$0 sm:$0xff] }
 0xa79   :  { %3080 = vmatpush3.bf16.msra.mxu0 %v1198_v36 }
 0xa7a   :  { %v3310_v37 = vpop.eup %3309  ;;  %3093 = vmatprep.subr.bf16.mxu0 %v3625_v0 }
 0xa7b   :  { %v4117_v38 = vmul.f32 %v3310_v37, %v3306_v5 }
 0xa7d   :  { %v1142_v22 = vpack.c.bf16 %v4117_v38, %v4117_v38 }
 0xa7e   :  { %v3312_v39 = vpop.eup %3311 }
 0xa7f   :  { %v4121_v40 = vmul.f32 %v3312_v39, %v3308_v31  ;;  %3076 = vmatmul.mubr.msk.bf16.vlgmr.msra.gmra.mrb[32].mxu1 %vm306_vm2, %v1142_v22 }
 0xa80   :  { %3089 = vmatprep.mubr.msk.bf16.mxu1 %vm3626_vm0, %v3625_v0  ;;  %3086 = vmatpush3.bf16.msra.mxu1 %v3267_v41 }
 0xa81   :  { %v1143_v14 = vpack.c.bf16 %v4121_v40, %v4121_v40  ;;  %3087 = vmatprep.subr.bf16.mxu1 %v3625_v0 }
 0xa83   :  { %3082 = vmatmul.mubr.msk.bf16.vlgmr.msra.gmra.mrb[28].mxu0 %vm306_vm2, %v1143_v14  ;;  %v2837_v14 = vld [vmem:[%s4556_s19] ss:$0 sm:$0xff] }
 0xa84   :  { %3097 = vmatprep.mubr.msk.bf16.mxu0 %vm3626_vm0, %v3625_v0  ;;  %3088 = vmatpush3.bf16.msra.mxu1 %v3268_v42 }
 0xa85   :  { %3101 = vmatprep.subr.bf16.mxu1 %v3269_v25  ;;  %3094 = vmatpush3.bf16.msra.mxu0 %v3271_v11 }
 0xa86   :  { %3095 = vmatprep.subr.bf16.mxu0 %v3625_v0 }
 0xa89   :  { %3096 = vmatpush3.bf16.msra.mxu0 %v3272_v62 }
 0xa8a   :  { %3109 = vmatprep.subr.bf16.mxu0 %v3625_v0 }
 0xb52   :  { %v1186_v43 = vpop.f32.mrb[32].mxu1 }
 0xb53   :  { %v3077_v44 = vpop.f32.mrb[33].mxu1 }
 0xb54   :  { %v1189_v46 = vpop.f32.mrb[34].mxu1 }
 0xb55   :  { %v3078_v47 = vpop.f32.mrb[35].mxu1  ;;  %v2842_v46 = vld [vmem:[#allocation14] ss:$0 sm:$0xff] }
 0xb56   :  { %v1234_v20 = vpop.f32.mrb[28].mxu0 }
 0xb57   :  { %v1240_v49 = vpack.c.bf16 %v1234_v20, %v1186_v43  ;;  %v3083_v50 = vpop.f32.mrb[29].mxu0 }
 0xb58   :  { %v1237_v51 = vpop.f32.mrb[30].mxu0 }
 0xb59   :  { %v3084_v53 = vpop.f32.mrb[31].mxu0  ;;  %1242 = vrot.lane.b32.xlu0 %v1240_v49, %s3639_s24 }
 0xbcb   :  { %v1243_v54 = vpop.permute.xlu0 %1242 }
 0xbcc   :  { %1245 = vst.msk [vmem:[#allocation2] sm:$0xff] %vm1139_vm8, %v1243_v54 }
 0xbd3   :  { %v1246_v55 = vld [vmem:[#allocation2] sm:$0xff] }
 0xbd4   :  { %3090 = vmatmul.mubr.msk.bf16.vlgmr.msra.gmra.mrb[36].mxu1 %vm246_vm1, %v1246_v55 }
 0xbd5   :  { %3102 = vmatpush3.bf16.msra.mxu1 %v3269_v25  ;;  %3105 = vmatprep.mubr.msk.bf16.mxu1 %vm246_vm1, %v193_v24 }
 0xca7   :  { %v1307_v58 = vpop.f32.mrb[36].mxu1 }
 0xca8   :  { %v1308_v59 = vadd.f32 %v2832_v57, %v1307_v58  ;;  %v3091_v60 = vpop.f32.mrb[37].mxu1 }
 0xca9   :  { %v1310_v61 = vpop.f32.mrb[38].mxu1 }
 0xcaa   :  { %v1311_v63 = vadd.f32 %v2832_v57, %v1310_v61  ;;  %v3092_v1 = vpop.f32.mrb[39].mxu1  ;;  %v1314_v2 = vadd.f32 %v1308_v59, %v3906_v3  ;;  %v2838_v61 = vld [vmem:[#allocation11] ss:$0 sm:$0xff] }
 0xcac   :  { %v1318_v7 = vsel %vm246_vm1, %v1314_v2, 0.0  ;;  %v1315_v8 = vadd.f32 %v1311_v63, %v3911_v4  ;;  %v3270_v4 = vld [vmem:[#allocation12 + $0x8] sm:$0xff]  }
 0xcad   :  { %1319 = vadd.xlane.f32.xlu1 %v1318_v7  ;;  %3103 = vmatprep.subr.bf16.mxu1 %v3270_v4 }
 0xcae   :  { %v1321_v9 = vsel %vm246_vm1, %v1315_v8, 0.0  ;;  %3104 = vmatpush3.bf16.msra.mxu1 %v3270_v4 }
 0xcaf   :  { %1322 = vadd.xlane.f32.xlu0 %v1321_v9  ;;  %3115 = vmatprep.subr.bf16.mxu1 %v3625_v0 }
 0xcb1   :  { %3106 = vmatmul.mubr.msk.bf16.vlgmr.msra.gmra.mrb[40].mxu1 %vm246_vm1, %v194_v29 }
 0xcb2   :  { %3117 = vmatprep.mubr.msk.bf16.mxu1 %vm3626_vm0, %v3625_v0 }
 0xd3a   :  { %v1320_v10 = vpop.xlane.xlu1 %1319 }
 0xd3b   :  { %v1325_v12 = vmul.f32 0.03125, %v1320_v10 }
 0xd3c   :  { %v1323_v13 = vpop.xlane.xlu0 %1322 }
 0xd3d   :  { %v1327_v15 = vsub.f32 %v1314_v2, %v1325_v12  ;;  %v1326_v16 = vmul.f32 0.03125, %v1323_v13 }
 0xd3f   :  { %v1328_v17 = vsub.f32 %v1315_v8, %v1326_v16  ;;  %v1329_v18 = vmul.f32 %v1327_v15, %v1327_v15  ;;  %v203_v16 = vld [vmem:[%s4607_s6] sm:$0x1] }
 0xd41   :  { %v1331_v19 = vsel %vm246_vm1, %v1329_v18, 0.0  ;;  %v1330_v21 = vmul.f32 %v1328_v17, %v1328_v17  ;;  %v205_v18 = vunpack.c.0.s8 %v203_v16 }
 0xd42   :  { %1332 = vadd.xlane.f32.xlu0 %v1331_v19  ;;  %v213_v19 = vlaneseq }
 0xd43   :  { %v1334_v3 = vsel %vm246_vm1, %v1330_v21, 0.0 }
 0xd44   :  { %1335 = vadd.xlane.f32.xlu1 %v1334_v3  ;;  %v207_v3 = vcvt.s32.f32 %v205_v18  ;;  %v214_v25 = vshrl.u32 %v213_v19, 7 }
 0xd46   :  { %vm209_vm9 = vcmp.ne.f32.partialorder %v207_v3, 0.0  ;;  %v215_v27 = vsub.s32 0, %v214_v25 }
 0xd47   :  { %v211_v24 = vsel %vm209_vm9, 1, %v3640_v23 }
 0xd48   :  { %v4209_v28 = vrot.slane %v211_v24, %v215_v27 }
 0xd4a   :  { %vm221_vm11 = vcmp.eq.s32.totalorder %v4209_v28, 1 }
 0xd84   :  { %v3107_v47 = vpop.f32.mrb[40].mxu1 }
 0xd85   :  { %v1501_v20 = vadd.f32 %v3107_v47, %v2842_v46  ;;  %v1492_v49 = vpop.f32.mrb[41].mxu1 }
 0xd86   :  { %v1493_v50 = vadd.f32 %v2842_v46, %v1492_v49  ;;  %v3108_v51 = vpop.f32.mrb[42].mxu1 }
 0xd87   :  { %v1504_v53 = vadd.f32 %v3108_v51, %v2842_v46  ;;  %v1495_v54 = vpop.f32.mrb[43].mxu1 }
 0xd88   :  { %v1496_v55 = vadd.f32 %v2842_v46, %v1495_v54 }
 0xd89   :  { %v4181_v57 = vpack.c.bf16 %v1504_v53, %v1501_v20 }
 0xd8a   :  { %v4183_v58 = vpack.c.bf16 %v1496_v55, %v1493_v50 }
 0xd8b   :  { %v1567_v59 = vsel %vm306_vm2, %v4181_v57, 0 }
 0xd8c   :  { %v1521_v60 = vsel %vm306_vm2, %v4183_v58, 0  ;;  %3116 = vmatpush3.bf16.xpose.msra.mxu1 %v1567_v59 }
 0xd8d   :  { %3127 = vmatprep.subr.bf16.mxu1 %v3625_v0 }
 0xdcf   :  { %v1333_v5 = vpop.xlane.xlu0 %1332 }
 0xdd0   :  { %v1337_v6 = vmul.f32 0.03125, %v1333_v5 }
 0xdd1   :  { %v1336_v30 = vpop.xlane.xlu1 %1335 }
 0xdd2   :  { %v1339_v31 = vadd.f32 1e-05, %v1337_v6  ;;  %v1338_v32 = vmul.f32 0.03125, %v1336_v30 }
 0xdd4   :  { %3313 = vrsqrt.f32 %v1339_v31  ;;  %v1340_v33 = vadd.f32 1e-05, %v1338_v32 }
 0xdd6   :  { %3315 = vrsqrt.f32 %v1340_v33 }
 0xdde   :  { %v3314_v34 = vpop.eup %3313 }
 0xddf   :  { %v1343_v36 = vmul.f32 %v3314_v34, %v1327_v15 }
 0xde0   :  { %v3316_v37 = vpop.eup %3315 }
 0xde1   :  { %v1351_v22 = vmul.f32 %v2836_v35, %v1343_v36  ;;  %v1344_v39 = vmul.f32 %v3316_v37, %v1328_v17  ;;  %v204_v17 = vld [vmem:[%s4607_s6 + $0x1] sm:$0x1] }
 0xde2   :  { %v206_v21 = vunpack.c.0.s8 %v204_v17 }
 0xde3   :  { %v1352_v41 = vmul.f32 %v2836_v35, %v1344_v39  ;;  %v4172_v42 = vadd.f32 %v2837_v14, %v1351_v22 }
 0xde4   :  { %v208_v4 = vcvt.s32.f32 %v206_v21 }
 0xde5   :  { %v4174_v43 = vadd.f32 %v2837_v14, %v1352_v41 }
 0xde6   :  { %vm210_vm10 = vcmp.ne.f32.partialorder %v208_v4, 0.0 }
 0xde7   :  { %v1361_v44 = vpack.c.bf16 %v4174_v43, %v4172_v42  ;;  %v212_v26 = vsel %vm210_vm10, 1, %v3640_v23 }
 0xde8   :  { %v4211_v29 = vrot.slane %v212_v26, %v215_v27 }
 0xde9   :  { %3098 = vmatmul.mubr.msk.bf16.vlgmr.msra.gmra.mrb[32].mxu0 %vm246_vm1, %v1361_v44 }
 0xdea   :  { %3111 = vmatprep.mubr.msk.bf16.mxu0 %vm3626_vm0, %v3625_v0  ;;  %3110 = vmatpush3.bf16.xpose.msra.mxu0 %v1521_v60  ;;  %vm222_vm13 = vcmp.eq.s32.totalorder %v4211_v29, 1 }
 0xdeb   :  { %3121 = vmatprep.subr.bf16.mxu0 %v3625_v0 }
 0xebc   :  { %v1422_v63 = vpop.f32.mrb[32].mxu0 }
 0xebd   :  { %v1423_v1 = vadd.f32 %v2838_v61, %v1422_v63  ;;  %v3099_v2 = vpop.f32.mrb[33].mxu0 }
 0xebe   :  { %v1425_v7 = vpop.f32.mrb[34].mxu0 }
 0xebf   :  { %v1507_v8 = vmul.f32 0.35355338, %v1423_v1  ;;  %v1426_v9 = vadd.f32 %v2838_v61, %v1425_v7  ;;  %v3100_v10 = vpop.f32.mrb[35].mxu0 }
 0xec1   :  { %v4191_v12 = vpack.c.bf16 %v1507_v8, %v1507_v8  ;;  %v1508_v13 = vmul.f32 0.35355338, %v1426_v9 }
 0xec3   :  { %v4193_v15 = vpack.c.bf16 %v1508_v13, %v1508_v13  ;;  %3112 = vmatmul.mubr.msk.bf16.vlgmr.msra.gmra.mrb[36].mxu0 %vm306_vm2, %v4191_v12 }
 0xec4   :  { %3123 = vmatprep.mubr.msk.bf16.mxu0 %vm3626_vm0, %v3625_v0 }
 0xec5   :  { %3118 = vmatmul.mubr.msk.bf16.vlgmr.msra.gmra.mrb[44].mxu1 %vm306_vm2, %v4193_v15 }
 0xec6   :  { %3129 = vmatprep.mubr.msk.bf16.mxu1 %vm3626_vm0, %v3625_v0 }
 0xf96   :  { %v1557_v11 = vpop.f32.mrb[36].mxu0 }
 0xf97   :  { %v1609_v62 = vsel %vm221_vm11, %v1557_v11, -1e+10  ;;  %v3113_v5 = vpop.f32.mrb[37].mxu0 }
 0xf98   :  { %v1560_v6 = vpop.f32.mrb[38].mxu0  ;;  %v1603_v30 = vpop.f32.mrb[44].mxu1  ;;  %v1612_v31 = vsel %vm1611_vm12, %v1609_v62, -inf }
 0xf99   :  { %v1610_v32 = vsel %vm222_vm13, %v1603_v30, -1e+10  ;;  %v3119_v33 = vpop.f32.mrb[45].mxu1  ;;  %1613 = vmax.xlane.f32.xlu0 %v1612_v31  ;;  %v3114_v34 = vpop.f32.mrb[39].mxu0 }
 0xf9a   :  { %v1606_v35 = vpop.f32.mrb[46].mxu1  ;;  %v1615_v36 = vsel %vm1611_vm12, %v1610_v32, -inf }
 0xf9b   :  { %1616 = vmax.xlane.f32.xlu1 %v1615_v36  ;;  %v3120_v37 = vpop.f32.mrb[47].mxu1 }
 0xfac   :  { %1686 = vrot.lane.b32.xlu1 %v4181_v57, %s3627_s2 }
 0xfaf   :  { %1639 = vrot.lane.b32.xlu0 %v4183_v58, %s3627_s2 }
0x1026   :  { %v1614_v22 = vpop.xlane.xlu0 %1613 }
0x1027   :  { %v1618_v39 = vsub.f32 %v1609_v62, %v1614_v22 }
0x1028   :  { %v1617_v14 = vpop.xlane.xlu1 %1616 }
0x1029   :  { %v1620_v41 = vmul.f32 1.442695, %v1618_v39  ;;  %v1619_v44 = vsub.f32 %v1610_v32, %v1617_v14 }
0x102a   :  { %v1640_v46 = vpop.permute.xlu0 %1639 }
0x102b   :  { %3317 = vpow2.f32 %v1620_v41  ;;  %v1622_v47 = vmul.f32 1.442695, %v1619_v44  ;;  %3122 = vmatpush3.bf16.msra.mxu0 %v1640_v46 }
0x102c   :  { %v1687_v20 = vpop.permute.xlu1 %1686  ;;  %3133 = vmatprep.subr.bf16.mxu0 %v3625_v0 }
0x102d   :  { %3319 = vpow2.f32 %v1622_v47  ;;  %3128 = vmatpush3.bf16.msra.mxu1 %v1687_v20 }
0x102e   :  { %3139 = vmatprep.subr.bf16.mxu1 %v3625_v0 }
0x1035   :  { %v3318_v49 = vpop.eup %3317 }
0x1036   :  { %v1624_v50 = vsel %vm1611_vm12, %v3318_v49, 0.0 }
0x1037   :  { %v3320_v51 = vpop.eup %3319  ;;  %1625 = vadd.xlane.f32.xlu0 %v1624_v50 }
0x1038   :  { %v1627_v53 = vsel %vm1611_vm12, %v3320_v51, 0.0 }
0x1039   :  { %1628 = vadd.xlane.f32.xlu1 %v1627_v53 }
0x104a   :  { %1736 = vrot.lane.b32.xlu1 %v4183_v58, %s3629_s28 }
0x104d   :  { %1786 = vrot.lane.b32.xlu0 %v4181_v57, %s3629_s28 }
0x104e   :  { %1734 = vrot.lane.b32.xlu1 %v4191_v12, %s3629_s28 }
0x1051   :  { %1784 = vrot.lane.b32.xlu0 %v4193_v15, %s3629_s28 }
0x10c4   :  { %v1626_v54 = vpop.xlane.xlu0 %1625 }
0x10c5   :  { %3321 = vrcp.f32 %v1626_v54 }
0x10c6   :  { %v1629_v55 = vpop.xlane.xlu1 %1628 }
0x10c7   :  { %3323 = vrcp.f32 %v1629_v55 }
0x10c8   :  { %v1787_v7 = vpop.permute.xlu0 %1786 }
0x10c9   :  { %v1792_v10 = vsel %vm306_vm2, %v1787_v7, 0 }
0x10ca   :  { %v1737_v63 = vpop.permute.xlu1 %1736 }
0x10cb   :  { %v1742_v8 = vsel %vm306_vm2, %v1737_v63, 0 }
0x10cc   :  { %v1785_v16 = vpop.permute.xlu0 %1784 }
0x10ce   :  { %v1735_v13 = vpop.permute.xlu1 %1734 }
0x10cf   :  { %v3322_v59 = vpop.eup %3321 }
0x10d0   :  { %v1631_v60 = vmul.f32 %v3322_v59, %v3318_v49 }
0x10d1   :  { %v3324_v61 = vpop.eup %3323 }
0x10d2   :  { %1634 = vst.msk [vmem:[#allocation20] sm:$0xff] %vm1611_vm12, %v1631_v60  ;;  %v1633_v1 = vmul.f32 %v3324_v61, %v3320_v51  ;;  %v1636_v2 = vpack.c.bf16 %v1631_v60, %v1631_v60 }
0x10d4   :  { %1635 = vst.msk [vmem:[#allocation20 + $0x8] sm:$0xff] %vm1611_vm12, %v1633_v1  ;;  %3124 = vmatmul.mubr.msk.bf16.vlgmr.msra.gmra.mrb[40].mxu0 %vm1611_vm12, %v1636_v2  ;;  %v1637_v9 = vpack.c.bf16 %v1633_v1, %v1633_v1 }
0x10d5   :  { %3134 = vmatpush3.bf16.xpose.msra.mxu0 %v1742_v8  ;;  %3135 = vmatprep.mubr.msk.bf16.mxu0 %vm3626_vm0, %v3625_v0 }
0x10d6   :  { %3130 = vmatmul.mubr.msk.bf16.vlgmr.msra.gmra.mrb[48].mxu1 %vm1611_vm12, %v1637_v9  ;;  %3145 = vmatprep.subr.bf16.mxu0 %v3625_v0 }
0x10d7   :  { %3140 = vmatpush3.bf16.xpose.msra.mxu1 %v1792_v10  ;;  %3141 = vmatprep.mubr.msk.bf16.mxu1 %vm3626_vm0, %v3625_v0 }
0x10d8   :  { %3151 = vmatprep.subr.bf16.mxu1 %v3625_v0 }
0x10dc   :  { %3136 = vmatmul.mubr.msk.bf16.vlgmr.msra.gmra.mrb[44].mxu0 %vm306_vm2, %v1735_v13 }
0x10dd   :  { %3147 = vmatprep.mubr.msk.bf16.mxu0 %vm3626_vm0, %v3625_v0 }
0x10de   :  { %3142 = vmatmul.mubr.msk.bf16.vlgmr.msra.gmra.mrb[52].mxu1 %vm306_vm2, %v1785_v16 }
0x10df   :  { %3153 = vmatprep.mubr.msk.bf16.mxu1 %vm3626_vm0, %v3625_v0 }
0x11a7   :  { %v1679_v17 = vpop.f32.mrb[40].mxu0 }
0x11a8   :  { %v3125_v18 = vpop.f32.mrb[41].mxu0 }
0x11a9   :  { %v1682_v19 = vpop.f32.mrb[42].mxu0  ;;  %v1726_v21 = vpop.f32.mrb[48].mxu1 }
0x11aa   :  { %v1732_v3 = vpack.c.bf16 %v1726_v21, %v1679_v17  ;;  %v3126_v25 = vpop.f32.mrb[43].mxu0  ;;  %v3131_v4 = vpop.f32.mrb[49].mxu1 }
0x11ab   :  { %v1729_v27 = vpop.f32.mrb[50].mxu1 }
0x11ac   :  { %1733 = vst.msk [vmem:[#allocation2] sm:$0xff] %vm306_vm2, %v1732_v3  ;;  %v3132_v23 = vpop.f32.mrb[51].mxu1 }
0x11af   :  { %v1778_v24 = vpop.f32.mrb[44].mxu0 }
0x11b0   :  { %v1834_v26 = vsel %vm221_vm11, %v1778_v24, -1e+10  ;;  %v3137_v11 = vpop.f32.mrb[45].mxu0 }
0x11b1   :  { %v1781_v62 = vpop.f32.mrb[46].mxu0  ;;  %v1828_v5 = vpop.f32.mrb[52].mxu1  ;;  %v1836_v6 = vsel %vm1611_vm12, %v1834_v26, -inf }
0x11b2   :  { %v1835_v30 = vsel %vm222_vm13, %v1828_v5, -1e+10  ;;  %v3143_v31 = vpop.f32.mrb[53].mxu1  ;;  %1837 = vmax.xlane.f32.xlu1 %v1836_v6  ;;  %v3138_v32 = vpop.f32.mrb[47].mxu0 }
0x11b3   :  { %v1831_v33 = vpop.f32.mrb[54].mxu1  ;;  %v1839_v34 = vsel %vm1611_vm12, %v1835_v30, -inf }
0x11b4   :  { %1840 = vmax.xlane.f32.xlu0 %v1839_v34  ;;  %v3144_v35 = vpop.f32.mrb[55].mxu1 }
0x11c3   :  { %1917 = vrot.lane.b32.xlu1 %v4181_v57, %s3628_s9 }
0x11ca   :  { %1871 = vrot.lane.b32.xlu0 %v4183_v58, %s3628_s9 }
0x123f   :  { %v1838_v36 = vpop.xlane.xlu1 %1837 }
0x1240   :  { %v1842_v37 = vsub.f32 %v1834_v26, %v1838_v36 }
0x1241   :  { %v1841_v22 = vpop.xlane.xlu0 %1840 }
0x1242   :  { %v1844_v39 = vmul.f32 1.442695, %v1842_v37  ;;  %v1843_v14 = vsub.f32 %v1835_v30, %v1841_v22 }
0x1243   :  { %v1918_v41 = vpop.permute.xlu1 %1917 }
0x1244   :  { %3325 = vpow2.f32 %v1844_v39  ;;  %v1846_v44 = vmul.f32 1.442695, %v1843_v14  ;;  %3152 = vmatpush3.bf16.msra.mxu1 %v1918_v41 }
0x1245   :  { %v1872_v46 = vpop.permute.xlu0 %1871  ;;  %3163 = vmatprep.subr.bf16.mxu1 %v3625_v0 }
0x1246   :  { %3327 = vpow2.f32 %v1846_v44  ;;  %3146 = vmatpush3.bf16.msra.mxu0 %v1872_v46 }
0x1247   :  { %3157 = vmatprep.subr.bf16.mxu0 %v3625_v0 }
0x124e   :  { %v3326_v47 = vpop.eup %3325 }
0x124f   :  { %v1848_v20 = vsel %vm1611_vm12, %v3326_v47, 0.0 }
0x1250   :  { %v3328_v49 = vpop.eup %3327  ;;  %1849 = vadd.xlane.f32.xlu0 %v1848_v20 }
0x1251   :  { %v1851_v50 = vsel %vm1611_vm12, %v3328_v49, 0.0 }
0x1252   :  { %1852 = vadd.xlane.f32.xlu1 %v1851_v50 }
0x1263   :  { %1971 = vrot.lane.b32.xlu1 %v4183_v58, %s3632_s22 }
0x1266   :  { %2021 = vrot.lane.b32.xlu0 %v4181_v57, %s3632_s22 }
0x1267   :  { %1969 = vrot.lane.b32.xlu1 %v4191_v12, %s3632_s22 }
0x126a   :  { %2019 = vrot.lane.b32.xlu0 %v4193_v15, %s3632_s22 }
0x12dd   :  { %v1850_v51 = vpop.xlane.xlu0 %1849 }
0x12de   :  { %3329 = vrcp.f32 %v1850_v51 }
0x12df   :  { %v1853_v53 = vpop.xlane.xlu1 %1852 }
0x12e0   :  { %3331 = vrcp.f32 %v1853_v53 }
0x12e1   :  { %v2022_v1 = vpop.permute.xlu0 %2021 }
0x12e2   :  { %v2027_v8 = vsel %vm306_vm2, %v2022_v1, 0 }
0x12e3   :  { %v1972_v60 = vpop.permute.xlu1 %1971 }
0x12e4   :  { %v1977_v2 = vsel %vm306_vm2, %v1972_v60, 0 }
0x12e5   :  { %v2020_v10 = vpop.permute.xlu0 %2019 }
0x12e7   :  { %v1970_v9 = vpop.permute.xlu1 %1969 }
0x12e8   :  { %v3330_v54 = vpop.eup %3329 }
0x12e9   :  { %v4278_v55 = vmul.f32 %v3330_v54, %v3326_v47 }
0x12ea   :  { %v3332_v59 = vpop.eup %3331 }
0x12eb   :  { %v4280_v61 = vmul.f32 %v3332_v59, %v3328_v49  ;;  %v1869_v63 = vpack.c.bf16 %v4278_v55, %v4278_v55 }
0x12ed   :  { %3148 = vmatmul.mubr.msk.bf16.vlgmr.msra.gmra.mrb[48].mxu0 %vm1611_vm12, %v1869_v63  ;;  %v1870_v7 = vpack.c.bf16 %v4280_v61, %v4280_v61 }
0x12ee   :  { %3158 = vmatpush3.bf16.xpose.msra.mxu0 %v1977_v2  ;;  %3159 = vmatprep.mubr.msk.bf16.mxu0 %vm3626_vm0, %v3625_v0 }
0x12ef   :  { %3154 = vmatmul.mubr.msk.bf16.vlgmr.msra.gmra.mrb[56].mxu1 %vm1611_vm12, %v1870_v7  ;;  %3169 = vmatprep.subr.bf16.mxu0 %v3625_v0 }
0x12f0   :  { %3164 = vmatpush3.bf16.xpose.msra.mxu1 %v2027_v8  ;;  %3165 = vmatprep.mubr.msk.bf16.mxu1 %vm3626_vm0, %v3625_v0 }
0x12f1   :  { %3175 = vmatprep.subr.bf16.mxu1 %v3625_v0 }
0x12f5   :  { %3160 = vmatmul.mubr.msk.bf16.vlgmr.msra.gmra.mrb[52].mxu0 %vm306_vm2, %v1970_v9 }
0x12f6   :  { %3171 = vmatprep.mubr.msk.bf16.mxu0 %vm3626_vm0, %v3625_v0 }
0x12f7   :  { %3166 = vmatmul.mubr.msk.bf16.vlgmr.msra.gmra.mrb[60].mxu1 %vm306_vm2, %v2020_v10 }
0x12f8   :  { %3177 = vmatprep.mubr.msk.bf16.mxu1 %vm3626_vm0, %v3625_v0 }
0x13c0   :  { %v4302_v13 = vpop.f32.mrb[48].mxu0 }
0x13c1   :  { %v3149_v16 = vpop.f32.mrb[49].mxu0 }
0x13c2   :  { %v1914_v17 = vpop.f32.mrb[50].mxu0  ;;  %v4304_v18 = vpop.f32.mrb[56].mxu1 }
0x13c3   :  { %v1963_v19 = vpack.c.bf16 %v4304_v18, %v4302_v13  ;;  %v3150_v21 = vpop.f32.mrb[51].mxu0  ;;  %v3155_v3 = vpop.f32.mrb[57].mxu1 }
0x13c4   :  { %v1960_v25 = vpop.f32.mrb[58].mxu1 }
0x13c5   :  { %v3156_v4 = vpop.f32.mrb[59].mxu1 }
0x13c8   :  { %v2013_v27 = vpop.f32.mrb[52].mxu0 }
0x13c9   :  { %v2069_v23 = vsel %vm221_vm11, %v2013_v27, -1e+10  ;;  %v3161_v24 = vpop.f32.mrb[53].mxu0 }
0x13ca   :  { %v2016_v26 = vpop.f32.mrb[54].mxu0  ;;  %v2063_v11 = vpop.f32.mrb[60].mxu1  ;;  %v2071_v62 = vsel %vm1611_vm12, %v2069_v23, -inf }
0x13cb   :  { %v2070_v5 = vsel %vm222_vm13, %v2063_v11, -1e+10  ;;  %v3167_v6 = vpop.f32.mrb[61].mxu1  ;;  %2072 = vmax.xlane.f32.xlu1 %v2071_v62  ;;  %v3162_v30 = vpop.f32.mrb[55].mxu0 }
0x13cc   :  { %v2066_v31 = vpop.f32.mrb[62].mxu1  ;;  %v2074_v32 = vsel %vm1611_vm12, %v2070_v5, -inf }
0x13cd   :  { %2075 = vmax.xlane.f32.xlu0 %v2074_v32  ;;  %v3168_v33 = vpop.f32.mrb[63].mxu1 }
0x13dc   :  { %2152 = vrot.lane.b32.xlu1 %v4181_v57, %s3631_s27 }
0x13e3   :  { %2106 = vrot.lane.b32.xlu0 %v4183_v58, %s3631_s27 }
0x1458   :  { %v2073_v34 = vpop.xlane.xlu1 %2072 }
0x1459   :  { %v2077_v35 = vsub.f32 %v2069_v23, %v2073_v34 }
0x145a   :  { %v2076_v36 = vpop.xlane.xlu0 %2075 }
0x145b   :  { %v2079_v37 = vmul.f32 1.442695, %v2077_v35  ;;  %v2078_v22 = vsub.f32 %v2070_v5, %v2076_v36 }
0x145c   :  { %v2153_v39 = vpop.permute.xlu1 %2152 }
0x145d   :  { %3333 = vpow2.f32 %v2079_v37  ;;  %v2081_v14 = vmul.f32 1.442695, %v2078_v22  ;;  %3176 = vmatpush3.bf16.msra.mxu1 %v2153_v39 }
0x145e   :  { %v2107_v41 = vpop.permute.xlu0 %2106  ;;  %3187 = vmatprep.subr.bf16.mxu1 %v3625_v0 }
0x145f   :  { %3335 = vpow2.f32 %v2081_v14  ;;  %3170 = vmatpush3.bf16.msra.mxu0 %v2107_v41 }
0x1460   :  { %3181 = vmatprep.subr.bf16.mxu0 %v3625_v0 }
0x1467   :  { %v3334_v44 = vpop.eup %3333 }
0x1468   :  { %v2083_v46 = vsel %vm1611_vm12, %v3334_v44, 0.0 }
0x1469   :  { %v3336_v47 = vpop.eup %3335  ;;  %2084 = vadd.xlane.f32.xlu0 %v2083_v46 }
0x146a   :  { %v2086_v20 = vsel %vm1611_vm12, %v3336_v47, 0.0 }
0x146b   :  { %2087 = vadd.xlane.f32.xlu1 %v2086_v20 }
0x147c   :  { %2206 = vrot.lane.b32.xlu1 %v4183_v58, %s3635_s30 }
0x147f   :  { %2256 = vrot.lane.b32.xlu0 %v4181_v57, %s3635_s30 }
0x1480   :  { %2204 = vrot.lane.b32.xlu1 %v4191_v12, %s3635_s30 }
0x1483   :  { %2254 = vrot.lane.b32.xlu0 %v4193_v15, %s3635_s30 }
0x14f6   :  { %v2085_v49 = vpop.xlane.xlu0 %2084 }
0x14f7   :  { %3337 = vrcp.f32 %v2085_v49 }
0x14f8   :  { %v2088_v50 = vpop.xlane.xlu1 %2087 }
0x14f9   :  { %3339 = vrcp.f32 %v2088_v50 }
0x14fa   :  { %v2257_v1 = vpop.permute.xlu0 %2256 }
0x14fb   :  { %v2262_v2 = vsel %vm306_vm2, %v2257_v1, 0 }
0x14fc   :  { %v2207_v59 = vpop.permute.xlu1 %2206 }
0x14fd   :  { %v2212_v12 = vsel %vm306_vm2, %v2207_v59, 0  ;;  %v3273_v59 = vld [vmem:[%s4549_s12] sm:$0xff]  }
0x14fe   :  { %v2255_v8 = vpop.permute.xlu0 %2254 }
0x1500   :  { %v2205_v7 = vpop.permute.xlu1 %2204 }
0x1501   :  { %v3338_v51 = vpop.eup %3337 }
0x1502   :  { %v4330_v53 = vmul.f32 %v3338_v51, %v3334_v44 }
0x1503   :  { %v3340_v54 = vpop.eup %3339 }
0x1504   :  { %v4332_v60 = vmul.f32 %v3340_v54, %v3336_v47  ;;  %v2104_v63 = vpack.c.bf16 %v4330_v53, %v4330_v53 }
0x1506   :  { %3172 = vmatmul.mubr.msk.bf16.vlgmr.msra.gmra.mrb[56].mxu0 %vm1611_vm12, %v2104_v63  ;;  %v2105_v15 = vpack.c.bf16 %v4332_v60, %v4332_v60  ;;  %v3274_v63 = vld [vmem:[%s4549_s12 + $0x8] sm:$0xff]  }
0x1507   :  { %3182 = vmatpush3.bf16.xpose.msra.mxu0 %v2212_v12  ;;  %3183 = vmatprep.mubr.msk.bf16.mxu0 %vm3626_vm0, %v3625_v0 }
0x1508   :  { %3178 = vmatmul.mubr.msk.bf16.vlgmr.msra.gmra.mrb[64].mxu1 %vm1611_vm12, %v2105_v15  ;;  %3193 = vmatprep.subr.bf16.mxu0 %v3625_v0 }
0x1509   :  { %3188 = vmatpush3.bf16.xpose.msra.mxu1 %v2262_v2  ;;  %3189 = vmatprep.mubr.msk.bf16.mxu1 %vm3626_vm0, %v3625_v0 }
0x150a   :  { %3199 = vmatprep.subr.bf16.mxu1 %v3625_v0 }
0x150e   :  { %3184 = vmatmul.mubr.msk.bf16.vlgmr.msra.gmra.mrb[60].mxu0 %vm306_vm2, %v2205_v7 }
0x150f   :  { %3195 = vmatprep.mubr.msk.bf16.mxu0 %vm3626_vm0, %v3625_v0 }
0x1510   :  { %3190 = vmatmul.mubr.msk.bf16.vlgmr.msra.gmra.mrb[68].mxu1 %vm306_vm2, %v2255_v8 }
0x1511   :  { %3201 = vmatprep.mubr.msk.bf16.mxu1 %vm3626_vm0, %v3625_v0 }
0x15d9   :  { %v2146_v9 = vpop.f32.mrb[56].mxu0 }
0x15da   :  { %v3173_v10 = vpop.f32.mrb[57].mxu0 }
0x15db   :  { %v2149_v16 = vpop.f32.mrb[58].mxu0  ;;  %v2192_v17 = vpop.f32.mrb[64].mxu1 }
0x15dc   :  { %v2198_v21 = vpack.c.bf16 %v2192_v17, %v2146_v9  ;;  %v3174_v3 = vpop.f32.mrb[59].mxu0  ;;  %v3179_v25 = vpop.f32.mrb[65].mxu1 }
0x15dd   :  { %v2195_v4 = vpop.f32.mrb[66].mxu1  ;;  %v2865_v3 = vld [vmem:[%s4550_s13] ss:$0 sm:$0xff] }
0x15de   :  { %v3180_v27 = vpop.f32.mrb[67].mxu1 }
0x15e1   :  { %v2248_v23 = vpop.f32.mrb[60].mxu0 }
0x15e2   :  { %v2304_v24 = vsel %vm221_vm11, %v2248_v23, -1e+10  ;;  %v3185_v26 = vpop.f32.mrb[61].mxu0 }
0x15e3   :  { %v2251_v11 = vpop.f32.mrb[62].mxu0  ;;  %v2298_v62 = vpop.f32.mrb[68].mxu1  ;;  %v2306_v5 = vsel %vm1611_vm12, %v2304_v24, -inf }
0x15e4   :  { %v2305_v6 = vsel %vm222_vm13, %v2298_v62, -1e+10  ;;  %v3191_v30 = vpop.f32.mrb[69].mxu1  ;;  %2307 = vmax.xlane.f32.xlu1 %v2306_v5  ;;  %v3186_v31 = vpop.f32.mrb[63].mxu0 }
0x15e5   :  { %v2301_v32 = vpop.f32.mrb[70].mxu1  ;;  %v2309_v33 = vsel %vm1611_vm12, %v2305_v6, -inf }
0x15e6   :  { %2310 = vmax.xlane.f32.xlu0 %v2309_v33  ;;  %v3192_v34 = vpop.f32.mrb[71].mxu1 }
0x1671   :  { %v2308_v35 = vpop.xlane.xlu1 %2307 }
0x1672   :  { %v2312_v36 = vsub.f32 %v2304_v24, %v2308_v35 }
0x1673   :  { %v2311_v28 = vpop.xlane.xlu0 %2310 }
0x1674   :  { %v2314_v37 = vmul.f32 1.442695, %v2312_v36  ;;  %v2313_v22 = vsub.f32 %v2305_v6, %v2311_v28 }
0x1676   :  { %3341 = vpow2.f32 %v2314_v37  ;;  %v2316_v39 = vmul.f32 1.442695, %v2313_v22  ;;  %v3275_v22 = vld [vmem:[#allocation15] sm:$0xff]  }
0x1678   :  { %3343 = vpow2.f32 %v2316_v39  ;;  %v3277_v39 = vld [vmem:[%s4553_s16] sm:$0xff]  }
0x1680   :  { %v3342_v14 = vpop.eup %3341 }
0x1681   :  { %v2318_v29 = vsel %vm1611_vm12, %v3342_v14, 0.0 }
0x1682   :  { %v3344_v41 = vpop.eup %3343  ;;  %2319 = vadd.xlane.f32.xlu0 %v2318_v29 }
0x1683   :  { %v2321_v44 = vsel %vm1611_vm12, %v3344_v41, 0.0 }
0x1684   :  { %2322 = vadd.xlane.f32.xlu1 %v2321_v44 }
0x1695   :  { %2387 = vrot.lane.b32.xlu1 %v4181_v57, %s3634_s0 }
0x1698   :  { %2341 = vrot.lane.b32.xlu0 %v4183_v58, %s3634_s0 }
0x1699   :  { %1965 = vrot.lane.b32.xlu1 %v1963_v19, %s3637_s7 }
0x169c   :  { %2200 = vrot.lane.b32.xlu0 %v2198_v21, %s3638_s14 }
0x170f   :  { %v2320_v46 = vpop.xlane.xlu0 %2319 }
0x1710   :  { %3345 = vrcp.f32 %v2320_v46 }
0x1711   :  { %v2323_v47 = vpop.xlane.xlu1 %2322 }
0x1712   :  { %3347 = vrcp.f32 %v2323_v47 }
0x1713   :  { %v2342_v20 = vpop.permute.xlu0 %2341 }
0x1714   :  { %3194 = vmatpush3.bf16.msra.mxu0 %v2342_v20 }
0x1715   :  { %v2388_v49 = vpop.permute.xlu1 %2387  ;;  %3205 = vmatprep.subr.bf16.mxu0 %v3625_v0 }
0x1716   :  { %3200 = vmatpush3.bf16.msra.mxu1 %v2388_v49 }
0x1717   :  { %3213 = vmatprep.subr.bf16.mxu1 %v3625_v0  ;;  %v2201_v50 = vpop.permute.xlu0 %2200 }
0x1719   :  { %v1966_v57 = vpop.permute.xlu1 %1965 }
0x171a   :  { %v3346_v58 = vpop.eup %3345  ;;  %1968 = vst.msk [vmem:[#allocation2] sm:$0xff] %vm661_vm6, %v1966_v57 }
0x171b   :  { %v4374_v13 = vmul.f32 %v3346_v58, %v3342_v14  ;;  %2203 = vst.msk [vmem:[#allocation2] sm:$0xff] %vm900_vm7, %v2201_v50  ;;  %v3278_v14 = vld [vmem:[%s4553_s16 + $0x8] sm:$0xff]   ;;  %v2869_v58 = vld [vmem:[%s4557_s20] ss:$0 sm:$0xff] }
0x171c   :  { %v3348_v18 = vpop.eup %3347 }
0x171d   :  { %v4377_v19 = vmul.f32 %v3348_v18, %v3344_v41  ;;  %v2339_v51 = vpack.c.bf16 %v4374_v13, %v4374_v13 }
0x171f   :  { %3196 = vmatmul.mubr.msk.bf16.vlgmr.msra.gmra.mrb[64].mxu0 %vm1611_vm12, %v2339_v51  ;;  %v2340_v54 = vpack.c.bf16 %v4377_v19, %v4377_v19 }
0x1720   :  { %3209 = vmatprep.mubr.msk.bf16.mxu0 %vm3626_vm0, %v3625_v0  ;;  %3206 = vmatpush3.bf16.msra.mxu0 %v3273_v59 }
0x1721   :  { %3202 = vmatmul.mubr.msk.bf16.vlgmr.msra.gmra.mrb[72].mxu1 %vm1611_vm12, %v2340_v54  ;;  %3207 = vmatprep.subr.bf16.mxu0 %v3625_v0  ;;  %v2870_v54 = vld [vmem:[%s4558_s21] ss:$0 sm:$0xff] }
0x1722   :  { %3217 = vmatprep.mubr.msk.bf16.mxu1 %vm3626_vm0, %v3625_v0  ;;  %3214 = vmatpush3.bf16.msra.mxu1 %v3275_v22 }
0x1723   :  { %3215 = vmatprep.subr.bf16.mxu1 %v3625_v0 }
0x1724   :  { %3208 = vmatpush3.bf16.msra.mxu0 %v3274_v63 }
0x1725   :  { %3221 = vmatprep.subr.bf16.mxu0 %v3625_v0 }
0x17f2   :  { %v2381_v1 = vpop.f32.mrb[64].mxu0 }
0x17f3   :  { %v3197_v12 = vpop.f32.mrb[65].mxu0 }
0x17f4   :  { %v2384_v15 = vpop.f32.mrb[66].mxu0  ;;  %v2427_v2 = vpop.f32.mrb[72].mxu1 }
0x17f5   :  { %v2433_v7 = vpack.c.bf16 %v2427_v2, %v2381_v1  ;;  %v3198_v8 = vpop.f32.mrb[67].mxu0  ;;  %v3203_v9 = vpop.f32.mrb[73].mxu1  ;;  %v3279_v15 = vld [vmem:[%s4553_s16 + $0x10] sm:$0xff]   ;;  %v3280_v2 = vld [vmem:[%s4553_s16 + $0x18] sm:$0xff]   ;;  %s3641_s16 = smov [#allocation18]  }
0x17f6   :  { %v2430_v10 = vpop.f32.mrb[74].mxu1 }
0x17f7   :  { %v3204_v16 = vpop.f32.mrb[75].mxu1  ;;  %2435 = vrot.lane.b32.xlu1 %v2433_v7, %s3639_s24  ;;  %v2871_v7 = vld [vmem:[%s4552_s15] ss:$0 sm:$0xff]  ;;  %s4608_s15 = smov 48  }
0x1869   :  { %v2436_v17 = vpop.permute.xlu1 %2435 }
0x186a   :  { %2438 = vst.msk [vmem:[#allocation2] sm:$0xff] %vm1139_vm8, %v2436_v17 }
0x1871   :  { %v2439_v21 = vld [vmem:[#allocation2] sm:$0xff] }
0x1872   :  { %3210 = vmatmul.mubr.msk.bf16.vlgmr.msra.gmra.mrb[68].mxu0 %vm246_vm1, %v2439_v21 }
0x1873   :  { %3229 = vmatprep.mubr.msk.bf16.mxu0 %vm3626_vm0, %v3625_v0  ;;  %3222 = vmatpush3.bf16.msra.mxu0 %v3277_v39 }
0x1874   :  { %3223 = vmatprep.subr.bf16.mxu0 %v3625_v0 }
0x1877   :  { %3224 = vmatpush3.bf16.msra.mxu0 %v3278_v14 }
0x1878   :  { %3225 = vmatprep.subr.bf16.mxu0 %v3625_v0 }
0x187b   :  { %3226 = vmatpush3.bf16.msra.mxu0 %v3279_v15 }
0x187c   :  { %3227 = vmatprep.subr.bf16.mxu0 %v3625_v0  ;;  %v2875_v0 = vld [vmem:[%s4554_s17] ss:$0 sm:$0xff]  ;;  %s2773_s17 = sshll.u32 %s3641_s16, 4  ;;  %s2774_s17 = int_to_ptr.vmem [resolvable:$true] %s2773_s17 }
0x187d   :  { %p3538_p9 = scmp.lt.s32.totalorder %s2774_s17, %s2774_s17 }
0x187f   :  { %3228 = vmatpush3.bf16.msra.mxu0 %v3280_v2 }
0x1945   :  { %v2500_v25 = vpop.f32.mrb[68].mxu0 }
0x1946   :  { %v2501_v4 = vadd.f32 %v2865_v3, %v2500_v25  ;;  %v3211_v27 = vpop.f32.mrb[69].mxu0 }
0x1947   :  { %v2503_v23 = vpop.f32.mrb[70].mxu0 }
0x1948   :  { %v2504_v24 = vadd.f32 %v2865_v3, %v2503_v23  ;;  %v3212_v26 = vpop.f32.mrb[71].mxu0  ;;  %v2507_v11 = vadd.f32 %v2501_v4, %v4172_v42 }
0x194a   :  { %v2511_v62 = vsel %vm246_vm1, %v2507_v11, 0.0  ;;  %v2508_v5 = vadd.f32 %v2504_v24, %v4174_v43  ;;  %v3276_v43 = vld [vmem:[#allocation15 + $0x8] sm:$0xff]  }
0x194b   :  { %2512 = vadd.xlane.f32.xlu0 %v2511_v62  ;;  %3216 = vmatpush3.bf16.msra.mxu1 %v3276_v43 }
0x194c   :  { %v2514_v6 = vsel %vm246_vm1, %v2508_v5, 0.0 }
0x194d   :  { %2515 = vadd.xlane.f32.xlu1 %v2514_v6 }
0x19d8   :  { %v2513_v30 = vpop.xlane.xlu0 %2512 }
0x19d9   :  { %v2517_v31 = vmul.f32 0.03125, %v2513_v30 }
0x19da   :  { %v2516_v32 = vpop.xlane.xlu1 %2515 }
0x19db   :  { %v2519_v33 = vsub.f32 %v2507_v11, %v2517_v31  ;;  %v2518_v34 = vmul.f32 0.03125, %v2516_v32 }
0x19dd   :  { %v2520_v35 = vsub.f32 %v2508_v5, %v2518_v34  ;;  %v2521_v36 = vmul.f32 %v2519_v33, %v2519_v33 }
0x19df   :  { %v2523_v28 = vsel %vm246_vm1, %v2521_v36, 0.0  ;;  %v2522_v37 = vmul.f32 %v2520_v35, %v2520_v35 }
0x19e0   :  { %2524 = vadd.xlane.f32.xlu0 %v2523_v28 }
0x19e1   :  { %v2526_v42 = vsel %vm246_vm1, %v2522_v37, 0.0 }
0x19e4   :  { %2527 = vadd.xlane.f32.xlu0 %v2526_v42 }
0x1a6d   :  { %v2525_v29 = vpop.xlane.xlu0 %2524 }
0x1a6e   :  { %v2529_v41 = vmul.f32 0.03125, %v2525_v29 }
0x1a70   :  { %v2531_v44 = vadd.f32 1e-05, %v2529_v41 }
0x1a71   :  { %v2528_v46 = vpop.xlane.xlu0 %2527 }
0x1a72   :  { %3349 = vrsqrt.f32 %v2531_v44  ;;  %v2530_v47 = vmul.f32 0.03125, %v2528_v46 }
0x1a74   :  { %v2532_v20 = vadd.f32 1e-05, %v2530_v47 }
0x1a76   :  { %3351 = vrsqrt.f32 %v2532_v20 }
0x1a7c   :  { %v3350_v49 = vpop.eup %3349 }
0x1a7d   :  { %v2535_v57 = vmul.f32 %v3350_v49, %v2519_v33 }
0x1a7f   :  { %v2543_v18 = vmul.f32 %v2869_v58, %v2535_v57 }
0x1a80   :  { %v3352_v50 = vpop.eup %3351 }
0x1a81   :  { %v2536_v51 = vmul.f32 %v3352_v50, %v2520_v35  ;;  %v2551_v63 = vadd.f32 %v2870_v54, %v2543_v18 }
0x1a83   :  { %v2544_v59 = vmul.f32 %v2869_v58, %v2536_v51 }
0x1a85   :  { %v2552_v1 = vadd.f32 %v2870_v54, %v2544_v59 }
0x1a87   :  { %v2553_v12 = vpack.c.bf16 %v2552_v1, %v2551_v63 }
0x1a89   :  { %3218 = vmatmul.mubr.msk.bf16.vlgmr.msra.gmra.mrb[76].mxu1 %vm246_vm1, %v2553_v12 }
0x1b5c   :  { %v2614_v8 = vpop.f32.mrb[76].mxu1 }
0x1b5d   :  { %v2615_v9 = vadd.f32 %v2871_v7, %v2614_v8  ;;  %v3219_v10 = vpop.f32.mrb[77].mxu1 }
0x1b5e   :  { %v2617_v16 = vpop.f32.mrb[78].mxu1 }
0x1b5f   :  { %v2618_v17 = vadd.f32 %v2871_v7, %v2617_v16  ;;  %v3220_v21 = vpop.f32.mrb[79].mxu1  ;;  %v2621_v3 = vmax.f32 %v2615_v9, 0.0 }
0x1b61   :  { %v2622_v25 = vmax.f32 %v2618_v17, 0.0 }
0x1b63   :  { %v2623_v4 = vpack.c.bf16 %v2622_v25, %v2621_v3 }
0x1b65   :  { %3230 = vmatmul.mubr.msk.bf16.vlgmr.msra.gmra.mrb[72].mxu0 %vm2663_vm14, %v2623_v4 }
0x1c38   :  { %v2701_v27 = vpop.f32.mrb[72].mxu0 }
0x1c39   :  { %v2702_v23 = vadd.f32 %v2875_v0, %v2701_v27  ;;  %v3231_v24 = vpop.f32.mrb[73].mxu0 }
0x1c3a   :  { %v2704_v26 = vpop.f32.mrb[74].mxu0 }
0x1c3b   :  { %v2705_v11 = vadd.f32 %v2875_v0, %v2704_v26  ;;  %v3232_v62 = vpop.f32.mrb[75].mxu0  ;;  %v2708_v5 = vadd.f32 %v2702_v23, %v2551_v63 }
0x1c3d   :  { %v2712_v6 = vsel %vm246_vm1, %v2708_v5, 0.0  ;;  %v2709_v30 = vadd.f32 %v2705_v11, %v2552_v1 }
0x1c3e   :  { %2713 = vadd.xlane.f32.xlu1 %v2712_v6 }
0x1c3f   :  { %v2715_v31 = vsel %vm246_vm1, %v2709_v30, 0.0 }
0x1c40   :  { %2716 = vadd.xlane.f32.xlu0 %v2715_v31 }
0x1c4f   :  { %655 = vrot.lane.b32.xlu1 %v4018_v52, %s3637_s7 }
0x1c53   :  { %894 = vrot.lane.b32.xlu1 %v4072_v45, %s3638_s14 }
0x1c56   :  { %657 = vrot.lane.b32.xlu0 %v4023_v56, %s3637_s7 }
0x1c57   :  { %896 = vrot.lane.b32.xlu1 %v4077_v48, %s3638_s14 }
0x1c5a   :  { %1860 = vrot.lane.b32.xlu0 %v4278_v55, %s3638_s14 }
0x1c5b   :  { %1862 = vrot.lane.b32.xlu1 %v4280_v61, %s3638_s14  ;;  %s3533_s14 = scalar_lea.vmem %s2774_s17, 256 }
0x1c5c   :  { %p3534_p8 = scmp.ne.s32.totalorder %s2774_s17, %s3533_s14  ;;  %p3539_p10 = scmp.lt.s32.totalorder %s3533_s14, %s3533_s14 }
0x1c5e   :  { %1133 = vrot.lane.b32.xlu0 %v4117_v38, %s3639_s24  ;;  %p3540_p11 = por %p3539_p10, %p3538_p9 }
0x1c5f   :  { %1135 = vrot.lane.b32.xlu1 %v4121_v40, %s3639_s24 }
0x1c60   :  { %p3541_p12 = pnand %p3540_p11, %p3534_p8 }
0x1ccb   :  { %v2714_v52 = vpop.xlane.xlu1 %2713 }
0x1ccc   :  { %v2718_v45 = vmul.f32 0.03125, %v2714_v52 }
0x1ccd   :  { %v2717_v32 = vpop.xlane.xlu0 %2716 }
0x1cce   :  { %v4458_v33 = vsub.f32 %v2708_v5, %v2718_v45  ;;  %v2719_v56 = vmul.f32 0.03125, %v2717_v32 }
0x1ccf   :  { %v656_v34 = vpop.permute.xlu1 %655 }
0x1cd0   :  { %v4460_v48 = vsub.f32 %v2709_v30, %v2719_v56  ;;  %662 = vst.msk [vmem:[#allocation18] sm:$0xff] %vm661_vm6, %v656_v34  ;;  %v2722_v55 = vmul.f32 %v4458_v33, %v4458_v33 }
0x1cd1   :  { %v658_v61 = vpop.permute.xlu0 %657 }
0x1cd2   :  { %663 = vst.msk [vmem:[#allocation18 + $0x8] sm:$0xff] %vm661_vm6, %v658_v61  ;;  %v2724_v38 = vsel %vm246_vm1, %v2722_v55, 0.0  ;;  %v2723_v40 = vmul.f32 %v4460_v48, %v4460_v48 }
0x1cd3   :  { %2725 = vadd.xlane.f32.xlu1 %v2724_v38  ;;  %v895_v35 = vpop.permute.xlu1 %894 }
0x1cd4   :  { %901 = vst.msk [vmem:[#allocation18] sm:$0xff] %vm900_vm7, %v895_v35  ;;  %v2727_v36 = vsel %vm246_vm1, %v2723_v40, 0.0 }
0x1cd5   :  { %2728 = vadd.xlane.f32.xlu0 %v2727_v36  ;;  %v1861_v28 = vpop.permute.xlu0 %1860 }
0x1cd6   :  { %1867 = vst.msk [vmem:[#allocation20] sm:$0xff] %vm1866_vm15, %v1861_v28 }
0x1cd7   :  { %v897_v37 = vpop.permute.xlu1 %896 }
0x1cd8   :  { %902 = vst.msk [vmem:[#allocation18 + $0x8] sm:$0xff] %vm900_vm7, %v897_v37 }
0x1cd9   :  { %v1134_v42 = vpop.permute.xlu0 %1133 }
0x1cda   :  { %1140 = vst.msk [vmem:[#allocation18] sm:$0xff] %vm1139_vm8, %v1134_v42 }
0x1cdb   :  { %v1863_v22 = vpop.permute.xlu1 %1862 }
0x1cdc   :  { %1868 = vst.msk [vmem:[#allocation20 + $0x8] sm:$0xff] %vm1866_vm15, %v1863_v22 }
0x1cdf   :  { %v1136_v43 = vpop.permute.xlu1 %1135 }
0x1ce0   :  { %1141 = vst.msk [vmem:[#allocation18 + $0x8] sm:$0xff] %vm1139_vm8, %v1136_v43 }
0x1ce4   :  { %2097 = vrot.lane.b32.xlu1 %v4332_v60, %s3619_s4 }
0x1ce8   :  { %2332 = vrot.lane.b32.xlu1 %v4377_v19, %s4608_s15 }
0x1ceb   :  { %2095 = vrot.lane.b32.xlu0 %v4330_v53, %s3619_s4 }
0x1cef   :  { %2330 = vrot.lane.b32.xlu0 %v4374_v13, %s4608_s15 }
0x1cf0   :  { %3544 = shalt.err (!%p3541_p12)
}
0x1cf1   :  { %s3545_s9 = scalar_lea.hbm %s4562_s25, 256 }
0x1cf2   :  { %p3546_p13 = scmp.ne.s32.totalorder %s4562_s25, %s3545_s9  ;;  %p3549_p0 = scmp.lt.u32.totalorder %s3545_s9, %s4562_s25 }
0x1cf4   :  { %p3551_p1 = pnand %p3549_p0, %p3546_p13 }
0x1cf6   :  { %3554 = shalt.err (!%p3551_p1)
}
0x1cf7   :  { %s3642_s22 = smov 128   ;;  %vm2101_vm0 = vcmask 392448   ;;  %vm2336_vm2 = vcmask 523648   ;;  %s3643_s30 = smov [#allocation20]  }
0x1cf8   :  { %2779 = dma.vmem_to_hbm [thread:$0]  %s2774_s17, 256, %s4562_s25, [#allocation19], %s3642_s22, %s3642_s22, %s3637_s7  }
0x1cf9   :  { %s2785_s3 = sshll.u32 %s3643_s30, 4  ;;  %s2786_s3 = int_to_ptr.vmem [resolvable:$true] %s2785_s3 }
0x1cfa   :  { %s3555_s25 = scalar_lea.vmem %s2786_s3, 256  ;;  %p3560_p3 = scmp.lt.s32.totalorder %s2786_s3, %s2786_s3 }
0x1cfb   :  { %p3556_p2 = scmp.ne.s32.totalorder %s2786_s3, %s3555_s25  ;;  %p3561_p4 = scmp.lt.s32.totalorder %s3555_s25, %s3555_s25 }
0x1cfd   :  { %p3562_p5 = por %p3561_p4, %p3560_p3 }
0x1cff   :  { %p3563_p6 = pnand %p3562_p5, %p3556_p2 }
0x1d60   :  { %v2726_v53 = vpop.xlane.xlu1 %2725 }
0x1d61   :  { %v2730_v60 = vmul.f32 0.03125, %v2726_v53 }
0x1d62   :  { %v2729_v13 = vpop.xlane.xlu0 %2728 }
0x1d63   :  { %v2732_v19 = vadd.f32 1e-05, %v2730_v60  ;;  %v2731_v39 = vmul.f32 0.03125, %v2729_v13 }
0x1d64   :  { %v2098_v14 = vpop.permute.xlu1 %2097 }
0x1d65   :  { %3353 = vrsqrt.f32 %v2732_v19  ;;  %v2733_v29 = vadd.f32 1e-05, %v2731_v39  ;;  %2103 = vst.msk [vmem:[#allocation20 + $0x8] sm:$0xff] %vm2101_vm0, %v2098_v14 }
0x1d66   :  { %v2096_v41 = vpop.permute.xlu0 %2095 }
0x1d67   :  { %3355 = vrsqrt.f32 %v2733_v29  ;;  %2102 = vst.msk [vmem:[#allocation20] sm:$0xff] %vm2101_vm0, %v2096_v41 }
0x1d68   :  { %v2333_v44 = vpop.permute.xlu1 %2332 }
0x1d69   :  { %2338 = vst.msk [vmem:[#allocation20 + $0x8] sm:$0xff] %vm2336_vm2, %v2333_v44 }
0x1d6a   :  { %v2331_v46 = vpop.permute.xlu0 %2330 }
0x1d6b   :  { %2337 = vst.msk [vmem:[#allocation20] sm:$0xff] %vm2336_vm2, %v2331_v46 }
0x1d6c   :  { %3566 = shalt.err (!%p3563_p6)
}
0x1d6d   :  { %s3567_s1 = scalar_lea.hbm %s4563_s26, 256 }
0x1d6e   :  { %p3568_p7 = scmp.ne.s32.totalorder %s4563_s26, %s3567_s1  ;;  %p3571_p8 = scmp.lt.u32.totalorder %s3567_s1, %s4563_s26 }
0x1d70   :  { %p3573_p9 = pnand %p3571_p8, %p3568_p7 }
0x1d72   :  { %3576 = shalt.err (!%p3573_p9)
}
0x1d73   :  { %2791 = dma.vmem_to_hbm [thread:$0]  %s2786_s3, 256, %s4563_s26, [#allocation19], %s3642_s22, %s3642_s22, %s3637_s7   ;;  %v3354_v47 = vpop.eup %3353 }
0x1d74   :  { %s4609_s5 = sld [smem:[#allocation39_spill]]  ;;  %v2736_v49 = vmul.f32 %v3354_v47, %v4458_v33  ;;  %v3356_v57 = vpop.eup %3355  ;;  %s4610_s17 = sld [smem:[#allocation40_spill]] }
0x1d75   :  { %v2737_v18 = vmul.f32 %v3356_v57, %v4460_v48  ;;  %s3644_s14 = smov [#allocation17]  }
0x1d76   :  { %s2761_s24 = sshll.u32 %s3644_s14, 4  ;;  %s2762_s24 = int_to_ptr.vmem [resolvable:$true] %s2761_s24 }
0x1d77   :  { %s3577_s26 = scalar_lea.vmem %s2762_s24, 256  ;;  %p3582_p11 = scmp.lt.s32.totalorder %s2762_s24, %s2762_s24 }
0x1d78   :  { %p3578_p10 = scmp.ne.s32.totalorder %s2762_s24, %s3577_s26  ;;  %p3583_p12 = scmp.lt.s32.totalorder %s3577_s26, %s3577_s26 }
0x1d7a   :  { %v2881_v20 = vld [vmem:[%s4609_s5] ss:$0 sm:$0xff]  ;;  %p3584_p13 = por %p3583_p12, %p3582_p11 }
0x1d7b   :  { %v2882_v58 = vld [vmem:[%s4610_s17] ss:$0 sm:$0xff]  ;;  %v2744_v50 = vmul.f32 %v2881_v20, %v2736_v49  ;;  %v2745_v51 = vmul.f32 %v2881_v20, %v2737_v18 }
0x1d7c   :  { %p3585_p0 = pnand %p3584_p13, %p3578_p10 }
0x1d7d   :  { %v2752_v54 = vadd.f32 %v2882_v58, %v2744_v50  ;;  %v2753_v59 = vadd.f32 %v2882_v58, %v2745_v51 }
0x1d7f   :  { %2754 = vst.msk [vmem:[#allocation17] sm:$0xff] %vm246_vm1, %v2752_v54  ;;  %2755 = vst.msk [vmem:[#allocation17 + $0x8] sm:$0xff] %vm246_vm1, %v2753_v59 }
0x1d80   :  { %3588 = shalt.err (!%p3585_p0)
}
0x1d81   :  { %s4611_s28 = sld [smem:[#allocation41_spill]] }
0x1d87   :  { %s3589_s27 = scalar_lea.hbm %s4611_s28, 256 }
0x1d88   :  { %p3590_p1 = scmp.ne.s32.totalorder %s4611_s28, %s3589_s27  ;;  %p3593_p2 = scmp.lt.u32.totalorder %s3589_s27, %s4611_s28 }
0x1d8a   :  { %p3595_p3 = pnand %p3593_p2, %p3590_p1 }
0x1d8c   :  { %3598 = shalt.err (!%p3595_p3)
}
0x1d8d   :  { %2767 = dma.vmem_to_hbm [thread:$0]  %s2762_s24, 256, %s4611_s28, [#allocation5], %s3642_s22, %s3642_s22, %s3637_s7  }
0x1d8e   :  { %3609 = dma.done.wait [#allocation5], 256  }
0x1d8f   :  { %3610 = vsyncadd [#allocation5], 4294967040 }
0x1d90   :  { %3611 = dma.done.wait [#allocation19], 512  }
0x1d91   :  { %3612 = vsyncadd [#allocation19], 4294966784 }
0x1d92   :  { %2801 = vsyncpa [#allocation4], 1 }
0x1d93   :  { %2802 = vsyncpa [#allocation7], 1 }
0x1d94   :  { %2803 = vsyncpa [#allocation10], 1 }
0x1d95   :  { %2804 = vsyncpa [#allocation13], 1 }
0x1d96   :  { %2805 = vsyncpa [#allocation16], 1 }
0x1d97   :  { %2806 = vsyncpa [#allocation5], 1 }
0x1d98   :  { %2807 = vsyncpa [#allocation19], 1 }

</bundles_post_ra>
